<compile_context>
chip_gen: v7x
topology: tpu7x:2x2x1
jax: 0.10.0
libtpu: 0.0.40
codegen_flags: <defaults>
</compile_context>

<pallas_src>
import math

import numpy as np

import jax
import jax.numpy as jnp
from jax import lax
from jax.experimental import pallas as pl
from jax.experimental.pallas import tpu as pltpu

# ----------------------------- hyper params -----------------------------
B = 2                      # batch
C = 4                      # image channels
H = W = 16                 # spatial
PATCH = 4                  # patch size
GH = GW = H // PATCH       # 4
N_TOK = GH * GW            # 16 tokens per image
D = 32                     # embed dim
HEADS = 4
DH = D // HEADS            # 8
MLP_HID = 4 * D            # 128
DEC_MID = 16               # decoder mid channels
EPS = 1e-5

H1 = W1 = 2 * GH           # 8   (decoder feature map after first 2x upsample)
N1 = B * H1 * W1           # 128 (decoder stage-1 lane width)
N2 = B * H * W             # 512 (decoder stage-2 lane width)
NCOL = B * HEADS * N_TOK   # 128 (packed attention (batch, head, key) lane axis)


def _gelu_tanh(x):
    # tanh-approximate GELU (transcendental -> EUP).
    # TODO(synk): PyTorch nn.GELU defaults to the exact erf form; switch if the
    # reference encoder uses approximate="none".
    return 0.5 * x * (1.0 + jnp.tanh(0.7978845608028654 * (x + 0.044715 * x * x * x)))


def _fast_recip(x):
    # EUP reciprocal (free bundle slot) when available; VPU divide otherwise.
    if hasattr(pl, "reciprocal"):
        return pl.reciprocal(x, approx=True)
    return 1.0 / x


def _layernorm(x, g, b):
    mean = jnp.mean(x, axis=-1, keepdims=True)
    xc = x - mean
    var = jnp.mean(xc * xc, axis=-1, keepdims=True)
    return xc * lax.rsqrt(var + EPS) * g + b


# --------------------------- fused forward kernel ---------------------------
def anovit_fused_kernel(patches_ref, misc_ref, encw_ref, attnc_ref,
                        decw_ref, u1_ref, u2_ref, out_ref):
    f32, bf16 = jnp.float32, jnp.bfloat16

    misc = misc_ref[...]          # [96, 128] f32  packed small tensors
    encw = encw_ref[...]          # [160, 128] bf16 packed encoder weights
    attnc = attnc_ref[...]        # [128, 192] bf16 packed attention constants
    decw = decw_ref[...]          # [20, 288] bf16 packed K-stacked conv weights

    # --- unpack the f32 slab (one DMA for 13 small tensors) ---
    ln1_g, ln1_b = misc[0:1, 0:D], misc[1:2, 0:D]
    ln2_g, ln2_b = misc[2:3, 0:D], misc[3:4, 0:D]
    lnf_g, lnf_b = misc[4:5, 0:D], misc[5:6, 0:D]
    b_o = misc[6:7, 0:D]
    b_m2 = misc[7:8, 0:D]
    b_m1 = misc[8:9, 0:MLP_HID]
    b_qkv = misc[9:10, 0:3 * D]
    b_c2 = misc[12:16, 0:1]            # [4, 1]
    b_c1 = misc[16:32, :]              # [16, 128] (pre-broadcast over lanes)
    addmask = misc[32:64, :]           # [32, 128] additive off-batch mask (0 / -1e30)
    bias_pos = misc[64:96, 0:D]        # [32, 32]  b_pe + positional, batch-tiled

    # --- unpack the bf16 encoder-weight slab ---
    w_pe = encw[0:64, 0:D]             # [64, 32]
    w_qkv = encw[64:96, 0:3 * D]       # [32, 96]
    w_o = encw[64:96, 96:128]          # [32, 32]
    w_m1 = encw[96:128, :]             # [32, 128]
    w_m2t = encw[128:160, :]           # [32, 128]  (= W_m2^T)

    gsum = attnc[:, 0:NCOL]                                   # [128, 128]
    sel_rep = attnc[:, NCOL:NCOL + B * N_TOK]                  # [128, 32]
    mask_h = attnc[:, NCOL + B * N_TOK:NCOL + B * N_TOK + D]   # [128, 32]

    # ============================ encoder ============================
    h = jnp.dot(patches_ref[...].astype(bf16), w_pe,
                preferred_element_type=f32) + bias_pos                     # [32, 32]

    # --- pre-LN transformer block: lane/block-diagonal packed attention ---
    hn = _layernorm(h, ln1_g, ln1_b)
    qkv = jnp.dot(hn.astype(bf16), w_qkv, preferred_element_type=f32) + b_qkv   # [32, 96]

    q = qkv[:, 0:D].astype(bf16)                       # [32, 32]
    kv = qkv[:, D:3 * D].astype(bf16)                  # [32, 64]
    # expand K/V onto the packed 128-lane (batch, head, key-token) axis with ONE
    # matmul, then zero the off-head feature blocks (block-diagonal packing).
    kv_exp = jnp.dot(sel_rep, kv, preferred_element_type=f32).astype(bf16)      # [128, 64]
    k_exp = kv_exp[:, 0:D] * mask_h                    # [128, 32]
    v_exp = kv_exp[:, D:2 * D] * mask_h                # [128, 32]

    # all (batch, head) score blocks with one MXU op; off-batch columns -> -1e30
    s = lax.dot_general(q, k_exp, (((1,), (1,)), ((), ())),
                        preferred_element_type=f32)                          # [32, 128]
    s = s * (1.0 / math.sqrt(DH)) + addmask
    m = jnp.max(s, axis=-1, keepdims=True)             # one full 128-lane reduce
    e = jnp.exp(s - m)
    # per-(batch, head) softmax denominators via one matmul with a 0/1 group matrix
    denom = jnp.dot(e.astype(bf16), gsum, preferred_element_type=f32)        # [32, 128]
    p = (e * _fast_recip(denom + 1e-6)).astype(bf16)   # masked groups: e == 0 -> p == 0
    head_out = jnp.dot(p, v_exp, preferred_element_type=f32)                 # [32, 32]
    h = h + jnp.dot(head_out.astype(bf16), w_o, preferred_element_type=f32) + b_o

    # --- MLP ---
    hn = _layernorm(h, ln2_g, ln2_b)
    m1 = _gelu_tanh(jnp.dot(hn.astype(bf16), w_m1, preferred_element_type=f32) + b_m1)
    h = h + lax.dot_general(m1.astype(bf16), w_m2t, (((1,), (1,)), ((), ())),
                            preferred_element_type=f32) + b_m2
    tokens = _layernorm(h, lnf_g, lnf_b)               # [32, 32]

    # ============================ decoder ============================
    # Channels-major, lane-dense layout.  Upsample + 3x3 tap shift + zero padding
    # are folded into the precomputed 0/1 matrices u1/u2 (one 128/512-lane block
    # per tap); taps are K-stacked so each conv is one big matmul.  Pure MXU.
    # NOTE: single 32x32 transpose kept on purpose (only transpose in the kernel).
    tok_t = jnp.transpose(tokens).astype(bf16)                               # [32(cin), 32(bn)]
    x1_wide = jnp.dot(tok_t, u1_ref[...], preferred_element_type=f32)        # [32, 9*128]
    x1 = jnp.concatenate([x1_wide[:, t * N1:(t + 1) * N1] for t in range(9)],
                         axis=0).astype(bf16)                                # [288, 128]
    out1 = jnp.dot(decw[0:DEC_MID, :], x1, preferred_element_type=f32) + b_c1
    out1 = jnp.maximum(out1, 0.0).astype(bf16)                               # [16, 128]

    x2_wide = jnp.dot(out1, u2_ref[...], preferred_element_type=f32)         # [16, 9*512]
    x2 = jnp.concatenate([x2_wide[:, t * N2:(t + 1) * N2] for t in range(9)],
                         axis=0).astype(bf16)                                # [144, 512]
    out = jnp.dot(decw[DEC_MID:DEC_MID + C, 0:9 * DEC_MID], x2,
                  preferred_element_type=f32) + b_c2                         # [4, 512]
    out_ref[...] = out                                                       # lane-dense store


# ----------------------------- parameters -------------------------------
def init_params(key):
    ks = jax.random.split(key, 8)
    s = 0.02
    p = {}
    p["W_pe"] = s * jax.random.normal(ks[0], (C * PATCH * PATCH, D))
    p["b_pe"] = jnp.zeros((D,))
    p["pos"] = s * jax.random.normal(ks[1], (1, N_TOK, D))
    p["ln1_g"] = jnp.ones((D,)); p["ln1_b"] = jnp.zeros((D,))
    p["W_qkv"] = s * jax.random.normal(ks[2], (D, 3 * D))
    p["b_qkv"] = jnp.zeros((3 * D,))
    p["W_o"] = s * jax.random.normal(ks[3], (D, D))
    p["b_o"] = jnp.zeros((D,))
    p["ln2_g"] = jnp.ones((D,)); p["ln2_b"] = jnp.zeros((D,))
    p["W_m1"] = s * jax.random.normal(ks[4], (D, MLP_HID))
    p["b_m1"] = jnp.zeros((MLP_HID,))
    p["W_m2"] = s * jax.random.normal(ks[5], (MLP_HID, D))
    p["b_m2"] = jnp.zeros((D,))
    p["lnf_g"] = jnp.ones((D,)); p["lnf_b"] = jnp.zeros((D,))
    p["W_c1"] = s * jax.random.normal(ks[6], (DEC_MID, D, 3, 3))
    p["b_c1"] = jnp.zeros((DEC_MID,))
    p["W_c2"] = s * jax.random.normal(ks[7], (C, DEC_MID, 3, 3))
    p["b_c2"] = jnp.zeros((C,))
    return jax.tree_util.tree_map(lambda a: a.astype(jnp.float32), p)


# --------------------- one-time constant / slab construction ---------------------
def _attn_constants():
    """Constant 0/1 matrices for the packed (batch, head, key-token) attention."""
    f32 = np.float32
    c = np.arange(NCOL)                 # packed column: (b*HEADS + h)*N_TOK + j
    cb = c // (HEADS * N_TOK)
    ch = (c // N_TOK) % HEADS
    cj = c % N_TOK
    r = np.arange(B * N_TOK)            # token row: b*N_TOK + j
    rb = r // N_TOK
    rj = r % N_TOK
    d = np.arange(D)
    dh = d // DH
    sel_rep = ((cb[:, None] == rb[None, :]) & (cj[:, None] == rj[None, :])).astype(f32)  # [128, 32]
    mask_head = (ch[:, None] == dh[None, :]).astype(f32)                                  # [128, 32]
    grp = c // N_TOK
    gsum = (grp[:, None] == grp[None, :]).astype(f32)                                     # [128, 128]
    addmask = np.where(rb[:, None] == cb[None, :], 0.0, -1e30).astype(f32)                # [32, 128]
    return sel_rep, mask_head, gsum, addmask


def _upsample_tap_matrices(b, h_in, w_in):
    """[9, b*h_in*w_in, b*(2h)*(2w)] 0/1 matrices: tap t = dy*3+dx folds
    nearest-2x-upsample, the 3x3 conv tap shift, and the zero padding."""
    f32 = np.float32
    h_out, w_out = 2 * h_in, 2 * w_in
    n_in, n_out = b * h_in * w_in, b * h_out * w_out
    col = np.arange(n_out)
    cb = col // (h_out * w_out)
    cy = (col % (h_out * w_out)) // w_out
    cx = col % w_out
    row = np.arange(n_in)
    rb = row // (h_in * w_in)
    ry = (row % (h_in * w_in)) // w_in
    rx = row % w_in
    taps = []
    for dy in range(3):
        for dx in range(3):
            sy = cy + dy - 1
            sx = cx + dx - 1
            valid = (sy >= 0) & (sy < h_out) & (sx >= 0) & (sx < w_out)
            uy = np.clip(sy, 0, h_out - 1) // 2
            ux = np.clip(sx, 0, w_out - 1) // 2
            m = ((rb[:, None] == cb[None, :])
                 & (ry[:, None] == uy[None, :])
                 & (rx[:, None] == ux[None, :])
                 & valid[None, :])
            taps.append(m.astype(f32))
    return np.stack(taps, axis=0)       # [9, n_in, n_out]


def prepare_kernel_params(p):
    """One-time prep: pack everything into 6 DMA-friendly slabs (plus per-call patches)."""
    f32 = np.float32

    # ---- packed f32 slab: LN params, biases, attention mask, pos-embed ----
    misc = np.zeros((96, 128), f32)

    def _row(r, v):
        v = np.asarray(v, f32).reshape(-1)
        misc[r, :v.shape[0]] = v

    _row(0, p["ln1_g"]); _row(1, p["ln1_b"])
    _row(2, p["ln2_g"]); _row(3, p["ln2_b"])
    _row(4, p["lnf_g"]); _row(5, p["lnf_b"])
    _row(6, p["b_o"]); _row(7, p["b_m2"])
    _row(8, p["b_m1"]); _row(9, p["b_qkv"])
    misc[12:16, :] = np.asarray(p["b_c2"], f32)[:, None]
    misc[16:32, :] = np.asarray(p["b_c1"], f32)[:, None]
    sel_rep, mask_head, gsum, addmask = _attn_constants()
    misc[32:64, :] = addmask
    misc[64:96, 0:D] = (np.asarray(p["b_pe"], f32)[None, :]
                        + np.tile(np.asarray(p["pos"], f32)[0], (B, 1)))

    # ---- packed bf16 encoder-weight slab ----
    encw = np.zeros((160, 128), f32)
    encw[0:64, 0:D] = np.asarray(p["W_pe"], f32)
    encw[64:96, 0:3 * D] = np.asarray(p["W_qkv"], f32)
    encw[64:96, 96:128] = np.asarray(p["W_o"], f32)
    encw[96:128, 0:MLP_HID] = np.asarray(p["W_m1"], f32)
    encw[128:160, 0:MLP_HID] = np.asarray(p["W_m2"], f32).T

    # ---- packed bf16 attention constants ----
    attnc = np.zeros((NCOL, 192), f32)
    attnc[:, 0:NCOL] = gsum
    attnc[:, NCOL:NCOL + B * N_TOK] = sel_rep
    attnc[:, NCOL + B * N_TOK:NCOL + B * N_TOK + D] = mask_head

    # ---- packed bf16 K-stacked conv weights: [cout, (dy*3+dx)*Cin + cin] ----
    decw = np.zeros((DEC_MID + C, 9 * D), f32)
    decw[0:DEC_MID, :] = np.asarray(p["W_c1"], f32).transpose(0, 2, 3, 1).reshape(DEC_MID, 9 * D)
    decw[DEC_MID:, 0:9 * DEC_MID] = np.asarray(p["W_c2"], f32).transpose(0, 2, 3, 1).reshape(C, 9 * DEC_MID)

    # ---- per-tap (upsample o shift o pad) 0/1 matrices, hstacked by tap ----
    u1_cat = np.concatenate(list(_upsample_tap_matrices(B, GH, GW)), axis=1)   # [32, 1152]
    u2_cat = np.concatenate(list(_upsample_tap_matrices(B, H1, W1)), axis=1)   # [128, 4608]

    bf16 = jnp.bfloat16
    return [
        jnp.asarray(misc, jnp.float32),
        jnp.asarray(encw, bf16),
        jnp.asarray(attnc, bf16),
        jnp.asarray(decw, bf16),
        jnp.asarray(u1_cat, bf16),
        jnp.asarray(u2_cat, bf16),
    ]


# ----------------------------- forward pass -----------------------------
def _full_spec(a):
    nd = a.ndim
    return pl.BlockSpec(a.shape, lambda i, _nd=nd: (0,) * _nd)


def _compiler_params():
    if hasattr(pltpu, "CompilerParams"):
        return pltpu.CompilerParams(dimension_semantics=("arbitrary",),
                                    vmem_limit_bytes=32 * 1024 * 1024)
    return None


@jax.jit
def anovit2d_forward(kparams, x):
    b = x.shape[0]
    assert b == B
    # patch extraction (layout plumbing kept outside the kernel)
    patches = (x.reshape(b, C, GH, PATCH, GW, PATCH)
                .transpose(0, 2, 4, 1, 3, 5)
                .reshape(b * N_TOK, C * PATCH * PATCH))
    args = [patches] + list(kparams)
    out_mat = pl.pallas_call(
        anovit_fused_kernel,
        out_shape=jax.ShapeDtypeStruct((C, b * H * W), jnp.float32),
        grid=(1,),
        in_specs=[_full_spec(a) for a in args],
        out_specs=pl.BlockSpec((C, b * H * W), lambda i: (0, 0)),
        compiler_params=_compiler_params(),
    )(*args)
    # lane-dense [C, B*H*W] slab -> NCHW
    return out_mat.reshape(C, b, H, W).transpose(1, 0, 2, 3)


# ----------------------------- plain-JAX reference -----------------------
def _reference_forward(p, x):
    b = x.shape[0]
    patches = (x.reshape(b, C, GH, PATCH, GW, PATCH)
                .transpose(0, 2, 4, 1, 3, 5)
                .reshape(b * N_TOK, C * PATCH * PATCH))

    def ln(v, g, beta):
        m = v.mean(-1, keepdims=True)
        var = ((v - m) ** 2).mean(-1, keepdims=True)
        return (v - m) * lax.rsqrt(var + EPS) * g + beta

    h = patches @ p["W_pe"] + p["b_pe"]
    h = (h.reshape(b, N_TOK, D) + p["pos"]).reshape(b * N_TOK, D)

    hn = ln(h, p["ln1_g"], p["ln1_b"])
    qkv = (hn @ p["W_qkv"] + p["b_qkv"]).reshape(b, N_TOK, 3, HEADS, DH)
    qkv = qkv.transpose(2, 0, 3, 1, 4)                     # [3, b, heads, N, dh]
    q, k, v = qkv[0], qkv[1], qkv[2]
    s = jnp.einsum("bhnd,bhmd->bhnm", q, k) / math.sqrt(DH)
    pr = jax.nn.softmax(s, axis=-1)
    attn = jnp.einsum("bhnm,bhmd->bhnd", pr, v)
    attn = attn.transpose(0, 2, 1, 3).reshape(b * N_TOK, D)
    h = h + attn @ p["W_o"] + p["b_o"]

    hn = ln(h, p["ln2_g"], p["ln2_b"])
    h = h + _gelu_tanh(hn @ p["W_m1"] + p["b_m1"]) @ p["W_m2"] + p["b_m2"]
    tokens = ln(h, p["lnf_g"], p["lnf_b"])

    feat = tokens.reshape(b, GH, GW, D).transpose(0, 3, 1, 2)          # [B, D, 4, 4]
    feat = jnp.repeat(jnp.repeat(feat, 2, axis=2), 2, axis=3)          # [B, D, 8, 8]
    feat = lax.conv_general_dilated(feat, p["W_c1"], (1, 1), ((1, 1), (1, 1)),
                                    dimension_numbers=("NCHW", "OIHW", "NCHW"))
    feat = jnp.maximum(feat + p["b_c1"][None, :, None, None], 0.0)
    feat = jnp.repeat(jnp.repeat(feat, 2, axis=2), 2, axis=3)          # [B, 16, 16, 16]
    out = lax.conv_general_dilated(feat, p["W_c2"], (1, 1), ((1, 1), (1, 1)),
                                   dimension_numbers=("NCHW", "OIHW", "NCHW"))
    return out + p["b_c2"][None, :, None, None]


# ------------------------------- main ------------------------------------
if __name__ == "__main__":
    key = jax.random.PRNGKey(0)
    k_param, k_x = jax.random.split(key)
    params = init_params(k_param)
    kparams = prepare_kernel_params(params)      # one-time param prep (outside jit)
    x = jax.random.normal(k_x, (B, C, H, W), dtype=jnp.float32)   # NCHW

    y = jax.block_until_ready(anovit2d_forward(kparams, x))

    assert y.shape == (B, C, H, W), y.shape
    assert y.dtype == jnp.float32
    assert bool(jnp.all(jnp.isfinite(y)))

    # correctness vs a plain-JAX f32 reference (loose tol: bf16 MXU operands)
    y_ref = jax.block_until_ready(jax.jit(_reference_forward)(params, x))
    err = float(jnp.max(jnp.abs(y - y_ref)))
    assert err < 5e-2, f"max abs diff vs reference = {err}"

    print("KERNEL_OK")
</pallas_src>

<mosaic_0001>
module attributes {stable_mosaic.version = 11 : i64} {
  func.func @anovit_fused_kernel(%arg0: i32, %arg1: memref<32x64xf32, #tpu.memory_space<vmem>>, %arg2: memref<96x128xf32, #tpu.memory_space<vmem>>, %arg3: memref<160x128xbf16, #tpu.memory_space<vmem>>, %arg4: memref<128x192xbf16, #tpu.memory_space<vmem>>, %arg5: memref<20x288xbf16, #tpu.memory_space<vmem>>, %arg6: memref<32x1152xbf16, #tpu.memory_space<vmem>>, %arg7: memref<128x4608xbf16, #tpu.memory_space<vmem>>, %arg8: memref<4x512xf32, #tpu.memory_space<vmem>>) attributes {dimension_semantics = [#tpu.dimension_semantics<arbitrary>], iteration_bounds = array<i64: 1>, scalar_prefetch = 0 : i64, scratch_operands = 0 : i64, tpu.core_type = #tpu.core_type<tc>, window_params = [{pipeline_mode = #tpu.pipeline_mode<synchronous>, transform_indices = @transform_0, window_bounds = array<i64: 32, 64>}, {pipeline_mode = #tpu.pipeline_mode<synchronous>, transform_indices = @transform_1, window_bounds = array<i64: 96, 128>}, {pipeline_mode = #tpu.pipeline_mode<synchronous>, transform_indices = @transform_2, window_bounds = array<i64: 160, 128>}, {pipeline_mode = #tpu.pipeline_mode<synchronous>, transform_indices = @transform_3, window_bounds = array<i64: 128, 192>}, {pipeline_mode = #tpu.pipeline_mode<synchronous>, transform_indices = @transform_4, window_bounds = array<i64: 20, 288>}, {pipeline_mode = #tpu.pipeline_mode<synchronous>, transform_indices = @transform_5, window_bounds = array<i64: 32, 1152>}, {pipeline_mode = #tpu.pipeline_mode<synchronous>, transform_indices = @transform_6, window_bounds = array<i64: 128, 4608>}, {pipeline_mode = #tpu.pipeline_mode<synchronous>, transform_indices = @transform_7, window_bounds = array<i64: 4, 512>}]} {
    %c0 = arith.constant 0 : index
    %c0_0 = arith.constant 0 : index
    %0 = vector.load %arg2[%c0, %c0_0] : memref<96x128xf32, #tpu.memory_space<vmem>>, vector<96x128xf32>
    %c0_1 = arith.constant 0 : index
    %c0_2 = arith.constant 0 : index
    %1 = vector.load %arg3[%c0_1, %c0_2] : memref<160x128xbf16, #tpu.memory_space<vmem>>, vector<160x128xbf16>
    %c0_3 = arith.constant 0 : index
    %c0_4 = arith.constant 0 : index
    %2 = vector.load %arg4[%c0_3, %c0_4] : memref<128x192xbf16, #tpu.memory_space<vmem>>, vector<128x192xbf16>
    %c0_5 = arith.constant 0 : index
    %c0_6 = arith.constant 0 : index
    %3 = vector.load %arg5[%c0_5, %c0_6] : memref<20x288xbf16, #tpu.memory_space<vmem>>, vector<20x288xbf16>
    %4 = vector.extract_strided_slice %0 {offsets = [0, 0], sizes = [1, 32], strides = [1, 1]} : vector<96x128xf32> to vector<1x32xf32>
    %5 = vector.extract_strided_slice %0 {offsets = [1, 0], sizes = [1, 32], strides = [1, 1]} : vector<96x128xf32> to vector<1x32xf32>
    %6 = vector.extract_strided_slice %0 {offsets = [2, 0], sizes = [1, 32], strides = [1, 1]} : vector<96x128xf32> to vector<1x32xf32>
    %7 = vector.extract_strided_slice %0 {offsets = [3, 0], sizes = [1, 32], strides = [1, 1]} : vector<96x128xf32> to vector<1x32xf32>
    %8 = vector.extract_strided_slice %0 {offsets = [4, 0], sizes = [1, 32], strides = [1, 1]} : vector<96x128xf32> to vector<1x32xf32>
    %9 = vector.extract_strided_slice %0 {offsets = [5, 0], sizes = [1, 32], strides = [1, 1]} : vector<96x128xf32> to vector<1x32xf32>
    %10 = vector.extract_strided_slice %0 {offsets = [6, 0], sizes = [1, 32], strides = [1, 1]} : vector<96x128xf32> to vector<1x32xf32>
    %11 = vector.extract_strided_slice %0 {offsets = [7, 0], sizes = [1, 32], strides = [1, 1]} : vector<96x128xf32> to vector<1x32xf32>
    %12 = vector.extract_strided_slice %0 {offsets = [8, 0], sizes = [1, 128], strides = [1, 1]} : vector<96x128xf32> to vector<1x128xf32>
    %13 = vector.extract_strided_slice %0 {offsets = [9, 0], sizes = [1, 96], strides = [1, 1]} : vector<96x128xf32> to vector<1x96xf32>
    %14 = vector.extract_strided_slice %0 {offsets = [12, 0], sizes = [4, 1], strides = [1, 1]} : vector<96x128xf32> to vector<4x1xf32>
    %15 = vector.extract_strided_slice %0 {offsets = [16, 0], sizes = [16, 128], strides = [1, 1]} : vector<96x128xf32> to vector<16x128xf32>
    %16 = vector.extract_strided_slice %0 {offsets = [32, 0], sizes = [32, 128], strides = [1, 1]} : vector<96x128xf32> to vector<32x128xf32>
    %17 = vector.extract_strided_slice %0 {offsets = [64, 0], sizes = [32, 32], strides = [1, 1]} : vector<96x128xf32> to vector<32x32xf32>
    %18 = vector.extract_strided_slice %1 {offsets = [0, 0], sizes = [64, 32], strides = [1, 1]} : vector<160x128xbf16> to vector<64x32xbf16>
    %19 = vector.extract_strided_slice %1 {offsets = [64, 0], sizes = [32, 96], strides = [1, 1]} : vector<160x128xbf16> to vector<32x96xbf16>
    %20 = vector.extract_strided_slice %1 {offsets = [64, 96], sizes = [32, 32], strides = [1, 1]} : vector<160x128xbf16> to vector<32x32xbf16>
    %21 = vector.extract_strided_slice %1 {offsets = [96, 0], sizes = [32, 128], strides = [1, 1]} : vector<160x128xbf16> to vector<32x128xbf16>
    %22 = vector.extract_strided_slice %1 {offsets = [128, 0], sizes = [32, 128], strides = [1, 1]} : vector<160x128xbf16> to vector<32x128xbf16>
    %23 = vector.extract_strided_slice %2 {offsets = [0, 0], sizes = [128, 128], strides = [1, 1]} : vector<128x192xbf16> to vector<128x128xbf16>
    %24 = vector.extract_strided_slice %2 {offsets = [0, 128], sizes = [128, 32], strides = [1, 1]} : vector<128x192xbf16> to vector<128x32xbf16>
    %25 = vector.extract_strided_slice %2 {offsets = [0, 160], sizes = [128, 32], strides = [1, 1]} : vector<128x192xbf16> to vector<128x32xbf16>
    %c0_7 = arith.constant 0 : index
    %c0_8 = arith.constant 0 : index
    %26 = vector.load %arg1[%c0_7, %c0_8] : memref<32x64xf32, #tpu.memory_space<vmem>>, vector<32x64xf32>
    %27 = arith.truncf %26 : vector<32x64xf32> to vector<32x64xbf16>
    %cst = arith.constant dense<0.000000e+00> : vector<32x32xf32>
    %28 = tpu.matmul %27, %18, %cst {dimension_numbers = #tpu.dot_dimension_numbers<[1], [0], [0], [1], [0, 0, 1, 1], [], []>} : vector<32x64xbf16>, vector<64x32xbf16>, vector<32x32xf32> -> vector<32x32xf32>
    %29 = arith.addf %28, %17 : vector<32x32xf32>
    %cst_9 = arith.constant dense<0.000000e+00> : vector<32xf32>
    %30 = vector.multi_reduction <add>, %29, %cst_9 [1] : vector<32x32xf32> to vector<32xf32>
    %31 = vector.shape_cast %30 : vector<32xf32> to vector<32x1xf32>
    %cst_10 = arith.constant 3.200000e+01 : f32
    %32 = vector.broadcast %cst_10 : f32 to vector<32x1xf32>
    %33 = arith.divf %31, %32 : vector<32x1xf32>
    %34 = vector.broadcast %33 : vector<32x1xf32> to vector<32x32xf32>
    %35 = arith.subf %29, %34 : vector<32x32xf32>
    %36 = arith.mulf %35, %35 : vector<32x32xf32>
    %cst_11 = arith.constant dense<0.000000e+00> : vector<32xf32>
    %37 = vector.multi_reduction <add>, %36, %cst_11 [1] : vector<32x32xf32> to vector<32xf32>
    %38 = vector.shape_cast %37 : vector<32xf32> to vector<32x1xf32>
    %cst_12 = arith.constant 3.200000e+01 : f32
    %39 = vector.broadcast %cst_12 : f32 to vector<32x1xf32>
    %40 = arith.divf %38, %39 : vector<32x1xf32>
    %cst_13 = arith.constant 9.99999974E-6 : f32
    %41 = vector.broadcast %cst_13 : f32 to vector<32x1xf32>
    %42 = arith.addf %40, %41 : vector<32x1xf32>
    %43 = math.rsqrt %42 : vector<32x1xf32>
    %44 = vector.broadcast %43 : vector<32x1xf32> to vector<32x32xf32>
    %45 = arith.mulf %35, %44 : vector<32x32xf32>
    %46 = vector.broadcast %4 : vector<1x32xf32> to vector<32x32xf32>
    %47 = arith.mulf %45, %46 : vector<32x32xf32>
    %48 = vector.broadcast %5 : vector<1x32xf32> to vector<32x32xf32>
    %49 = arith.addf %47, %48 : vector<32x32xf32>
    %50 = arith.truncf %49 : vector<32x32xf32> to vector<32x32xbf16>
    %cst_14 = arith.constant dense<0.000000e+00> : vector<32x96xf32>
    %51 = tpu.matmul %50, %19, %cst_14 {dimension_numbers = #tpu.dot_dimension_numbers<[1], [0], [0], [1], [0, 0, 1, 1], [], []>} : vector<32x32xbf16>, vector<32x96xbf16>, vector<32x96xf32> -> vector<32x96xf32>
    %52 = vector.broadcast %13 : vector<1x96xf32> to vector<32x96xf32>
    %53 = arith.addf %51, %52 : vector<32x96xf32>
    %54 = vector.extract_strided_slice %53 {offsets = [0, 0], sizes = [32, 32], strides = [1, 1]} : vector<32x96xf32> to vector<32x32xf32>
    %55 = arith.truncf %54 : vector<32x32xf32> to vector<32x32xbf16>
    %56 = vector.extract_strided_slice %53 {offsets = [0, 32], sizes = [32, 64], strides = [1, 1]} : vector<32x96xf32> to vector<32x64xf32>
    %57 = arith.truncf %56 : vector<32x64xf32> to vector<32x64xbf16>
    %cst_15 = arith.constant dense<0.000000e+00> : vector<128x64xf32>
    %58 = tpu.matmul %24, %57, %cst_15 {dimension_numbers = #tpu.dot_dimension_numbers<[1], [0], [0], [1], [0, 0, 1, 1], [], []>} : vector<128x32xbf16>, vector<32x64xbf16>, vector<128x64xf32> -> vector<128x64xf32>
    %59 = arith.truncf %58 : vector<128x64xf32> to vector<128x64xbf16>
    %60 = vector.extract_strided_slice %59 {offsets = [0, 0], sizes = [128, 32], strides = [1, 1]} : vector<128x64xbf16> to vector<128x32xbf16>
    %61 = arith.mulf %60, %25 : vector<128x32xbf16>
    %62 = vector.extract_strided_slice %59 {offsets = [0, 32], sizes = [128, 32], strides = [1, 1]} : vector<128x64xbf16> to vector<128x32xbf16>
    %63 = arith.mulf %62, %25 : vector<128x32xbf16>
    %cst_16 = arith.constant dense<0.000000e+00> : vector<32x128xf32>
    %64 = tpu.matmul %55, %61, %cst_16 {dimension_numbers = #tpu.dot_dimension_numbers<[1], [1], [0], [0], [0, 0, 1, 0], [], []>} : vector<32x32xbf16>, vector<128x32xbf16>, vector<32x128xf32> -> vector<32x128xf32>
    %cst_17 = arith.constant 0.353553385 : f32
    %65 = vector.broadcast %cst_17 : f32 to vector<32x128xf32>
    %66 = arith.mulf %64, %65 : vector<32x128xf32>
    %67 = arith.addf %66, %16 : vector<32x128xf32>
    %cst_18 = arith.constant dense<0xFF800000> : vector<32xf32>
    %68 = vector.multi_reduction <maximumf>, %67, %cst_18 [1] : vector<32x128xf32> to vector<32xf32>
    %69 = vector.shape_cast %68 : vector<32xf32> to vector<32x1xf32>
    %70 = vector.broadcast %69 : vector<32x1xf32> to vector<32x128xf32>
    %71 = arith.subf %67, %70 : vector<32x128xf32>
    %72 = math.exp %71 : vector<32x128xf32>
    %73 = arith.truncf %72 : vector<32x128xf32> to vector<32x128xbf16>
    %cst_19 = arith.constant dense<0.000000e+00> : vector<32x128xf32>
    %74 = tpu.matmul %73, %23, %cst_19 {dimension_numbers = #tpu.dot_dimension_numbers<[1], [0], [0], [1], [0, 0, 1, 1], [], []>} : vector<32x128xbf16>, vector<128x128xbf16>, vector<32x128xf32> -> vector<32x128xf32>
    %cst_20 = arith.constant 9.99999997E-7 : f32
    %75 = vector.broadcast %cst_20 : f32 to vector<32x128xf32>
    %76 = arith.addf %74, %75 : vector<32x128xf32>
    %77 = tpu.reciprocal %76 {approx = true} : vector<32x128xf32> -> vector<32x128xf32>
    %78 = arith.mulf %72, %77 : vector<32x128xf32>
    %79 = arith.truncf %78 : vector<32x128xf32> to vector<32x128xbf16>
    %cst_21 = arith.constant dense<0.000000e+00> : vector<32x32xf32>
    %80 = tpu.matmul %79, %63, %cst_21 {dimension_numbers = #tpu.dot_dimension_numbers<[1], [0], [0], [1], [0, 0, 1, 1], [], []>} : vector<32x128xbf16>, vector<128x32xbf16>, vector<32x32xf32> -> vector<32x32xf32>
    %81 = arith.truncf %80 : vector<32x32xf32> to vector<32x32xbf16>
    %cst_22 = arith.constant dense<0.000000e+00> : vector<32x32xf32>
    %82 = tpu.matmul %81, %20, %cst_22 {dimension_numbers = #tpu.dot_dimension_numbers<[1], [0], [0], [1], [0, 0, 1, 1], [], []>} : vector<32x32xbf16>, vector<32x32xbf16>, vector<32x32xf32> -> vector<32x32xf32>
    %83 = arith.addf %29, %82 : vector<32x32xf32>
    %84 = vector.broadcast %10 : vector<1x32xf32> to vector<32x32xf32>
    %85 = arith.addf %83, %84 : vector<32x32xf32>
    %cst_23 = arith.constant dense<0.000000e+00> : vector<32xf32>
    %86 = vector.multi_reduction <add>, %85, %cst_23 [1] : vector<32x32xf32> to vector<32xf32>
    %87 = vector.shape_cast %86 : vector<32xf32> to vector<32x1xf32>
    %cst_24 = arith.constant 3.200000e+01 : f32
    %88 = vector.broadcast %cst_24 : f32 to vector<32x1xf32>
    %89 = arith.divf %87, %88 : vector<32x1xf32>
    %90 = vector.broadcast %89 : vector<32x1xf32> to vector<32x32xf32>
    %91 = arith.subf %85, %90 : vector<32x32xf32>
    %92 = arith.mulf %91, %91 : vector<32x32xf32>
    %cst_25 = arith.constant dense<0.000000e+00> : vector<32xf32>
    %93 = vector.multi_reduction <add>, %92, %cst_25 [1] : vector<32x32xf32> to vector<32xf32>
    %94 = vector.shape_cast %93 : vector<32xf32> to vector<32x1xf32>
    %cst_26 = arith.constant 3.200000e+01 : f32
    %95 = vector.broadcast %cst_26 : f32 to vector<32x1xf32>
    %96 = arith.divf %94, %95 : vector<32x1xf32>
    %cst_27 = arith.constant 9.99999974E-6 : f32
    %97 = vector.broadcast %cst_27 : f32 to vector<32x1xf32>
    %98 = arith.addf %96, %97 : vector<32x1xf32>
    %99 = math.rsqrt %98 : vector<32x1xf32>
    %100 = vector.broadcast %99 : vector<32x1xf32> to vector<32x32xf32>
    %101 = arith.mulf %91, %100 : vector<32x32xf32>
    %102 = vector.broadcast %6 : vector<1x32xf32> to vector<32x32xf32>
    %103 = arith.mulf %101, %102 : vector<32x32xf32>
    %104 = vector.broadcast %7 : vector<1x32xf32> to vector<32x32xf32>
    %105 = arith.addf %103, %104 : vector<32x32xf32>
    %106 = arith.truncf %105 : vector<32x32xf32> to vector<32x32xbf16>
    %cst_28 = arith.constant dense<0.000000e+00> : vector<32x128xf32>
    %107 = tpu.matmul %106, %21, %cst_28 {dimension_numbers = #tpu.dot_dimension_numbers<[1], [0], [0], [1], [0, 0, 1, 1], [], []>} : vector<32x32xbf16>, vector<32x128xbf16>, vector<32x128xf32> -> vector<32x128xf32>
    %108 = vector.broadcast %12 : vector<1x128xf32> to vector<32x128xf32>
    %109 = arith.addf %107, %108 : vector<32x128xf32>
    %cst_29 = arith.constant 5.000000e-01 : f32
    %110 = vector.broadcast %cst_29 : f32 to vector<32x128xf32>
    %111 = arith.mulf %110, %109 : vector<32x128xf32>
    %cst_30 = arith.constant 4.471500e-02 : f32
    %112 = vector.broadcast %cst_30 : f32 to vector<32x128xf32>
    %113 = arith.mulf %112, %109 : vector<32x128xf32>
    %114 = arith.mulf %113, %109 : vector<32x128xf32>
    %115 = arith.mulf %114, %109 : vector<32x128xf32>
    %116 = arith.addf %109, %115 : vector<32x128xf32>
    %cst_31 = arith.constant 0.797884583 : f32
    %117 = vector.broadcast %cst_31 : f32 to vector<32x128xf32>
    %118 = arith.mulf %117, %116 : vector<32x128xf32>
    %119 = math.tanh %118 : vector<32x128xf32>
    %cst_32 = arith.constant 1.000000e+00 : f32
    %120 = vector.broadcast %cst_32 : f32 to vector<32x128xf32>
    %121 = arith.addf %120, %119 : vector<32x128xf32>
    %122 = arith.mulf %111, %121 : vector<32x128xf32>
    %123 = arith.truncf %122 : vector<32x128xf32> to vector<32x128xbf16>
    %cst_33 = arith.constant dense<0.000000e+00> : vector<32x32xf32>
    %124 = tpu.matmul %123, %22, %cst_33 {dimension_numbers = #tpu.dot_dimension_numbers<[1], [1], [0], [0], [0, 0, 1, 0], [], []>} : vector<32x128xbf16>, vector<32x128xbf16>, vector<32x32xf32> -> vector<32x32xf32>
    %125 = arith.addf %85, %124 : vector<32x32xf32>
    %126 = vector.broadcast %11 : vector<1x32xf32> to vector<32x32xf32>
    %127 = arith.addf %125, %126 : vector<32x32xf32>
    %cst_34 = arith.constant dense<0.000000e+00> : vector<32xf32>
    %128 = vector.multi_reduction <add>, %127, %cst_34 [1] : vector<32x32xf32> to vector<32xf32>
    %129 = vector.shape_cast %128 : vector<32xf32> to vector<32x1xf32>
    %cst_35 = arith.constant 3.200000e+01 : f32
    %130 = vector.broadcast %cst_35 : f32 to vector<32x1xf32>
    %131 = arith.divf %129, %130 : vector<32x1xf32>
    %132 = vector.broadcast %131 : vector<32x1xf32> to vector<32x32xf32>
    %133 = arith.subf %127, %132 : vector<32x32xf32>
    %134 = arith.mulf %133, %133 : vector<32x32xf32>
    %cst_36 = arith.constant dense<0.000000e+00> : vector<32xf32>
    %135 = vector.multi_reduction <add>, %134, %cst_36 [1] : vector<32x32xf32> to vector<32xf32>
    %136 = vector.shape_cast %135 : vector<32xf32> to vector<32x1xf32>
    %cst_37 = arith.constant 3.200000e+01 : f32
    %137 = vector.broadcast %cst_37 : f32 to vector<32x1xf32>
    %138 = arith.divf %136, %137 : vector<32x1xf32>
    %cst_38 = arith.constant 9.99999974E-6 : f32
    %139 = vector.broadcast %cst_38 : f32 to vector<32x1xf32>
    %140 = arith.addf %138, %139 : vector<32x1xf32>
    %141 = math.rsqrt %140 : vector<32x1xf32>
    %142 = vector.broadcast %141 : vector<32x1xf32> to vector<32x32xf32>
    %143 = arith.mulf %133, %142 : vector<32x32xf32>
    %144 = vector.broadcast %8 : vector<1x32xf32> to vector<32x32xf32>
    %145 = arith.mulf %143, %144 : vector<32x32xf32>
    %146 = vector.broadcast %9 : vector<1x32xf32> to vector<32x32xf32>
    %147 = arith.addf %145, %146 : vector<32x32xf32>
    %148 = tpu.transpose %147, [1, 0] : vector<32x32xf32> -> vector<32x32xf32>
    %149 = arith.truncf %148 : vector<32x32xf32> to vector<32x32xbf16>
    %c0_39 = arith.constant 0 : index
    %c0_40 = arith.constant 0 : index
    %150 = vector.load %arg6[%c0_39, %c0_40] : memref<32x1152xbf16, #tpu.memory_space<vmem>>, vector<32x1152xbf16>
    %cst_41 = arith.constant dense<0.000000e+00> : vector<32x1152xf32>
    %151 = tpu.matmul %149, %150, %cst_41 {dimension_numbers = #tpu.dot_dimension_numbers<[1], [0], [0], [1], [0, 0, 1, 1], [], []>} : vector<32x32xbf16>, vector<32x1152xbf16>, vector<32x1152xf32> -> vector<32x1152xf32>
    %152 = vector.extract_strided_slice %151 {offsets = [0, 0], sizes = [32, 128], strides = [1, 1]} : vector<32x1152xf32> to vector<32x128xf32>
    %153 = vector.extract_strided_slice %151 {offsets = [0, 128], sizes = [32, 128], strides = [1, 1]} : vector<32x1152xf32> to vector<32x128xf32>
    %154 = vector.extract_strided_slice %151 {offsets = [0, 256], sizes = [32, 128], strides = [1, 1]} : vector<32x1152xf32> to vector<32x128xf32>
    %155 = vector.extract_strided_slice %151 {offsets = [0, 384], sizes = [32, 128], strides = [1, 1]} : vector<32x1152xf32> to vector<32x128xf32>
    %156 = vector.extract_strided_slice %151 {offsets = [0, 512], sizes = [32, 128], strides = [1, 1]} : vector<32x1152xf32> to vector<32x128xf32>
    %157 = vector.extract_strided_slice %151 {offsets = [0, 640], sizes = [32, 128], strides = [1, 1]} : vector<32x1152xf32> to vector<32x128xf32>
    %158 = vector.extract_strided_slice %151 {offsets = [0, 768], sizes = [32, 128], strides = [1, 1]} : vector<32x1152xf32> to vector<32x128xf32>
    %159 = vector.extract_strided_slice %151 {offsets = [0, 896], sizes = [32, 128], strides = [1, 1]} : vector<32x1152xf32> to vector<32x128xf32>
    %160 = vector.extract_strided_slice %151 {offsets = [0, 1024], sizes = [32, 128], strides = [1, 1]} : vector<32x1152xf32> to vector<32x128xf32>
    %161 = tpu.concatenate %152, %153, %154, %155, %156, %157, %158, %159, %160 in 0 : vector<32x128xf32>, vector<32x128xf32>, vector<32x128xf32>, vector<32x128xf32>, vector<32x128xf32>, vector<32x128xf32>, vector<32x128xf32>, vector<32x128xf32>, vector<32x128xf32> -> vector<288x128xf32>
    %162 = arith.truncf %161 : vector<288x128xf32> to vector<288x128xbf16>
    %163 = vector.extract_strided_slice %3 {offsets = [0, 0], sizes = [16, 288], strides = [1, 1]} : vector<20x288xbf16> to vector<16x288xbf16>
    %cst_42 = arith.constant dense<0.000000e+00> : vector<16x128xf32>
    %164 = tpu.matmul %163, %162, %cst_42 {dimension_numbers = #tpu.dot_dimension_numbers<[1], [0], [0], [1], [0, 0, 1, 1], [], []>} : vector<16x288xbf16>, vector<288x128xbf16>, vector<16x128xf32> -> vector<16x128xf32>
    %165 = arith.addf %164, %15 : vector<16x128xf32>
    %cst_43 = arith.constant 0.000000e+00 : f32
    %166 = vector.broadcast %cst_43 : f32 to vector<16x128xf32>
    %167 = arith.maximumf %165, %166 : vector<16x128xf32>
    %168 = arith.truncf %167 : vector<16x128xf32> to vector<16x128xbf16>
    %c0_44 = arith.constant 0 : index
    %c0_45 = arith.constant 0 : index
    %169 = vector.load %arg7[%c0_44, %c0_45] : memref<128x4608xbf16, #tpu.memory_space<vmem>>, vector<128x4608xbf16>
    %cst_46 = arith.constant dense<0.000000e+00> : vector<16x4608xf32>
    %170 = tpu.matmul %168, %169, %cst_46 {dimension_numbers = #tpu.dot_dimension_numbers<[1], [0], [0], [1], [0, 0, 1, 1], [], []>} : vector<16x128xbf16>, vector<128x4608xbf16>, vector<16x4608xf32> -> vector<16x4608xf32>
    %171 = vector.extract_strided_slice %170 {offsets = [0, 0], sizes = [16, 512], strides = [1, 1]} : vector<16x4608xf32> to vector<16x512xf32>
    %172 = vector.extract_strided_slice %170 {offsets = [0, 512], sizes = [16, 512], strides = [1, 1]} : vector<16x4608xf32> to vector<16x512xf32>
    %173 = vector.extract_strided_slice %170 {offsets = [0, 1024], sizes = [16, 512], strides = [1, 1]} : vector<16x4608xf32> to vector<16x512xf32>
    %174 = vector.extract_strided_slice %170 {offsets = [0, 1536], sizes = [16, 512], strides = [1, 1]} : vector<16x4608xf32> to vector<16x512xf32>
    %175 = vector.extract_strided_slice %170 {offsets = [0, 2048], sizes = [16, 512], strides = [1, 1]} : vector<16x4608xf32> to vector<16x512xf32>
    %176 = vector.extract_strided_slice %170 {offsets = [0, 2560], sizes = [16, 512], strides = [1, 1]} : vector<16x4608xf32> to vector<16x512xf32>
    %177 = vector.extract_strided_slice %170 {offsets = [0, 3072], sizes = [16, 512], strides = [1, 1]} : vector<16x4608xf32> to vector<16x512xf32>
    %178 = vector.extract_strided_slice %170 {offsets = [0, 3584], sizes = [16, 512], strides = [1, 1]} : vector<16x4608xf32> to vector<16x512xf32>
    %179 = vector.extract_strided_slice %170 {offsets = [0, 4096], sizes = [16, 512], strides = [1, 1]} : vector<16x4608xf32> to vector<16x512xf32>
    %180 = tpu.concatenate %171, %172, %173, %174, %175, %176, %177, %178, %179 in 0 : vector<16x512xf32>, vector<16x512xf32>, vector<16x512xf32>, vector<16x512xf32>, vector<16x512xf32>, vector<16x512xf32>, vector<16x512xf32>, vector<16x512xf32>, vector<16x512xf32> -> vector<144x512xf32>
    %181 = arith.truncf %180 : vector<144x512xf32> to vector<144x512xbf16>
    %182 = vector.extract_strided_slice %3 {offsets = [16, 0], sizes = [4, 144], strides = [1, 1]} : vector<20x288xbf16> to vector<4x144xbf16>
    %cst_47 = arith.constant dense<0.000000e+00> : vector<4x512xf32>
    %183 = tpu.matmul %182, %181, %cst_47 {dimension_numbers = #tpu.dot_dimension_numbers<[1], [0], [0], [1], [0, 0, 1, 1], [], []>} : vector<4x144xbf16>, vector<144x512xbf16>, vector<4x512xf32> -> vector<4x512xf32>
    %184 = vector.broadcast %14 : vector<4x1xf32> to vector<4x512xf32>
    %185 = arith.addf %183, %184 : vector<4x512xf32>
    %c0_48 = arith.constant 0 : index
    %c0_49 = arith.constant 0 : index
    %186 = vector.load %arg8[%c0_48, %c0_49] : memref<4x512xf32, #tpu.memory_space<vmem>>, vector<4x512xf32>
    tpu.vector_store %arg8[%c0_48, %c0_49], %185 {strides = array<i32>} : memref<4x512xf32, #tpu.memory_space<vmem>>, vector<4x512xf32>,
    return
  }
  func.func @transform_0(%arg0: i32) -> (i32, i32) {
    %c0_i32 = arith.constant 0 : i32
    %c0_i32_0 = arith.constant 0 : i32
    %c0_i32_1 = arith.constant 0 : i32
    return %c0_i32, %c0_i32_0 : i32, i32
  }
  func.func @transform_1(%arg0: i32) -> (i32, i32) {
    %c0_i32 = arith.constant 0 : i32
    %c0_i32_0 = arith.constant 0 : i32
    %c0_i32_1 = arith.constant 0 : i32
    return %c0_i32, %c0_i32_0 : i32, i32
  }
  func.func @transform_2(%arg0: i32) -> (i32, i32) {
    %c0_i32 = arith.constant 0 : i32
    %c0_i32_0 = arith.constant 0 : i32
    %c0_i32_1 = arith.constant 0 : i32
    return %c0_i32, %c0_i32_0 : i32, i32
  }
  func.func @transform_3(%arg0: i32) -> (i32, i32) {
    %c0_i32 = arith.constant 0 : i32
    %c0_i32_0 = arith.constant 0 : i32
    %c0_i32_1 = arith.constant 0 : i32
    return %c0_i32, %c0_i32_0 : i32, i32
  }
  func.func @transform_4(%arg0: i32) -> (i32, i32) {
    %c0_i32 = arith.constant 0 : i32
    %c0_i32_0 = arith.constant 0 : i32
    %c0_i32_1 = arith.constant 0 : i32
    return %c0_i32, %c0_i32_0 : i32, i32
  }
  func.func @transform_5(%arg0: i32) -> (i32, i32) {
    %c0_i32 = arith.constant 0 : i32
    %c0_i32_0 = arith.constant 0 : i32
    %c0_i32_1 = arith.constant 0 : i32
    return %c0_i32, %c0_i32_0 : i32, i32
  }
  func.func @transform_6(%arg0: i32) -> (i32, i32) {
    %c0_i32 = arith.constant 0 : i32
    %c0_i32_0 = arith.constant 0 : i32
    %c0_i32_1 = arith.constant 0 : i32
    return %c0_i32, %c0_i32_0 : i32, i32
  }
  func.func @transform_7(%arg0: i32) -> (i32, i32) {
    %c0_i32 = arith.constant 0 : i32
    %c0_i32_0 = arith.constant 0 : i32
    %c0_i32_1 = arith.constant 0 : i32
    return %c0_i32, %c0_i32_0 : i32, i32
  }
}

</mosaic_0001>

<bundles_post_ra>
// kernel: anovit2d_forward.1
= control target key start
LH: loop header
LB: loop body
LE: loop exit
PB: predicated region body
PF: predicated region fallthrough
CT: control target
= control target key end

     0   :  { %12 = vsyncpa [#allocation3], 0  ;;  %s7050_s0 = inlined_call_operand.vmem [shape: f32[32,64], index: 0, kind: input, shape index: {}]   ;;  %s7051_s1 = inlined_call_operand.vmem [shape: f32[96,128], index: 1, kind: input, shape index: {}]   ;;  %s7052_s2 = inlined_call_operand.hbm [shape: bf16[160,128], index: 2, kind: input, shape index: {}]   ;;  %s7053_s3 = inlined_call_operand.vmem [shape: bf16[128,192], index: 3, kind: input, shape index: {}]   ;;  %s7054_s4 = inlined_call_operand.vmem [shape: bf16[20,288], index: 4, kind: input, shape index: {}]   ;;  %s7055_s5 = inlined_call_operand.hbm [shape: bf16[32,1152], index: 5, kind: input, shape index: {}]   ;;  %s7056_s6 = inlined_call_operand.vmem [shape: bf16[128,4608], index: 6, kind: input, shape index: {}]   ;;  %s7057_s7 = inlined_call_operand.vmem [shape: f32[4,512], index: 7, kind: output, shape index: {}]  }
   0x1   :  { %13 = vsyncpa [#allocation5], 0  ;;  %s5641_s24 = smov [#allocation2]   ;;  %s5593_s28 = scalar_lea.hbm %s7052_s2, 1280 }
   0x2   :  { %s23_s25 = sshll.u32 %s5641_s24, 4  ;;  %p5594_p0 = scmp.ne.s32.totalorder %s7052_s2, %s5593_s28  ;;  %s24_s25 = int_to_ptr.vmem [resolvable:$true] %s23_s25 }
   0x3   :  { %p5597_p1 = scmp.lt.u32.totalorder %s5593_s28, %s7052_s2 }
   0x5   :  { %p5599_p2 = pnand %p5597_p1, %p5594_p0 }
   0x7   :  { %5602 = shalt.err (!%p5599_p2)
}
   0x8   :  { %s5603_s10 = scalar_lea.vmem %s24_s25, 1280  ;;  %p5608_p4 = scmp.lt.s32.totalorder %s24_s25, %s24_s25 }
   0x9   :  { %p5604_p3 = scmp.ne.s32.totalorder %s24_s25, %s5603_s10  ;;  %p5609_p5 = scmp.lt.s32.totalorder %s5603_s10, %s5603_s10 }
   0xb   :  { %p5610_p6 = por %p5609_p5, %p5608_p4 }
   0xd   :  { %p5611_p7 = pnand %p5610_p6, %p5604_p3 }
   0xf   :  { %5614 = shalt.err (!%p5611_p7)
}
  0x10   :  { %s5642_s11 = smov 64   ;;  %s5643_s12 = smov 4  }
  0x11   :  { %29 = dma.hbm_to_vmem [thread:$0]  %s7052_s2, 1280, %s24_s25, [#allocation3], %s5642_s11, %s5642_s11, %s5643_s12  }
  0x12   :  { %s5644_s15 = smov [#allocation4]   ;;  %s5615_s19 = scalar_lea.hbm %s7055_s5, 2304 }
  0x13   :  { %s39_s16 = sshll.u32 %s5644_s15, 4  ;;  %p5616_p8 = scmp.ne.s32.totalorder %s7055_s5, %s5615_s19  ;;  %s40_s16 = int_to_ptr.vmem [resolvable:$true] %s39_s16 }
  0x14   :  { %p5619_p9 = scmp.lt.u32.totalorder %s5615_s19, %s7055_s5 }
  0x16   :  { %p5621_p10 = pnand %p5619_p9, %p5616_p8 }
  0x18   :  { %5624 = shalt.err (!%p5621_p10)
}
  0x19   :  { %s5625_s24 = scalar_lea.vmem %s40_s16, 2304  ;;  %p5630_p12 = scmp.lt.s32.totalorder %s40_s16, %s40_s16 }
  0x1a   :  { %p5626_p11 = scmp.ne.s32.totalorder %s40_s16, %s5625_s24  ;;  %p5631_p13 = scmp.lt.s32.totalorder %s5625_s24, %s5625_s24 }
  0x1c   :  { %p5632_p0 = por %p5631_p13, %p5630_p12 }
  0x1e   :  { %p5633_p1 = pnand %p5632_p0, %p5626_p11 }
  0x20   :  { %5636 = shalt.err (!%p5633_p1)
}
  0x21   :  { %s5645_s2 = smov 576   ;;  %s5646_s25 = smov 36  }
  0x22   :  { %45 = dma.hbm_to_vmem [thread:$0]  %s7055_s5, 2304, %s40_s16, [#allocation5], %s5645_s2, %s5645_s2, %s5646_s25  }
  0x23   :  { %5637 = dma.done.wait [#allocation3], 1280  }
  0x24   :  { %5638 = vsyncadd [#allocation3], 4294966016 }
  0x25   :  { %5639 = dma.done.wait [#allocation5], 2304  }
  0x26   :  { %5640 = vsyncadd [#allocation5], 4294964992  ;;  %v5046_v0 = vld [vmem:[#allocation2] sm:$0xff]   ;;  %v5047_v1 = vld [vmem:[#allocation2 + $0x8] sm:$0xff]   ;;  %vm138_vm0 = vcmask 523264   ;;  %vm194_vm1 = vcmask 261120   ;;  %v248_v53 = vlaneseq }
  0x27   :  { %4885 = vmatprep.subr.bf16.mxu1 %v5046_v0  ;;  %v5048_v2 = vld [vmem:[#allocation2 + $0x10] sm:$0xff]   ;;  %v108_v3 = vld [vmem:[%s7050_s0] sm:$0xff]  ;;  %v109_v4 = vld [vmem:[%s7050_s0 + $0x8] sm:$0xff]  ;;  %s5647_s2 = smov 96   ;;  %vm5651_vm2 = vmmov 0   ;;  %vm4324_vm3 = vcmask 130048  }
  0x28   :  { %4886 = vmatpush3.bf16.msra.mxu1 %v5046_v0  ;;  %v112_v5 = vpack.c.bf16 %v109_v4, %v108_v3  ;;  %v5049_v6 = vld [vmem:[#allocation2 + $0x18] sm:$0xff]   ;;  %v110_v7 = vld [vmem:[%s7050_s0 + $0x10] sm:$0xff]  ;;  %v63_v11 = vld [vmem:[%s7051_s1 + $0x40] sm:$0xff]  ;;  %v5772_v59 = vshrl.u32 %v248_v53, 7 }
  0x29   :  { %4887 = vmatprep.subr.bf16.mxu1 %v5047_v1  ;;  %v111_v8 = vld [vmem:[%s7050_s0 + $0x18] sm:$0xff]  ;;  %v65_v10 = vld [vmem:[%s7051_s1 + $0x50] sm:$0xff]  ;;  %v64_v16 = vld [vmem:[%s7051_s1 + $0x48] sm:$0xff] }
  0x2a   :  { %4893 = vmatprep.mubr.msk.bf16.mxu1 %vm138_vm0, %v112_v5  ;;  %v113_v9 = vpack.c.bf16 %v111_v8, %v110_v7  ;;  %v66_v13 = vld [vmem:[%s7051_s1 + $0x58] sm:$0xff]  ;;  %v5764_v46 = vld [vmem:[#allocation2 + $0x20] sm:$0xff]   ;;  %v5768_v47 = vld [vmem:[#allocation2 + $0x28] sm:$0xff]   ;;  %v250_v62 = vsub.s32 0, %v5772_v59  ;;  %v258_v3 = vsub.s32 1, %v5772_v59 }
  0x2b   :  { %v5778_v63 = vld [vmem:[%s7051_s1] sm:$0xff] }
  0x2c   :  { %4888 = vmatpush3.bf16.msra.mxu1 %v5047_v1 }
  0x2d   :  { %4889 = vmatprep.subr.bf16.mxu1 %v5048_v2 }
  0x30   :  { %4890 = vmatpush3.bf16.msra.mxu1 %v5048_v2  ;;  %v251_v2 = vrot.slane %v5778_v63, %v250_v62 }
  0x31   :  { %4891 = vmatprep.subr.bf16.mxu1 %v5049_v6 }
  0x34   :  { %4892 = vmatpush3.bf16.msra.mxu1 %v5049_v6 }
  0x35   :  { %4897 = vmatprep.subr.bf16.mxu1 %v5764_v46 }
  0x37   :  { %4894 = vmatmul.mubr.msk.bf16.vlgmr.msra.gmra.mrb[0].mxu1 %vm138_vm0, %v113_v9  ;;  %v259_v9 = vrot.slane %v5778_v63, %v258_v3 }
  0x38   :  { %4898 = vmatpush3.bf16.msra.mxu1 %v5764_v46 }
  0x39   :  { %4899 = vmatprep.subr.bf16.mxu1 %v5768_v47 }
  0x3c   :  { %4900 = vmatpush3.bf16.msra.mxu1 %v5768_v47 }
 0x10a   :  { %v4895_v12 = vpop.f32.mrb[0].mxu1 }
 0x10b   :  { %v5737_v14 = vadd.f32 %v4895_v12, %v65_v10  ;;  %v179_v15 = vpop.f32.mrb[1].mxu1 }
 0x10c   :  { %v5742_v17 = vadd.f32 %v179_v15, %v63_v11  ;;  %v4896_v18 = vpop.f32.mrb[2].mxu1 }
 0x10d   :  { %v5744_v19 = vadd.f32 %v4896_v18, %v66_v13  ;;  %v182_v20 = vpop.f32.mrb[3].mxu1  ;;  %v201_v21 = vsel %vm194_vm1, %v5737_v14, 0.0 }
 0x10e   :  { %v5748_v22 = vadd.f32 %v182_v20, %v64_v16  ;;  %202 = vadd.xlane.f32.xlu1 %v201_v21  ;;  %v195_v23 = vsel %vm194_vm1, %v5742_v17, 0.0 }
 0x10f   :  { %196 = vadd.xlane.f32.xlu0 %v195_v23  ;;  %v204_v24 = vsel %vm194_vm1, %v5744_v19, 0.0 }
 0x110   :  { %v198_v25 = vsel %vm194_vm1, %v5748_v22, 0.0 }
 0x112   :  { %205 = vadd.xlane.f32.xlu1 %v204_v24 }
 0x113   :  { %199 = vadd.xlane.f32.xlu0 %v198_v25  ;;  %v5790_v25 = vld [vmem:[%s7051_s1 + $0x8] sm:$0xff] }
 0x19b   :  { %v203_v26 = vpop.xlane.xlu1 %202 }
 0x19c   :  { %v210_v27 = vmul.f32 0.03125, %v203_v26  ;;  %v197_v28 = vpop.xlane.xlu0 %196  ;;  %v269_v26 = vrot.slane %v5790_v25, %v258_v3 }
 0x19d   :  { %v208_v29 = vmul.f32 0.03125, %v197_v28  ;;  %v5796_v28 = vld [vmem:[%s7053_s3 + $0x4] ss:$8 sps:$4 sm:$0xff]  }
 0x19e   :  { %v214_v30 = vsub.f32 %v5737_v14, %v210_v27 }
 0x19f   :  { %v212_v31 = vsub.f32 %v5742_v17, %v208_v29  ;;  %v206_v32 = vpop.xlane.xlu1 %205 }
 0x1a0   :  { %v211_v33 = vmul.f32 0.03125, %v206_v32  ;;  %v200_v34 = vpop.xlane.xlu0 %199  ;;  %v218_v40 = vmul.f32 %v214_v30, %v214_v30 }
 0x1a1   :  { %v209_v35 = vmul.f32 0.03125, %v200_v34  ;;  %v216_v36 = vmul.f32 %v212_v31, %v212_v31 }
 0x1a2   :  { %v215_v37 = vsub.f32 %v5744_v19, %v211_v33  ;;  %v226_v43 = vsel %vm194_vm1, %v218_v40, 0.0  ;;  %v5823_v40 = vld [vmem:[%s7053_s3 + $0x44] ss:$8 sps:$4 sm:$0xff]  }
 0x1a3   :  { %v213_v38 = vsub.f32 %v5748_v22, %v209_v35  ;;  %v220_v39 = vsel %vm194_vm1, %v216_v36, 0.0 }
 0x1a4   :  { %221 = vadd.xlane.f32.xlu0 %v220_v39  ;;  %v219_v44 = vmul.f32 %v215_v37, %v215_v37  ;;  %v5818_v39 = vld [vmem:[%s7053_s3 + $0x14] ss:$8 sps:$4 sm:$0xff]  }
 0x1a5   :  { %v217_v41 = vmul.f32 %v213_v38, %v213_v38 }
 0x1a6   :  { %v229_v45 = vsel %vm194_vm1, %v219_v44, 0.0  ;;  %v5853_v44 = vld [vmem:[%s7053_s3 + $0x74] ss:$8 sps:$4 sm:$0xff]  }
 0x1a7   :  { %v223_v42 = vsel %vm194_vm1, %v217_v41, 0.0  ;;  %v5832_v41 = vld [vmem:[%s7053_s3 + $0x34] ss:$8 sps:$4 sm:$0xff]  }
 0x1a8   :  { %224 = vadd.xlane.f32.xlu1 %v223_v42  ;;  %227 = vadd.xlane.f32.xlu0 %v226_v43  ;;  %v5837_v42 = vld [vmem:[%s7053_s3 + $0x64] ss:$8 sps:$4 sm:$0xff]   ;;  %v5844_v43 = vld [vmem:[%s7053_s3 + $0x54] ss:$8 sps:$4 sm:$0xff]  }
 0x1ac   :  { %230 = vadd.xlane.f32.xlu1 %v229_v45 }
 0x231   :  { %v222_v48 = vpop.xlane.xlu0 %221 }
 0x232   :  { %v232_v49 = vmul.f32 0.03125, %v222_v48 }
 0x234   :  { %v236_v50 = vadd.f32 1e-05, %v232_v49 }
 0x235   :  { %v228_v51 = vpop.xlane.xlu0 %227  ;;  %v225_v52 = vpop.xlane.xlu1 %224 }
 0x236   :  { %5544 = vrsqrt.f32 %v236_v50  ;;  %v234_v54 = vmul.f32 0.03125, %v228_v51  ;;  %v233_v55 = vmul.f32 0.03125, %v225_v52 }
 0x238   :  { %v238_v56 = vadd.f32 1e-05, %v234_v54  ;;  %v237_v57 = vadd.f32 1e-05, %v233_v55 }
 0x239   :  { %v231_v58 = vpop.xlane.xlu1 %230 }
 0x23a   :  { %5546 = vrsqrt.f32 %v238_v56  ;;  %v235_v60 = vmul.f32 0.03125, %v231_v58 }
 0x23b   :  { %5548 = vrsqrt.f32 %v237_v57 }
 0x23c   :  { %v239_v61 = vadd.f32 1e-05, %v235_v60 }
 0x23e   :  { %5550 = vrsqrt.f32 %v239_v61 }
 0x240   :  { %v5545_v0 = vpop.eup %5544 }
 0x241   :  { %v244_v1 = vmul.f32 %v5545_v0, %v212_v31 }
 0x243   :  { %v252_v8 = vmul.f32 %v251_v2, %v244_v1 }
 0x244   :  { %v5547_v4 = vpop.eup %5546 }
 0x245   :  { %v5549_v5 = vpop.eup %5548  ;;  %v246_v6 = vmul.f32 %v5547_v4, %v214_v30  ;;  %v260_v15 = vadd.f32 %v259_v9, %v252_v8 }
 0x246   :  { %v245_v7 = vmul.f32 %v5549_v5, %v213_v38  ;;  %v5809_v38 = vld [vmem:[%s7053_s3 + $0x24] ss:$8 sps:$4 sm:$0xff]  }
 0x247   :  { %v254_v12 = vmul.f32 %v251_v2, %v246_v6 }
 0x248   :  { %v5551_v10 = vpop.eup %5550  ;;  %v253_v11 = vmul.f32 %v251_v2, %v245_v7 }
 0x249   :  { %v247_v13 = vmul.f32 %v5551_v10, %v215_v37  ;;  %v262_v21 = vadd.f32 %v259_v9, %v254_v12 }
 0x24a   :  { %v261_v16 = vadd.f32 %v259_v9, %v253_v11 }
 0x24b   :  { %v255_v18 = vmul.f32 %v251_v2, %v247_v13 }
 0x24c   :  { %v264_v20 = vpack.c.bf16 %v261_v16, %v260_v15 }
 0x24d   :  { %v263_v23 = vadd.f32 %v259_v9, %v255_v18 }
 0x24e   :  { %4901 = vmatprep.mubr.msk.bf16.mxu1 %vm194_vm1, %v264_v20 }
 0x24f   :  { %v265_v24 = vpack.c.bf16 %v263_v23, %v262_v21 }
 0x251   :  { %4902 = vmatmul.mubr.msk.bf16.vlgmr.msra.gmra.mrb[4].mxu1 %vm194_vm1, %v265_v24 }
 0x252   :  { %4909 = vmatprep.mubr.msk.bf16.mxu1 %vm194_vm1, %v5796_v28 }
 0x324   :  { %v4903_v27 = vpop.f32.mrb[4].mxu1 }
 0x325   :  { %v331_v29 = vadd.f32 %v4903_v27, %v269_v26  ;;  %v322_v30 = vpop.f32.mrb[5].mxu1 }
 0x326   :  { %v323_v31 = vadd.f32 %v322_v30, %v269_v26  ;;  %v4904_v32 = vpop.f32.mrb[6].mxu1 }
 0x327   :  { %v334_v33 = vadd.f32 %v4904_v32, %v269_v26  ;;  %v325_v34 = vpop.f32.mrb[7].mxu1 }
 0x328   :  { %v326_v35 = vadd.f32 %v325_v34, %v269_v26 }
 0x329   :  { %v5800_v36 = vpack.c.bf16 %v334_v33, %v331_v29 }
 0x32a   :  { %v337_v37 = vpack.c.bf16 %v326_v35, %v323_v31 }
 0x32b   :  { %383 = vrot.lane.b32.xlu1 %v5800_v36, %s5647_s2 }
 0x32c   :  { %381 = vrot.lane.b32.xlu0 %v337_v37, %s5647_s2  ;;  %4941 = vmatprep.mubr.msk.bf16.mxu0 %vm194_vm1, %v337_v37 }
 0x32f   :  { %516 = vrot.lane.b32.xlu1 %v5796_v28, %s5647_s2 }
 0x330   :  { %520 = vrot.lane.b32.xlu0 %v5809_v38, %s5647_s2 }
 0x333   :  { %518 = vrot.lane.b32.xlu1 %v5818_v39, %s5647_s2 }
 0x334   :  { %524 = vrot.lane.b32.xlu0 %v5823_v40, %s5647_s2 }
 0x337   :  { %522 = vrot.lane.b32.xlu1 %v5832_v41, %s5647_s2 }
 0x338   :  { %528 = vrot.lane.b32.xlu0 %v5837_v42, %s5647_s2 }
 0x33b   :  { %526 = vrot.lane.b32.xlu1 %v5844_v43, %s5647_s2 }
 0x33f   :  { %530 = vrot.lane.b32.xlu1 %v5853_v44, %s5647_s2 }
 0x39d   :  { %v384_v48 = vpop.permute.xlu1 %383 }
 0x39e   :  { %v382_v45 = vpop.permute.xlu0 %381 }
 0x39f   :  { %4905 = vmatprep.subr.bf16.mxu1 %v382_v45 }
 0x3a0   :  { %4906 = vmatpush3.bf16.msra.mxu1 %v382_v45 }
 0x3a1   :  { %4907 = vmatprep.subr.bf16.mxu1 %v384_v48  ;;  %v517_v49 = vpop.permute.xlu1 %516 }
 0x3a2   :  { %v521_v4 = vpop.permute.xlu0 %520 }
 0x3a4   :  { %4908 = vmatpush3.bf16.msra.mxu1 %v384_v48 }
 0x3a5   :  { %v519_v56 = vpop.permute.xlu1 %518 }
 0x3a6   :  { %v525_v24 = vpop.permute.xlu0 %524 }
 0x3a7   :  { %4910 = vmatmul.mubr.msk.bf16.vlgmr.msra.gmra.mrb[8].mxu1 %vm194_vm1, %v5818_v39 }
 0x3a8   :  { %4913 = vmatprep.mubr.msk.bf16.mxu1 %vm194_vm1, %v5809_v38 }
 0x3a9   :  { %v523_v15 = vpop.permute.xlu1 %522 }
 0x3aa   :  { %v529_v35 = vpop.permute.xlu0 %528 }
 0x3ad   :  { %v527_v32 = vpop.permute.xlu1 %526 }
 0x3af   :  { %4914 = vmatmul.mubr.msk.bf16.gmra.mrb[12].mxu1 %vm194_vm1, %v5832_v41 }
 0x3b0   :  { %4917 = vmatprep.mubr.msk.bf16.mxu1 %vm194_vm1, %v5823_v40 }
 0x3b1   :  { %v531_v48 = vpop.permute.xlu1 %530 }
 0x3b7   :  { %4918 = vmatmul.mubr.msk.bf16.gmra.mrb[16].mxu1 %vm194_vm1, %v5844_v43 }
 0x3b8   :  { %4921 = vmatprep.mubr.msk.bf16.mxu1 %vm194_vm1, %v5837_v42 }
 0x3bf   :  { %4922 = vmatmul.mubr.msk.bf16.gmra.mrb[20].mxu1 %vm194_vm1, %v5853_v44 }
 0x47a   :  { %v4911_v50 = vpop.f32.mrb[8].mxu1 }
 0x47b   :  { %v445_v51 = vpop.f32.mrb[9].mxu1 }
 0x47c   :  { %v4912_v52 = vpop.f32.mrb[10].mxu1 }
 0x47d   :  { %v5871_v53 = vpack.c.bf16 %v4912_v52, %v4911_v50  ;;  %v448_v54 = vpop.f32.mrb[11].mxu1  ;;  %v5068_v52 = vld [vmem:[%s7053_s3] ss:$8 sps:$4 sm:$0xff]  }
 0x47e   :  { %v5873_v55 = vpack.c.bf16 %v448_v54, %v445_v51  ;;  %v5069_v54 = vld [vmem:[%s7053_s3 + $0x10] ss:$8 sps:$4 sm:$0xff]   ;;  %4945 = vmatprep.subr.bf16.mxu1 %v5068_v52 }
 0x47f   :  { %v541_v58 = vmul.bf16 %v519_v56, %v5871_v53  ;;  %4946 = vmatpush3.bf16.msra.mxu1 %v5068_v52  ;;  %v5070_v56 = vld [vmem:[%s7053_s3 + $0x20] ss:$8 sps:$4 sm:$0xff]  }
 0x480   :  { %v540_v57 = vmul.bf16 %v517_v49, %v5873_v55  ;;  %4947 = vmatprep.subr.bf16.mxu1 %v5069_v54 }
 0x481   :  { %v574_v7 = vsel %vm194_vm1, %v541_v58, 0 }
 0x482   :  { %5025 = vmatprep.subr.msk.bf16.mxu0 %vm194_vm1, %v540_v57  ;;  %v571_v60 = vsel %vm194_vm1, %v540_v57, 0  ;;  %v4915_v61 = vpop.f32.mrb[12].mxu1  ;;  %v5072_v57 = vld [vmem:[%s7053_s3 + $0x40] ss:$8 sps:$4 sm:$0xff]  }
 0x483   :  { %4926 = vmatpush3.bf16.xpose.msra.mxu0 %v571_v60  ;;  %v461_v0 = vpop.f32.mrb[13].mxu1  ;;  %4948 = vmatpush3.bf16.msra.mxu1 %v5069_v54 }
 0x484   :  { %5026 = vmatprep.subr.msk.bf16.mxu0 %vm194_vm1, %v541_v58  ;;  %v4916_v1 = vpop.f32.mrb[14].mxu1  ;;  %4949 = vmatprep.subr.bf16.mxu1 %v5070_v56 }
 0x485   :  { %v5880_v2 = vpack.c.bf16 %v4916_v1, %v4915_v61  ;;  %v464_v3 = vpop.f32.mrb[15].mxu1  ;;  %v59_v61 = vld [vmem:[%s7051_s1 + $0x20] sm:$0xff] }
 0x486   :  { %v5882_v5 = vpack.c.bf16 %v464_v3, %v461_v0 }
 0x487   :  { %v543_v16 = vmul.bf16 %v523_v15, %v5880_v2  ;;  %4950 = vmatpush3.bf16.msra.mxu1 %v5070_v56 }
 0x488   :  { %v542_v6 = vmul.bf16 %v521_v4, %v5882_v5  ;;  %v60_v4 = vld [vmem:[%s7051_s1 + $0x28] sm:$0xff] }
 0x489   :  { %v580_v31 = vsel %vm194_vm1, %v543_v16, 0 }
 0x48a   :  { %v4919_v8 = vpop.f32.mrb[16].mxu1  ;;  %v577_v18 = vsel %vm194_vm1, %v542_v6, 0 }
 0x48b   :  { %4928 = vmatpush3.bf16.xpose.msra.mxu0 %v574_v7  ;;  %v477_v9 = vpop.f32.mrb[17].mxu1 }
 0x48c   :  { %5027 = vmatprep.subr.msk.bf16.mxu0 %vm194_vm1, %v542_v6  ;;  %v4920_v10 = vpop.f32.mrb[18].mxu1 }
 0x48d   :  { %v5887_v11 = vpack.c.bf16 %v4920_v10, %v4919_v8  ;;  %v480_v12 = vpop.f32.mrb[19].mxu1 }
 0x48e   :  { %v5889_v13 = vpack.c.bf16 %v480_v12, %v477_v9  ;;  %v61_v9 = vld [vmem:[%s7051_s1 + $0x30] sm:$0xff] }
 0x48f   :  { %v545_v33 = vmul.bf16 %v527_v32, %v5887_v11 }
 0x490   :  { %v544_v30 = vmul.bf16 %v525_v24, %v5889_v13  ;;  %v558_v24 = vmul.bf16 %v5809_v38, %v5882_v5  ;;  %v561_v38 = vmul.bf16 %v5844_v43, %v5887_v11  ;;  %v560_v5 = vmul.bf16 %v5823_v40, %v5889_v13 }
 0x491   :  { %v586_v45 = vsel %vm194_vm1, %v545_v33, 0 }
 0x492   :  { %v4923_v20 = vpop.f32.mrb[20].mxu1  ;;  %v583_v34 = vsel %vm194_vm1, %v544_v30, 0 }
 0x493   :  { %4930 = vmatpush3.bf16.xpose.msra.mxu0 %v577_v18  ;;  %v493_v21 = vpop.f32.mrb[21].mxu1 }
 0x494   :  { %5028 = vmatprep.subr.msk.bf16.mxu0 %vm194_vm1, %v543_v16  ;;  %v4924_v23 = vpop.f32.mrb[22].mxu1  ;;  %v62_v16 = vld [vmem:[%s7051_s1 + $0x38] sm:$0xff] }
 0x495   :  { %v5894_v26 = vpack.c.bf16 %v4924_v23, %v4923_v20  ;;  %v496_v27 = vpop.f32.mrb[23].mxu1  ;;  %v5073_v20 = vld [vmem:[%s7053_s3 + $0x50] ss:$8 sps:$4 sm:$0xff]   ;;  %v5074_v23 = vld [vmem:[%s7053_s3 + $0x60] ss:$8 sps:$4 sm:$0xff]  }
 0x496   :  { %v5896_v29 = vpack.c.bf16 %v496_v27, %v493_v21  ;;  %v557_v21 = vmul.bf16 %v5818_v39, %v5871_v53  ;;  %v5075_v27 = vld [vmem:[%s7053_s3 + $0x70] ss:$8 sps:$4 sm:$0xff]   ;;  %v559_v39 = vmul.bf16 %v5832_v41, %v5880_v2  ;;  %v556_v53 = vmul.bf16 %v5796_v28, %v5873_v55 }
 0x497   :  { %v547_v49 = vmul.bf16 %v531_v48, %v5894_v26  ;;  %v563_v41 = vmul.bf16 %v5853_v44, %v5894_v26 }
 0x498   :  { %v546_v37 = vmul.bf16 %v529_v35, %v5896_v29  ;;  %v562_v28 = vmul.bf16 %v5837_v42, %v5896_v29 }
 0x499   :  { %v592_v51 = vsel %vm194_vm1, %v547_v49, 0 }
 0x49a   :  { %v589_v50 = vsel %vm194_vm1, %v546_v37, 0 }
 0x49b   :  { %4932 = vmatpush3.bf16.xpose.msra.mxu0 %v580_v31 }
 0x49c   :  { %5029 = vmatprep.subr.msk.bf16.mxu0 %vm194_vm1, %v544_v30 }
 0x4a3   :  { %4934 = vmatpush3.bf16.xpose.msra.mxu0 %v583_v34 }
 0x4a4   :  { %5030 = vmatprep.subr.msk.bf16.mxu0 %vm194_vm1, %v545_v33 }
 0x4ab   :  { %4936 = vmatpush3.bf16.xpose.msra.mxu0 %v586_v45 }
 0x4ac   :  { %5031 = vmatprep.subr.msk.bf16.mxu0 %vm194_vm1, %v546_v37 }
 0x4b3   :  { %4938 = vmatpush3.bf16.xpose.msra.mxu0 %v589_v50 }
 0x4b4   :  { %5032 = vmatprep.subr.msk.bf16.mxu0 %vm194_vm1, %v547_v49 }
 0x4bb   :  { %4940 = vmatpush3.bf16.xpose.msra.mxu0 %v592_v51 }
 0x4c2   :  { %4942 = vmatmul.mubr.msk.bf16.vlgmr.msra.gmra.mrb[0].mxu0 %vm194_vm1, %v5800_v36  ;;  %v5071_v36 = vld [vmem:[%s7053_s3 + $0x30] ss:$8 sps:$4 sm:$0xff]   ;;  %s5648_s3 = smov 32  }
 0x4c3   :  { %4951 = vmatprep.subr.bf16.mxu1 %v5071_v36 }
 0x4c4   :  { %4952 = vmatpush3.bf16.msra.mxu1 %v5071_v36 }
 0x4c5   :  { %4953 = vmatprep.subr.bf16.mxu1 %v5072_v57 }
 0x4c8   :  { %4954 = vmatpush3.bf16.msra.mxu1 %v5072_v57 }
 0x4c9   :  { %4955 = vmatprep.subr.bf16.mxu1 %v5073_v20 }
 0x4cc   :  { %4956 = vmatpush3.bf16.msra.mxu1 %v5073_v20 }
 0x4cd   :  { %4957 = vmatprep.subr.bf16.mxu1 %v5074_v23 }
 0x4d0   :  { %4958 = vmatpush3.bf16.msra.mxu1 %v5074_v23 }
 0x4d1   :  { %4959 = vmatprep.subr.bf16.mxu1 %v5075_v27 }
 0x4d4   :  { %4960 = vmatpush3.bf16.msra.mxu1 %v5075_v27 }
 0x595   :  { %v4943_v58 = vpop.f32.mrb[0].mxu0 }
 0x596   :  { %v628_v60 = vpop.f32.mrb[1].mxu0  ;;  %v645_v6 = vmul.f32 0.35355338, %v4943_v58 }
 0x597   :  { %v643_v0 = vmul.f32 0.35355338, %v628_v60  ;;  %v4944_v1 = vpop.f32.mrb[2].mxu0 }
 0x598   :  { %v631_v3 = vpop.f32.mrb[3].mxu0  ;;  %v646_v12 = vmul.f32 0.35355338, %v4944_v1  ;;  %v649_v15 = vadd.f32 %v645_v6, %v61_v9 }
 0x599   :  { %v644_v7 = vmul.f32 0.35355338, %v631_v3  ;;  %v647_v8 = vadd.f32 %v643_v0, %v59_v61 }
 0x59a   :  { %v650_v18 = vadd.f32 %v646_v12, %v62_v16 }
 0x59b   :  { %651 = vmax.xlane.f32.xlu0 %v647_v8  ;;  %v648_v10 = vadd.f32 %v644_v7, %v60_v4 }
 0x59d   :  { %653 = vmax.xlane.f32.xlu1 %v648_v10 }
 0x59f   :  { %655 = vmax.xlane.f32.xlu0 %v649_v15 }
 0x5a3   :  { %657 = vmax.xlane.f32.xlu0 %v650_v18 }
 0x5ae   :  { %774 = vrot.lane.b32.xlu1 %v557_v21, %s5647_s2 }
 0x5b2   :  { %776 = vrot.lane.b32.xlu1 %v558_v24, %s5647_s2 }
 0x5b6   :  { %778 = vrot.lane.b32.xlu1 %v559_v39, %s5647_s2 }
 0x5b9   :  { %772 = vrot.lane.b32.xlu0 %v556_v53, %s5647_s2 }
 0x5ba   :  { %782 = vrot.lane.b32.xlu1 %v561_v38, %s5647_s2  ;;  %v914_v38 = vsub.s32 6, %v5772_v59 }
 0x5bd   :  { %780 = vrot.lane.b32.xlu0 %v560_v5, %s5647_s2 }
 0x5be   :  { %786 = vrot.lane.b32.xlu1 %v563_v41, %s5647_s2  ;;  %v915_v41 = vrot.slane %v5778_v63, %v914_v38 }
 0x5c1   :  { %784 = vrot.lane.b32.xlu0 %v562_v28, %s5647_s2 }
 0x5c2   :  { %849 = vrot.lane.b32.xlu1 %v5768_v47, %s5648_s3 }
 0x5c5   :  { %847 = vrot.lane.b32.xlu0 %v5764_v46, %s5648_s3 }
 0x628   :  { %v652_v43 = vpop.xlane.xlu0 %651 }
 0x629   :  { %v659_v55 = vsub.f32 %v647_v8, %v652_v43 }
 0x62a   :  { %v654_v2 = vpop.xlane.xlu1 %653 }
 0x62b   :  { %v663_v11 = vmul.f32 1.442695, %v659_v55  ;;  %v660_v30 = vsub.f32 %v648_v10, %v654_v2 }
 0x62c   :  { %v656_v31 = vpop.xlane.xlu0 %655 }
 0x62d   :  { %v665_v32 = vmul.f32 1.442695, %v660_v30  ;;  %v661_v40 = vsub.f32 %v649_v15, %v656_v31  ;;  %5552 = vpow2.f32 %v663_v11 }
 0x62e   :  { %v775_v48 = vpop.permute.xlu1 %774 }
 0x62f   :  { %5554 = vpow2.f32 %v665_v32  ;;  %v667_v44 = vmul.f32 1.442695, %v661_v40 }
 0x630   :  { %v658_v13 = vpop.xlane.xlu0 %657 }
 0x631   :  { %v662_v26 = vsub.f32 %v650_v18, %v658_v13  ;;  %5556 = vpow2.f32 %v667_v44 }
 0x632   :  { %v777_v50 = vpop.permute.xlu1 %776 }
 0x633   :  { %v669_v33 = vmul.f32 1.442695, %v662_v26 }
 0x634   :  { %v773_v34 = vpop.permute.xlu0 %772 }
 0x635   :  { %5558 = vpow2.f32 %v669_v33  ;;  %4965 = vmatprep.subr.bf16.mxu1 %v773_v34 }
 0x636   :  { %v779_v51 = vpop.permute.xlu1 %778 }
 0x637   :  { %v5553_v42 = vpop.eup %5552 }
 0x638   :  { %v781_v52 = vpop.permute.xlu0 %780 }
 0x639   :  { %v5555_v29 = vpop.eup %5554 }
 0x63a   :  { %v671_v35 = vpack.c.bf16 %v5555_v29, %v5553_v42  ;;  %v783_v54 = vpop.permute.xlu1 %782 }
 0x63b   :  { %v5557_v37 = vpop.eup %5556 }
 0x63c   :  { %4961 = vmatprep.mubr.bf16.mxu1 %v671_v35  ;;  %v785_v56 = vpop.permute.xlu0 %784 }
 0x63e   :  { %v787_v36 = vpop.permute.xlu1 %786 }
 0x63f   :  { %v5559_v45 = vpop.eup %5558 }
 0x640   :  { %v672_v49 = vpack.c.bf16 %v5559_v45, %v5557_v37  ;;  %v848_v6 = vpop.permute.xlu0 %847 }
 0x641   :  { %4985 = vmatprep.subr.bf16.mxu0 %v848_v6 }
 0x642   :  { %4962 = vmatmul.mubr.bf16.vlgmr.msra.gmra.mrb[24].mxu1 %v672_v49  ;;  %4986 = vmatpush3.bf16.msra.mxu0 %v848_v6  ;;  %v850_v20 = vpop.permute.xlu1 %849 }
 0x643   :  { %4966 = vmatpush3.bf16.msra.mxu1 %v773_v34  ;;  %4987 = vmatprep.subr.bf16.mxu0 %v850_v20 }
 0x644   :  { %4967 = vmatprep.subr.bf16.mxu1 %v775_v48 }
 0x646   :  { %4988 = vmatpush3.bf16.msra.mxu0 %v850_v20 }
 0x647   :  { %4968 = vmatpush3.bf16.msra.mxu1 %v775_v48 }
 0x648   :  { %4969 = vmatprep.subr.bf16.mxu1 %v777_v50 }
 0x64b   :  { %4970 = vmatpush3.bf16.msra.mxu1 %v777_v50 }
 0x64c   :  { %4971 = vmatprep.subr.bf16.mxu1 %v779_v51 }
 0x64f   :  { %4972 = vmatpush3.bf16.msra.mxu1 %v779_v51 }
 0x650   :  { %4973 = vmatprep.subr.bf16.mxu1 %v781_v52 }
 0x653   :  { %4974 = vmatpush3.bf16.msra.mxu1 %v781_v52 }
 0x654   :  { %4975 = vmatprep.subr.bf16.mxu1 %v783_v54 }
 0x657   :  { %4976 = vmatpush3.bf16.msra.mxu1 %v783_v54 }
 0x658   :  { %4977 = vmatprep.subr.bf16.mxu1 %v785_v56 }
 0x65b   :  { %4978 = vmatpush3.bf16.msra.mxu1 %v785_v56 }
 0x65c   :  { %4979 = vmatprep.subr.bf16.mxu1 %v787_v36 }
 0x65f   :  { %4980 = vmatpush3.bf16.msra.mxu1 %v787_v36 }
 0x715   :  { %v4963_v57 = vpop.f32.mrb[24].mxu1 }
 0x716   :  { %v748_v58 = vadd.f32 1e-06, %v4963_v57  ;;  %v739_v60 = vpop.f32.mrb[25].mxu1 }
 0x717   :  { %v740_v61 = vadd.f32 1e-06, %v739_v60  ;;  %v4964_v0 = vpop.f32.mrb[26].mxu1 }
 0x718   :  { %5560 = vrcp.f32 %v748_v58  ;;  %v751_v1 = vadd.f32 1e-06, %v4964_v0  ;;  %v742_v3 = vpop.f32.mrb[27].mxu1  ;;  %v5076_v0 = vld [vmem:[#allocation2 + $0x30] sm:$0xff]  }
 0x719   :  { %5562 = vrcp.f32 %v740_v61  ;;  %v743_v4 = vadd.f32 1e-06, %v742_v3  ;;  %4993 = vmatprep.subr.bf16.mxu1 %v5076_v0 }
 0x71a   :  { %5564 = vrcp.f32 %v751_v1  ;;  %v5077_v1 = vld [vmem:[#allocation2 + $0x38] sm:$0xff]  }
 0x71b   :  { %5566 = vrcp.f32 %v743_v4 }
 0x722   :  { %v5561_v7 = vpop.eup %5560 }
 0x723   :  { %v5563_v8 = vpop.eup %5562  ;;  %v760_v47 = vmul.f32 %v5561_v7, %v5557_v37 }
 0x724   :  { %v5565_v46 = vpop.eup %5564  ;;  %v758_v12 = vmul.f32 %v5563_v8, %v5553_v42 }
 0x725   :  { %v5567_v9 = vpop.eup %5566  ;;  %v761_v10 = vmul.f32 %v5565_v46, %v5559_v45 }
 0x726   :  { %v759_v15 = vmul.f32 %v5567_v9, %v5555_v29 }
 0x727   :  { %v763_v16 = vpack.c.bf16 %v761_v10, %v760_v47 }
 0x728   :  { %v762_v18 = vpack.c.bf16 %v759_v15, %v758_v12 }
 0x72a   :  { %4981 = vmatprep.mubr.bf16.mxu1 %v762_v18 }
 0x72b   :  { %4982 = vmatmul.mubr.bf16.vlgmr.msra.gmra.mrb[28].mxu1 %v763_v16  ;;  %v974_v16 = vsub.s32 2, %v5772_v59 }
 0x72c   :  { %4994 = vmatpush3.bf16.msra.mxu1 %v5076_v0 }
 0x72d   :  { %4995 = vmatprep.subr.bf16.mxu1 %v5077_v1  ;;  %v975_v20 = vrot.slane %v5778_v63, %v974_v16 }
 0x730   :  { %4996 = vmatpush3.bf16.msra.mxu1 %v5077_v1 }
 0x7fe   :  { %v4983_v21 = vpop.f32.mrb[28].mxu1 }
 0x7ff   :  { %v830_v23 = vpop.f32.mrb[29].mxu1 }
 0x800   :  { %v4984_v24 = vpop.f32.mrb[30].mxu1 }
 0x801   :  { %v846_v27 = vpack.c.bf16 %v4984_v24, %v4983_v21  ;;  %v833_v39 = vpop.f32.mrb[31].mxu1  ;;  %v982_v21 = vsub.s32 3, %v5772_v59 }
 0x802   :  { %v845_v53 = vpack.c.bf16 %v833_v39, %v830_v23 }
 0x803   :  { %v983_v38 = vrot.slane %v5778_v63, %v982_v21 }
 0x804   :  { %4989 = vmatprep.mubr.msk.bf16.mxu0 %vm194_vm1, %v845_v53 }
 0x805   :  { %4990 = vmatmul.mubr.msk.bf16.vlgmr.msra.gmra.mrb[4].mxu0 %vm194_vm1, %v846_v27 }
 0x8d8   :  { %v4991_v5 = vpop.f32.mrb[4].mxu0 }
 0x8d9   :  { %v893_v28 = vpop.f32.mrb[5].mxu0  ;;  %v910_v43 = vadd.f32 %v4991_v5, %v5737_v14 }
 0x8da   :  { %v908_v55 = vadd.f32 %v893_v28, %v5742_v17  ;;  %v4992_v2 = vpop.f32.mrb[6].mxu0 }
 0x8db   :  { %v896_v11 = vpop.f32.mrb[7].mxu0  ;;  %v5984_v32 = vadd.f32 %v915_v41, %v910_v43  ;;  %v911_v40 = vadd.f32 %v4992_v2, %v5744_v19 }
 0x8dc   :  { %v5981_v30 = vadd.f32 %v915_v41, %v908_v55  ;;  %v909_v31 = vadd.f32 %v896_v11, %v5748_v22 }
 0x8dd   :  { %v5993_v17 = vadd.f32 %v915_v41, %v911_v40  ;;  %v926_v26 = vsel %vm194_vm1, %v5984_v32, 0.0 }
 0x8de   :  { %v5987_v44 = vadd.f32 %v915_v41, %v909_v31  ;;  %v920_v13 = vsel %vm194_vm1, %v5981_v30, 0.0 }
 0x8df   :  { %921 = vadd.xlane.f32.xlu0 %v920_v13  ;;  %v929_v22 = vsel %vm194_vm1, %v5993_v17, 0.0 }
 0x8e0   :  { %v923_v14 = vsel %vm194_vm1, %v5987_v44, 0.0 }
 0x8e1   :  { %924 = vadd.xlane.f32.xlu1 %v923_v14 }
 0x8e3   :  { %927 = vadd.xlane.f32.xlu0 %v926_v26 }
 0x8e7   :  { %930 = vadd.xlane.f32.xlu0 %v929_v22 }
 0x96c   :  { %v922_v19 = vpop.xlane.xlu0 %921 }
 0x96d   :  { %v932_v33 = vmul.f32 0.03125, %v922_v19  ;;  %v5078_v19 = vld [vmem:[#allocation2 + $0x40] sm:$0xff]  }
 0x96e   :  { %v925_v34 = vpop.xlane.xlu1 %924  ;;  %5001 = vmatprep.subr.bf16.mxu0 %v5078_v19 }
 0x96f   :  { %v936_v42 = vsub.f32 %v5981_v30, %v932_v33  ;;  %v933_v29 = vmul.f32 0.03125, %v925_v34  ;;  %v5079_v33 = vld [vmem:[#allocation2 + $0x48] sm:$0xff]   ;;  %5002 = vmatpush3.bf16.xpose.msra.mxu0 %v5078_v19  ;;  %v993_v34 = vrot.slane %v5790_v25, %v250_v62 }
 0x970   :  { %v928_v35 = vpop.xlane.xlu0 %927  ;;  %5003 = vmatprep.subr.bf16.mxu0 %v5079_v33 }
 0x971   :  { %v937_v37 = vsub.f32 %v5987_v44, %v933_v29  ;;  %v934_v45 = vmul.f32 0.03125, %v928_v35  ;;  %v940_v48 = vmul.f32 %v936_v42, %v936_v42 }
 0x973   :  { %v938_v49 = vsub.f32 %v5984_v32, %v934_v45  ;;  %v944_v50 = vsel %vm194_vm1, %v940_v48, 0.0  ;;  %v941_v51 = vmul.f32 %v937_v37, %v937_v37 }
 0x974   :  { %945 = vadd.xlane.f32.xlu0 %v944_v50  ;;  %v931_v52 = vpop.xlane.xlu0 %930 }
 0x975   :  { %v935_v54 = vmul.f32 0.03125, %v931_v52  ;;  %v947_v56 = vsel %vm194_vm1, %v941_v51, 0.0  ;;  %v942_v36 = vmul.f32 %v938_v49, %v938_v49 }
 0x976   :  { %948 = vadd.xlane.f32.xlu1 %v947_v56 }
 0x977   :  { %v939_v57 = vsub.f32 %v5993_v17, %v935_v54  ;;  %v950_v58 = vsel %vm194_vm1, %v942_v36, 0.0  ;;  %5004 = vmatpush3.bf16.xpose.msra.mxu0 %v5079_v33 }
 0x978   :  { %951 = vadd.xlane.f32.xlu0 %v950_v58 }
 0x979   :  { %v943_v60 = vmul.f32 %v939_v57, %v939_v57 }
 0x97b   :  { %v953_v61 = vsel %vm194_vm1, %v943_v60, 0.0 }
 0x97c   :  { %954 = vadd.xlane.f32.xlu1 %v953_v61 }
 0xa01   :  { %v946_v3 = vpop.xlane.xlu0 %945 }
 0xa02   :  { %v956_v4 = vmul.f32 0.03125, %v946_v3 }
 0xa03   :  { %v949_v6 = vpop.xlane.xlu1 %948 }
 0xa04   :  { %v960_v7 = vadd.f32 1e-05, %v956_v4  ;;  %v957_v8 = vmul.f32 0.03125, %v949_v6 }
 0xa05   :  { %v952_v46 = vpop.xlane.xlu0 %951 }
 0xa06   :  { %5568 = vrsqrt.f32 %v960_v7  ;;  %v961_v9 = vadd.f32 1e-05, %v957_v8  ;;  %v958_v47 = vmul.f32 0.03125, %v952_v46 }
 0xa08   :  { %5570 = vrsqrt.f32 %v961_v9  ;;  %v962_v10 = vadd.f32 1e-05, %v958_v47 }
 0xa09   :  { %v955_v12 = vpop.xlane.xlu1 %954 }
 0xa0a   :  { %5572 = vrsqrt.f32 %v962_v10  ;;  %v959_v15 = vmul.f32 0.03125, %v955_v12 }
 0xa0c   :  { %v963_v18 = vadd.f32 1e-05, %v959_v15 }
 0xa0e   :  { %5574 = vrsqrt.f32 %v963_v18 }
 0xa10   :  { %v5569_v23 = vpop.eup %5568 }
 0xa11   :  { %v968_v24 = vmul.f32 %v5569_v23, %v936_v42 }
 0xa12   :  { %v5571_v27 = vpop.eup %5570 }
 0xa13   :  { %v969_v39 = vmul.f32 %v5571_v27, %v937_v37  ;;  %v976_v53 = vmul.f32 %v975_v20, %v968_v24 }
 0xa14   :  { %v5573_v5 = vpop.eup %5572 }
 0xa15   :  { %v970_v41 = vmul.f32 %v5573_v5, %v938_v49  ;;  %v977_v28 = vmul.f32 %v975_v20, %v969_v39  ;;  %v984_v43 = vadd.f32 %v983_v38, %v976_v53 }
 0xa17   :  { %v985_v55 = vadd.f32 %v983_v38, %v977_v28  ;;  %v978_v11 = vmul.f32 %v975_v20, %v970_v41 }
 0xa18   :  { %v5575_v2 = vpop.eup %5574 }
 0xa19   :  { %v971_v31 = vmul.f32 %v5575_v2, %v939_v57  ;;  %v988_v40 = vpack.c.bf16 %v985_v55, %v984_v43  ;;  %v986_v14 = vadd.f32 %v983_v38, %v978_v11  ;;  %v1166_v55 = vsub.s32 7, %v5772_v59 }
 0xa1b   :  { %v979_v13 = vmul.f32 %v975_v20, %v971_v31  ;;  %4997 = vmatprep.mubr.msk.bf16.mxu1 %vm194_vm1, %v988_v40  ;;  %v1167_v11 = vrot.slane %v5778_v63, %v1166_v55 }
 0xa1d   :  { %v987_v26 = vadd.f32 %v983_v38, %v979_v13 }
 0xa1f   :  { %v989_v22 = vpack.c.bf16 %v987_v26, %v986_v14 }
 0xa21   :  { %4998 = vmatmul.mubr.msk.bf16.vlgmr.msra.gmra.mrb[32].mxu1 %vm194_vm1, %v989_v22 }
 0xaf4   :  { %v4999_v42 = vpop.f32.mrb[32].mxu1 }
 0xaf5   :  { %v1055_v29 = vadd.f32 %v4999_v42, %v993_v34  ;;  %v1046_v35 = vpop.f32.mrb[33].mxu1 }
 0xaf6   :  { %v1047_v37 = vadd.f32 %v1046_v35, %v993_v34  ;;  %v5000_v45 = vpop.f32.mrb[34].mxu1 }
 0xaf7   :  { %v1067_v48 = vmul.f32 0.044715, %v1055_v29  ;;  %v1058_v49 = vadd.f32 %v5000_v45, %v993_v34  ;;  %v1049_v50 = vpop.f32.mrb[35].mxu1  ;;  %v1063_v20 = vmul.f32 0.5, %v1055_v29 }
 0xaf8   :  { %v1065_v51 = vmul.f32 0.044715, %v1047_v37  ;;  %v1050_v52 = vadd.f32 %v1049_v50, %v993_v34  ;;  %v1061_v24 = vmul.f32 0.5, %v1047_v37 }
 0xaf9   :  { %v1071_v54 = vmul.f32 %v1067_v48, %v1055_v29  ;;  %v1068_v56 = vmul.f32 0.044715, %v1058_v49  ;;  %v1064_v21 = vmul.f32 0.5, %v1058_v49 }
 0xafa   :  { %v1069_v36 = vmul.f32 %v1065_v51, %v1047_v37  ;;  %v1066_v57 = vmul.f32 0.044715, %v1050_v52  ;;  %v1062_v27 = vmul.f32 0.5, %v1050_v52 }
 0xafb   :  { %v1075_v58 = vmul.f32 %v1071_v54, %v1055_v29  ;;  %v1072_v60 = vmul.f32 %v1068_v56, %v1058_v49 }
 0xafc   :  { %v1073_v61 = vmul.f32 %v1069_v36, %v1047_v37  ;;  %v1070_v0 = vmul.f32 %v1066_v57, %v1050_v52 }
 0xafd   :  { %v1079_v1 = vadd.f32 %v1075_v58, %v1055_v29  ;;  %v1076_v62 = vmul.f32 %v1072_v60, %v1058_v49 }
 0xafe   :  { %v1074_v25 = vmul.f32 %v1070_v0, %v1050_v52  ;;  %v1077_v3 = vadd.f32 %v1073_v61, %v1047_v37 }
 0xaff   :  { %v1083_v4 = vmul.f32 0.7978846, %v1079_v1  ;;  %v1080_v6 = vadd.f32 %v1076_v62, %v1058_v49 }
 0xb00   :  { %v1078_v7 = vadd.f32 %v1074_v25, %v1050_v52  ;;  %v1081_v8 = vmul.f32 0.7978846, %v1077_v3 }
 0xb01   :  { %5576 = vtanh.f32 %v1083_v4  ;;  %v1084_v46 = vmul.f32 0.7978846, %v1080_v6  ;;  %v5080_v4 = vld [vmem:[#allocation4] ss:$36 sps:$4 sm:$0xff]  }
 0xb02   :  { %v1082_v9 = vmul.f32 0.7978846, %v1078_v7  ;;  %5578 = vtanh.f32 %v1081_v8  ;;  %v5082_v6 = vld [vmem:[#allocation4 + $0x4] ss:$36 sps:$4 sm:$0xff]   ;;  %v5085_v8 = vld [vmem:[#allocation4 + $0xc] ss:$36 sps:$4 sm:$0xff]  }
 0xb03   :  { %5580 = vtanh.f32 %v1084_v46  ;;  %v5083_v7 = vld [vmem:[#allocation4 + $0x8] ss:$36 sps:$4 sm:$0xff]   ;;  %1392 = vmatprep.subr.bf16.mxu1 %v5082_v6  ;;  %1445 = vmatprep.subr.bf16.mxu0 %v5085_v8 }
 0xb04   :  { %5582 = vtanh.f32 %v1082_v9  ;;  %1393 = vmatpush1.bf16.msra.mxu1 %v5080_v4 }
 0xb0b   :  { %v5577_v47 = vpop.eup %5576 }
 0xb0c   :  { %v5579_v10 = vpop.eup %5578  ;;  %v1091_v12 = vadd.f32 1.0, %v5577_v47 }
 0xb0d   :  { %v5581_v15 = vpop.eup %5580  ;;  %v1089_v16 = vadd.f32 1.0, %v5579_v10 }
 0xb0e   :  { %v5583_v18 = vpop.eup %5582  ;;  %v1092_v23 = vadd.f32 1.0, %v5581_v15  ;;  %v1095_v53 = vmul.f32 %v1091_v12, %v1063_v20 }
 0xb0f   :  { %v1090_v39 = vadd.f32 1.0, %v5583_v18  ;;  %v1093_v5 = vmul.f32 %v1089_v16, %v1061_v24 }
 0xb10   :  { %v1096_v38 = vmul.f32 %v1092_v23, %v1064_v21 }
 0xb11   :  { %v1094_v41 = vmul.f32 %v1090_v39, %v1062_v27  ;;  %v1226_v27 = vsub.s32 4, %v5772_v59  ;;  %v1234_v39 = vsub.s32 5, %v5772_v59 }
 0xb12   :  { %v1098_v28 = vpack.c.bf16 %v1096_v38, %v1095_v53 }
 0xb13   :  { %v1097_v43 = vpack.c.bf16 %v1094_v41, %v1093_v5  ;;  %v1227_v53 = vrot.slane %v5778_v63, %v1226_v27  ;;  %v1235_v41 = vrot.slane %v5778_v63, %v1234_v39 }
 0xb15   :  { %5005 = vmatprep.mubr.bf16.mxu0 %v1097_v43 }
 0xb16   :  { %5006 = vmatmul.mubr.bf16.vlgmr.msra.gmra.mrb[8].mxu0 %v1098_v28 }
 0xb17   :  { %1446 = vmatpush1.bf16.msra.mxu0 %v5083_v7 }
 0xbe9   :  { %v5007_v2 = vpop.f32.mrb[8].mxu0 }
 0xbea   :  { %v1145_v31 = vpop.f32.mrb[9].mxu0  ;;  %v1162_v40 = vadd.f32 %v5007_v2, %v5984_v32 }
 0xbeb   :  { %v1160_v13 = vadd.f32 %v1145_v31, %v5981_v30  ;;  %v5008_v14 = vpop.f32.mrb[10].mxu0 }
 0xbec   :  { %v1148_v26 = vpop.f32.mrb[11].mxu0  ;;  %v1163_v22 = vadd.f32 %v5008_v14, %v5993_v17  ;;  %v1170_v29 = vadd.f32 %v1167_v11, %v1162_v40  ;;  %v5086_v14 = vld [vmem:[#allocation4 + $0x48] ss:$36 sps:$4 sm:$0xff]  }
 0xbed   :  { %v1161_v19 = vadd.f32 %v1148_v26, %v5987_v44  ;;  %v1168_v33 = vadd.f32 %v1167_v11, %v1160_v13  ;;  %v5088_v26 = vld [vmem:[#allocation4 + $0x4c] ss:$36 sps:$4 sm:$0xff]  }
 0xbee   :  { %v1171_v37 = vadd.f32 %v1167_v11, %v1163_v22  ;;  %v1178_v32 = vsel %vm194_vm1, %v1170_v29, 0.0  ;;  %v5089_v22 = vld [vmem:[#allocation4 + $0x50] ss:$36 sps:$4 sm:$0xff]   ;;  %1394 = vmatprep.subr.bf16.mxu1 %v5088_v26 }
 0xbef   :  { %v1172_v34 = vsel %vm194_vm1, %v1168_v33, 0.0  ;;  %v1169_v42 = vadd.f32 %v1167_v11, %v1161_v19  ;;  %v5091_v19 = vld [vmem:[#allocation4 + $0x54] ss:$36 sps:$4 sm:$0xff]   ;;  %1395 = vmatpush1.bf16.msra.mxu1 %v5086_v14 }
 0xbf0   :  { %1173 = vadd.xlane.f32.xlu0 %v1172_v34  ;;  %v1181_v30 = vsel %vm194_vm1, %v1171_v37, 0.0  ;;  %1447 = vmatprep.subr.bf16.mxu0 %v5091_v19 }
 0xbf1   :  { %v1175_v35 = vsel %vm194_vm1, %v1169_v42, 0.0  ;;  %1448 = vmatpush1.bf16.msra.mxu0 %v5089_v22 }
 0xbf2   :  { %1176 = vadd.xlane.f32.xlu1 %v1175_v35  ;;  %v5094_v35 = vld [vmem:[#allocation4 + $0x14] ss:$36 sps:$4 sm:$0xff]  }
 0xbf3   :  { %1498 = vmatprep.subr.bf16.mxu1 %v5094_v35 }
 0xbf4   :  { %1179 = vadd.xlane.f32.xlu0 %v1178_v32 }
 0xbf6   :  { %1182 = vadd.xlane.f32.xlu1 %v1181_v30  ;;  %v5100_v30 = vld [vmem:[#allocation4 + $0x1c] ss:$36 sps:$4 sm:$0xff]  }
 0xbf7   :  { %1551 = vmatprep.subr.bf16.mxu0 %v5100_v30 }
 0xc7d   :  { %v1174_v45 = vpop.xlane.xlu0 %1173 }
 0xc7e   :  { %v1184_v17 = vmul.f32 0.03125, %v1174_v45 }
 0xc7f   :  { %v1177_v48 = vpop.xlane.xlu1 %1176 }
 0xc80   :  { %v1188_v44 = vsub.f32 %v1168_v33, %v1184_v17  ;;  %v1185_v49 = vmul.f32 0.03125, %v1177_v48  ;;  %v5092_v48 = vld [vmem:[#allocation4 + $0x10] ss:$36 sps:$4 sm:$0xff]  }
 0xc81   :  { %v1180_v50 = vpop.xlane.xlu0 %1179 }
 0xc82   :  { %v1189_v51 = vsub.f32 %v1169_v42, %v1185_v49  ;;  %v1186_v52 = vmul.f32 0.03125, %v1180_v50  ;;  %v1192_v54 = vmul.f32 %v1188_v44, %v1188_v44  ;;  %v5097_v49 = vld [vmem:[#allocation4 + $0x5c] ss:$36 sps:$4 sm:$0xff]  }
 0xc83   :  { %v1183_v56 = vpop.xlane.xlu1 %1182  ;;  %v5098_v50 = vld [vmem:[#allocation4 + $0x18] ss:$36 sps:$4 sm:$0xff]  }
 0xc84   :  { %v1190_v36 = vsub.f32 %v1170_v29, %v1186_v52  ;;  %v1187_v57 = vmul.f32 0.03125, %v1183_v56  ;;  %v1196_v58 = vsel %vm194_vm1, %v1192_v54, 0.0  ;;  %v1193_v60 = vmul.f32 %v1189_v51, %v1189_v51  ;;  %v5095_v54 = vld [vmem:[#allocation4 + $0x58] ss:$36 sps:$4 sm:$0xff]   ;;  %v5104_v56 = vld [vmem:[#allocation4 + $0x20] ss:$36 sps:$4 sm:$0xff]  }
 0xc85   :  { %1197 = vadd.xlane.f32.xlu0 %v1196_v58  ;;  %v5649_v29 = vmov 0  }
 0xc86   :  { %v1191_v61 = vsub.f32 %v1171_v37, %v1187_v57  ;;  %v1199_v0 = vsel %vm194_vm1, %v1193_v60, 0.0  ;;  %v1194_v1 = vmul.f32 %v1190_v36, %v1190_v36  ;;  %1424 = vmatprep.mubr.bf16.mxu1 %v5649_v29  ;;  %1477 = vmatprep.mubr.bf16.mxu0 %v5649_v29  ;;  %v5592_v37 = vld [vmem:[%s7051_s1 + $0x8] sm:$0xff]  ;;  %v5105_v60 = vld [vmem:[#allocation4 + $0x68] ss:$36 sps:$4 sm:$0xff]  }
 0xc87   :  { %1200 = vadd.xlane.f32.xlu1 %v1199_v0  ;;  %v5108_v0 = vld [vmem:[%s7054_s4 + $0x4] ss:$12 sps:$4 sm:$0xff]  }
 0xc88   :  { %v1202_v62 = vsel %vm194_vm1, %v1194_v1, 0.0  ;;  %v1195_v25 = vmul.f32 %v1191_v61, %v1191_v61  ;;  %5044 = vset.pattern.permute.xlu1 %v5649_v29 }
 0xc89   :  { %1203 = vadd.xlane.f32.xlu0 %v1202_v62 }
 0xc8a   :  { %v1205_v3 = vsel %vm194_vm1, %v1195_v25, 0.0 }
 0xc8b   :  { %1206 = vadd.xlane.f32.xlu1 %v1205_v3 }
 0xc9c   :  { %4314 = vperm.xlu1 %5044, %v5592_v37  }
 0xd12   :  { %v1198_v46 = vpop.xlane.xlu0 %1197 }
 0xd13   :  { %v1208_v9 = vmul.f32 0.03125, %v1198_v46 }
 0xd14   :  { %v1201_v47 = vpop.xlane.xlu1 %1200 }
 0xd15   :  { %v1212_v10 = vadd.f32 1e-05, %v1208_v9  ;;  %v1209_v12 = vmul.f32 0.03125, %v1201_v47 }
 0xd16   :  { %v1204_v15 = vpop.xlane.xlu0 %1203 }
 0xd17   :  { %5584 = vrsqrt.f32 %v1212_v10  ;;  %v1213_v16 = vadd.f32 1e-05, %v1209_v12  ;;  %v1210_v18 = vmul.f32 0.03125, %v1204_v15 }
 0xd18   :  { %v1207_v20 = vpop.xlane.xlu1 %1206 }
 0xd19   :  { %5586 = vrsqrt.f32 %v1213_v16  ;;  %v1214_v21 = vadd.f32 1e-05, %v1210_v18  ;;  %v1211_v23 = vmul.f32 0.03125, %v1207_v20 }
 0xd1b   :  { %5588 = vrsqrt.f32 %v1214_v21  ;;  %v1215_v24 = vadd.f32 1e-05, %v1211_v23 }
 0xd1d   :  { %5590 = vrsqrt.f32 %v1215_v24 }
 0xd21   :  { %v5585_v38 = vpop.eup %5584 }
 0xd22   :  { %v1220_v5 = vmul.f32 %v5585_v38, %v1188_v44 }
 0xd23   :  { %v5587_v28 = vpop.eup %5586 }
 0xd24   :  { %v1228_v43 = vmul.f32 %v1227_v53, %v1220_v5  ;;  %v1221_v55 = vmul.f32 %v5587_v28, %v1189_v51  ;;  %v5103_v51 = vld [vmem:[#allocation4 + $0x64] ss:$36 sps:$4 sm:$0xff]  }
 0xd25   :  { %v5589_v2 = vpop.eup %5588 }
 0xd26   :  { %v1236_v11 = vadd.f32 %v1235_v41, %v1228_v43  ;;  %v1229_v31 = vmul.f32 %v1227_v53, %v1221_v55  ;;  %v1222_v40 = vmul.f32 %v5589_v2, %v1190_v36  ;;  %v5101_v36 = vld [vmem:[#allocation4 + $0x60] ss:$36 sps:$4 sm:$0xff]  }
 0xd27   :  { %v5591_v13 = vpop.eup %5590 }
 0xd28   :  { %1240 = vxpose.xlu0.b32.start [1/4] (short) (narrow) %v1236_v11, 32  ;;  %v1237_v59 = vadd.f32 %v1235_v41, %v1229_v31  ;;  %v1230_v33 = vmul.f32 %v1227_v53, %v1222_v40  ;;  %v1223_v34 = vmul.f32 %v5591_v13, %v1191_v61  ;;  %v5650_v61 = vmov 0.0  }
 0xd2a   :  { %v1238_v63 = vadd.f32 %v1235_v41, %v1230_v33  ;;  %v1231_v42 = vmul.f32 %v1227_v53, %v1223_v34 }
 0xd2c   :  { %1241 = vxpose.xlu0.b32.cont [2/4] (short) (narrow) %v1237_v59, 32  ;;  %v1239_v32 = vadd.f32 %v1235_v41, %v1231_v42 }
 0xd30   :  { %1242 = vxpose.xlu0.b32.cont [3/4] (short) (narrow) %v1238_v63, 32 }
 0xd34   :  { %1243 = vxpose.xlu0.b32.end [4/4] (short) (narrow) %v1239_v32, 32 }
 0xd5d   :  { %5045 = vset.pattern.permute.xlu0 %v5649_v29 }
 0xda8   :  { %v1256_v45 = vpop.trf.xlu0 }
 0xdac   :  { %v1257_v17 = vpop.trf.xlu0 }
 0xdad   :  { %v1272_v44 = vpack.c.bf16 %v1257_v17, %v1256_v45 }
 0xdaf   :  { %4488 = vmatmul.mubr.msk.bf16.vlgmr.msra.gmra.mrb[36].mxu1 %vm194_vm1, %v1272_v44  ;;  %4490 = vmatmul.mubr.msk.bf16.vlgmr.msra.gmra.mrb[12].mxu0 %vm194_vm1, %v1272_v44 }
 0xdb0   :  { %1499 = vmatpush1.bf16.msra.mxu1 %v5092_v48  ;;  %v1258_v52 = vpop.trf.xlu0  ;;  %1434 = vmatprep.mubr.bf16.mxu1 %v5649_v29 }
 0xdb1   :  { %1487 = vmatprep.mubr.bf16.mxu0 %v5649_v29  ;;  %1500 = vmatprep.subr.bf16.mxu1 %v5097_v49 }
 0xdb2   :  { %1552 = vmatpush1.bf16.msra.mxu0 %v5098_v50 }
 0xdb3   :  { %1553 = vmatprep.subr.bf16.mxu0 %v5103_v51 }
 0xdb4   :  { %v1259_v57 = vpop.trf.xlu0  ;;  %1501 = vmatpush1.bf16.msra.mxu1 %v5095_v54  ;;  %v5109_v54 = vld [vmem:[%s7054_s4 + $0x8] ss:$12 sps:$4 sm:$0xff]  }
 0xdb5   :  { %v1273_v58 = vpack.c.bf16 %v1259_v57, %v1258_v52  ;;  %5009 = vmatprep.subr.bf16.mxu1 %v5104_v56  ;;  %v5112_v52 = vld [vmem:[%s7056_s6 + $0x4] ss:$144 sps:$4 sm:$0xff]   ;;  %v5116_v57 = vld [vmem:[%s7056_s6 + $0x120] ss:$144 sps:$4 sm:$0xff]  }
 0xdb6   :  { %1554 = vmatpush1.bf16.msra.mxu0 %v5101_v36  ;;  %v5118_v36 = vld [vmem:[%s7056_s6 + $0x124] ss:$144 sps:$4 sm:$0xff]  }
 0xdb7   :  { %4489 = vmatmul.mubr.msk.bf16.gmra.mrb[40].mxu1 %vm194_vm1, %v1273_v58  ;;  %4491 = vmatmul.mubr.msk.bf16.gmra.mrb[16].mxu0 %vm194_vm1, %v1273_v58 }
 0xdb8   :  { %1530 = vmatprep.mubr.bf16.mxu1 %v5649_v29  ;;  %1583 = vmatprep.mubr.bf16.mxu0 %v5649_v29 }
 0xdbf   :  { %4492 = vmatmul.mubr.msk.bf16.vlgmr.msra.gmra.mrb[44].mxu1 %vm194_vm1, %v1272_v44  ;;  %4494 = vmatmul.mubr.msk.bf16.vlgmr.msra.gmra.mrb[20].mxu0 %vm194_vm1, %v1272_v44 }
 0xdc0   :  { %1540 = vmatprep.mubr.bf16.mxu1 %v5649_v29  ;;  %1593 = vmatprep.mubr.bf16.mxu0 %v5649_v29 }
 0xdc1   :  { %5010 = vmatpush3.bf16.msra.mxu1 %v5104_v56  ;;  %v5110_v56 = vld [vmem:[%s7056_s6] ss:$144 sps:$4 sm:$0xff]  }
 0xdc2   :  { %5011 = vmatprep.subr.bf16.mxu1 %v5105_v60 }
 0xdc5   :  { %5012 = vmatpush3.bf16.msra.mxu1 %v5105_v60  ;;  %v5122_v60 = vld [vmem:[%s7056_s6 + $0x240] ss:$144 sps:$4 sm:$0xff]  }
 0xdc6   :  { %5017 = vmatprep.subr.bf16.mxu1 %v5650_v61 }
 0xdc7   :  { %4493 = vmatmul.mubr.msk.bf16.gmra.mrb[48].mxu1 %vm194_vm1, %v1273_v58  ;;  %4495 = vmatmul.mubr.msk.bf16.gmra.mrb[24].mxu0 %vm194_vm1, %v1273_v58 }
 0xdc8   :  { %5013 = vmatprep.mubr.msk.bf16.mxu1 %vm194_vm1, %v1272_v44  ;;  %1721 = vmatprep.mubr.bf16.mxu0 %v5108_v0  ;;  %v5130_v0 = vld [vmem:[%s7056_s6 + $0x364] ss:$144 sps:$4 sm:$0xff]  }
 0xdcf   :  { %5014 = vmatmul.mubr.msk.bf16.vlgmr.msra.gmra.mrb[52].mxu1 %vm194_vm1, %v1273_v58  ;;  %v5124_v58 = vld [vmem:[%s7056_s6 + $0x244] ss:$144 sps:$4 sm:$0xff]  }
 0xdd0   :  { %5021 = vmatprep.mubr.msk.bf16.mxu1 %vm5651_vm2, %v5650_v61 }
 0xe82   :  { %v1426_v1 = vpop.f32.mrb[36].mxu1  ;;  %v6062_v62 = vpop.f32.mrb[12].mxu0 }
 0xe83   :  { %v1428_v25 = vpop.f32.mrb[37].mxu1  ;;  %v6064_v3 = vpop.f32.mrb[13].mxu0 }
 0xe84   :  { %v1430_v4 = vpop.f32.mrb[38].mxu1  ;;  %v1483_v6 = vpop.f32.mrb[14].mxu0 }
 0xe85   :  { %v1653_v7 = vpack.c.bf16 %v1430_v4, %v1426_v1  ;;  %v1657_v8 = vpack.c.bf16 %v1483_v6, %v6062_v62  ;;  %v1432_v46 = vpop.f32.mrb[39].mxu1  ;;  %v6067_v9 = vpop.f32.mrb[15].mxu0  ;;  %v5106_v1 = vld [vmem:[%s7054_s4] ss:$12 sps:$4 sm:$0xff]   ;;  %v5113_v62 = vld [vmem:[%s7056_s6 + $0x8] ss:$144 sps:$4 sm:$0xff]  }
 0xe86   :  { %v1655_v47 = vpack.c.bf16 %v1432_v46, %v1428_v25  ;;  %v1659_v10 = vpack.c.bf16 %v6067_v9, %v6064_v3  ;;  %v5128_v25 = vld [vmem:[%s7056_s6 + $0x360] ss:$144 sps:$4 sm:$0xff]   ;;  %v5121_v3 = vld [vmem:[%s7056_s6 + $0x12c] ss:$144 sps:$4 sm:$0xff]   ;;  %v5136_v4 = vld [vmem:[%s7056_s6 + $0x484] ss:$144 sps:$4 sm:$0xff]  }
 0xe87   :  { %v5119_v6 = vld [vmem:[%s7056_s6 + $0x128] ss:$144 sps:$4 sm:$0xff]   ;;  %v5133_v9 = vld [vmem:[%s7056_s6 + $0x36c] ss:$144 sps:$4 sm:$0xff]  }
 0xe88   :  { %v5125_v46 = vld [vmem:[%s7056_s6 + $0x248] ss:$144 sps:$4 sm:$0xff]  }
 0xe8a   :  { %v1436_v12 = vpop.f32.mrb[40].mxu1  ;;  %v1489_v15 = vpop.f32.mrb[16].mxu0 }
 0xe8b   :  { %v1438_v16 = vpop.f32.mrb[41].mxu1  ;;  %v6071_v18 = vpop.f32.mrb[17].mxu0 }
 0xe8c   :  { %v1440_v20 = vpop.f32.mrb[42].mxu1  ;;  %v1493_v21 = vpop.f32.mrb[18].mxu0 }
 0xe8d   :  { %v1654_v23 = vpack.c.bf16 %v1440_v20, %v1436_v12  ;;  %v1658_v24 = vpack.c.bf16 %v1493_v21, %v1489_v15  ;;  %v1442_v27 = vpop.f32.mrb[43].mxu1  ;;  %v6073_v39 = vpop.f32.mrb[19].mxu0  ;;  %v5137_v12 = vld [vmem:[%s7056_s6 + $0x488] ss:$144 sps:$4 sm:$0xff]   ;;  %v5142_v15 = vld [vmem:[%s7056_s6 + $0x5a4] ss:$144 sps:$4 sm:$0xff]  }
 0xe8e   :  { %v1656_v53 = vpack.c.bf16 %v1442_v27, %v1438_v16  ;;  %v1660_v38 = vpack.c.bf16 %v6073_v39, %v6071_v18  ;;  %v5145_v16 = vld [vmem:[%s7056_s6 + $0x5ac] ss:$144 sps:$4 sm:$0xff]   ;;  %v5140_v18 = vld [vmem:[%s7056_s6 + $0x5a0] ss:$144 sps:$4 sm:$0xff]   ;;  %v5143_v20 = vld [vmem:[%s7056_s6 + $0x5a8] ss:$144 sps:$4 sm:$0xff]  }
 0xe8f   :  { %v5148_v21 = vld [vmem:[%s7056_s6 + $0x6c4] ss:$144 sps:$4 sm:$0xff]   ;;  %v5149_v27 = vld [vmem:[%s7056_s6 + $0x6c8] ss:$144 sps:$4 sm:$0xff]  }
 0xe90   :  { %v5154_v39 = vld [vmem:[%s7056_s6 + $0x7e4] ss:$144 sps:$4 sm:$0xff]  }
 0xe92   :  { %v1532_v5 = vpop.f32.mrb[44].mxu1  ;;  %v1585_v41 = vpop.f32.mrb[20].mxu0 }
 0xe93   :  { %v1534_v28 = vpop.f32.mrb[45].mxu1  ;;  %v1587_v43 = vpop.f32.mrb[21].mxu0 }
 0xe94   :  { %v1536_v55 = vpop.f32.mrb[46].mxu1  ;;  %v1589_v2 = vpop.f32.mrb[22].mxu0 }
 0xe95   :  { %v1661_v11 = vpack.c.bf16 %v1536_v55, %v1532_v5  ;;  %v1665_v31 = vpack.c.bf16 %v1589_v2, %v1585_v41  ;;  %v1538_v40 = vpop.f32.mrb[47].mxu1  ;;  %v1591_v13 = vpop.f32.mrb[23].mxu0  ;;  %v5155_v5 = vld [vmem:[%s7056_s6 + $0x7e8] ss:$144 sps:$4 sm:$0xff]   ;;  %v5160_v41 = vld [vmem:[%s7056_s6 + $0x14] ss:$144 sps:$4 sm:$0xff]  }
 0xe96   :  { %v1663_v14 = vpack.c.bf16 %v1538_v40, %v1534_v28  ;;  %v1667_v26 = vpack.c.bf16 %v1591_v13, %v1587_v43  ;;  %v5163_v28 = vld [vmem:[%s7056_s6 + $0x1c] ss:$144 sps:$4 sm:$0xff]   ;;  %v57_v13 = vld [vmem:[%s7051_s1 + $0x10] sm:$0xff] }
 0xe97   :  { %4860 = vmatprep.subr.bf16.mxu0 %v1661_v11 }
 0xe98   :  { %4861 = vmatpush3.bf16.msra.mxu0 %v1653_v7  ;;  %v5134_v7 = vld [vmem:[%s7056_s6 + $0x480] ss:$144 sps:$4 sm:$0xff]  }
 0xe9a   :  { %v1542_v22 = vpop.f32.mrb[48].mxu1  ;;  %v1595_v19 = vpop.f32.mrb[24].mxu0 }
 0xe9b   :  { %v1544_v59 = vpop.f32.mrb[49].mxu1  ;;  %v1597_v33 = vpop.f32.mrb[25].mxu0 }
 0xe9c   :  { %v1546_v34 = vpop.f32.mrb[50].mxu1  ;;  %v1599_v63 = vpop.f32.mrb[26].mxu0 }
 0xe9d   :  { %v1662_v42 = vpack.c.bf16 %v1546_v34, %v1542_v22  ;;  %v1666_v35 = vpack.c.bf16 %v1599_v63, %v1595_v19  ;;  %v1548_v37 = vpop.f32.mrb[51].mxu1  ;;  %v1601_v32 = vpop.f32.mrb[27].mxu0  ;;  %v58_v19 = vld [vmem:[%s7051_s1 + $0x18] sm:$0xff] }
 0xe9e   :  { %v1664_v30 = vpack.c.bf16 %v1548_v37, %v1544_v59  ;;  %v1668_v45 = vpack.c.bf16 %v1601_v32, %v1597_v33  ;;  %v5158_v32 = vld [vmem:[%s7056_s6 + $0x10] ss:$144 sps:$4 sm:$0xff]  }
 0xe9f   :  { %4862 = vmatprep.subr.bf16.mxu0 %v1662_v42 }
 0xea0   :  { %4863 = vmatpush3.bf16.msra.mxu0 %v1654_v23  ;;  %v5151_v23 = vld [vmem:[%s7056_s6 + $0x6cc] ss:$144 sps:$4 sm:$0xff]  }
 0xea1   :  { %4864 = vmatprep.subr.bf16.mxu0 %v1663_v14 }
 0xea2   :  { %v5015_v17 = vpop.f32.mrb[52].mxu1 }
 0xea3   :  { %v1638_v48 = vpop.f32.mrb[53].mxu1 }
 0xea4   :  { %v5016_v44 = vpop.f32.mrb[54].mxu1  ;;  %4865 = vmatpush3.bf16.msra.mxu0 %v1655_v47  ;;  %v5131_v47 = vld [vmem:[%s7056_s6 + $0x368] ss:$144 sps:$4 sm:$0xff]  }
 0xea5   :  { %v1670_v49 = vpack.c.bf16 %v5016_v44, %v5015_v17  ;;  %v1641_v50 = vpop.f32.mrb[55].mxu1  ;;  %4866 = vmatprep.subr.bf16.mxu0 %v1664_v30  ;;  %v5161_v30 = vld [vmem:[%s7056_s6 + $0x18] ss:$144 sps:$4 sm:$0xff]   ;;  %v5166_v17 = vld [vmem:[%s7056_s6 + $0x134] ss:$144 sps:$4 sm:$0xff]  }
 0xea6   :  { %v1669_v51 = vpack.c.bf16 %v1641_v50, %v1638_v48  ;;  %v5169_v48 = vld [vmem:[%s7056_s6 + $0x13c] ss:$144 sps:$4 sm:$0xff]   ;;  %v5164_v44 = vld [vmem:[%s7056_s6 + $0x130] ss:$144 sps:$4 sm:$0xff]   ;;  %v5172_v50 = vld [vmem:[%s7056_s6 + $0x254] ss:$144 sps:$4 sm:$0xff]  }
 0xea8   :  { %4867 = vmatpush3.bf16.msra.mxu0 %v1656_v53  ;;  %5018 = vmatpush3.bf16.msra.mxu1 %v1669_v51  ;;  %v5157_v53 = vld [vmem:[%s7056_s6 + $0x7ec] ss:$144 sps:$4 sm:$0xff]  }
 0xea9   :  { %4868 = vmatprep.subr.bf16.mxu0 %v1665_v31  ;;  %5019 = vmatprep.subr.bf16.mxu1 %v5650_v61  ;;  %v5115_v61 = vld [vmem:[%s7056_s6 + $0xc] ss:$144 sps:$4 sm:$0xff]  }
 0xeaa   :  { %v5175_v51 = vld [vmem:[%s7056_s6 + $0x25c] ss:$144 sps:$4 sm:$0xff]  }
 0xeac   :  { %4869 = vmatpush3.bf16.msra.mxu0 %v1657_v8  ;;  %5020 = vmatpush3.bf16.msra.mxu1 %v1670_v49  ;;  %v5127_v8 = vld [vmem:[%s7056_s6 + $0x24c] ss:$144 sps:$4 sm:$0xff]   ;;  %v5167_v49 = vld [vmem:[%s7056_s6 + $0x138] ss:$144 sps:$4 sm:$0xff]  }
 0xead   :  { %4870 = vmatprep.subr.bf16.mxu0 %v1666_v35  ;;  %3502 = vmatprep.subr.bf16.mxu1 %v5112_v52  ;;  %v5170_v52 = vld [vmem:[%s7056_s6 + $0x250] ss:$144 sps:$4 sm:$0xff]  }
 0xeaf   :  { %5022 = vmatmul.mubr.msk.bf16.vlgmr.msra.gmra.mrb[56].mxu1 %vm194_vm1, %v5109_v54  ;;  %v5173_v54 = vld [vmem:[%s7056_s6 + $0x258] ss:$144 sps:$4 sm:$0xff]  }
 0xeb0   :  { %4871 = vmatpush3.bf16.msra.mxu0 %v1658_v24  ;;  %3503 = vmatpush1.bf16.msra.mxu1 %v5110_v56  ;;  %v5146_v24 = vld [vmem:[%s7056_s6 + $0x6c0] ss:$144 sps:$4 sm:$0xff]   ;;  %v5178_v56 = vld [vmem:[%s7056_s6 + $0x374] ss:$144 sps:$4 sm:$0xff]  }
 0xeb1   :  { %4872 = vmatprep.subr.bf16.mxu0 %v1667_v26  ;;  %3504 = vmatprep.subr.bf16.mxu1 %v5118_v36  ;;  %v5181_v36 = vld [vmem:[%s7056_s6 + $0x37c] ss:$144 sps:$4 sm:$0xff]  }
 0xeb2   :  { %3534 = vmatprep.mubr.bf16.mxu1 %v5649_v29 }
 0xeb4   :  { %4873 = vmatpush3.bf16.msra.mxu0 %v1659_v10  ;;  %3505 = vmatpush1.bf16.msra.mxu1 %v5116_v57  ;;  %v5139_v10 = vld [vmem:[%s7056_s6 + $0x48c] ss:$144 sps:$4 sm:$0xff]   ;;  %v5176_v57 = vld [vmem:[%s7056_s6 + $0x370] ss:$144 sps:$4 sm:$0xff]  }
 0xeb5   :  { %4874 = vmatprep.subr.bf16.mxu0 %v1668_v45  ;;  %3506 = vmatprep.subr.bf16.mxu1 %v5124_v58  ;;  %v5179_v58 = vld [vmem:[%s7056_s6 + $0x378] ss:$144 sps:$4 sm:$0xff]  }
 0xeb8   :  { %4875 = vmatpush3.bf16.msra.mxu0 %v1660_v38  ;;  %3507 = vmatpush1.bf16.msra.mxu1 %v5122_v60  ;;  %v5152_v38 = vld [vmem:[%s7056_s6 + $0x7e0] ss:$144 sps:$4 sm:$0xff]   ;;  %v5184_v60 = vld [vmem:[%s7056_s6 + $0x494] ss:$144 sps:$4 sm:$0xff]  }
 0xeb9   :  { %3545 = vmatprep.subr.bf16.mxu0 %v5115_v61  ;;  %3508 = vmatprep.subr.bf16.mxu1 %v5130_v0  ;;  %v5187_v61 = vld [vmem:[%s7056_s6 + $0x49c] ss:$144 sps:$4 sm:$0xff]   ;;  %v5182_v0 = vld [vmem:[%s7056_s6 + $0x490] ss:$144 sps:$4 sm:$0xff]  }
 0xebb   :  { %1722 = vmatmul.mubr.bf16.vlgmr.msra.gmra.mrb[28].mxu0 %v5106_v1  ;;  %v5185_v1 = vld [vmem:[%s7056_s6 + $0x498] ss:$144 sps:$4 sm:$0xff]  }
 0xebc   :  { %3546 = vmatpush1.bf16.msra.mxu0 %v5113_v62  ;;  %3509 = vmatpush1.bf16.msra.mxu1 %v5128_v25  ;;  %v5190_v62 = vld [vmem:[%s7056_s6 + $0x5b4] ss:$144 sps:$4 sm:$0xff]   ;;  %v5193_v25 = vld [vmem:[%s7056_s6 + $0x5bc] ss:$144 sps:$4 sm:$0xff]  }
 0xebd   :  { %3547 = vmatprep.subr.bf16.mxu0 %v5121_v3  ;;  %3510 = vmatprep.subr.bf16.mxu1 %v5136_v4  ;;  %v5188_v3 = vld [vmem:[%s7056_s6 + $0x5b0] ss:$144 sps:$4 sm:$0xff]   ;;  %v5191_v4 = vld [vmem:[%s7056_s6 + $0x5b8] ss:$144 sps:$4 sm:$0xff]  }
 0xebe   :  { %3577 = vmatprep.mubr.bf16.mxu0 %v5649_v29 }
 0xec0   :  { %3548 = vmatpush1.bf16.msra.mxu0 %v5119_v6  ;;  %3511 = vmatpush1.bf16.msra.mxu1 %v5134_v7  ;;  %v5196_v6 = vld [vmem:[%s7056_s6 + $0x6d4] ss:$144 sps:$4 sm:$0xff]   ;;  %v5199_v7 = vld [vmem:[%s7056_s6 + $0x6dc] ss:$144 sps:$4 sm:$0xff]  }
 0xec1   :  { %3549 = vmatprep.subr.bf16.mxu0 %v5127_v8  ;;  %3512 = vmatprep.subr.bf16.mxu1 %v5142_v15  ;;  %v5194_v8 = vld [vmem:[%s7056_s6 + $0x6d0] ss:$144 sps:$4 sm:$0xff]   ;;  %v5208_v15 = vld [vmem:[%s7056_s6 + $0x24] ss:$144 sps:$4 sm:$0xff]  }
 0xec4   :  { %3550 = vmatpush1.bf16.msra.mxu0 %v5125_v46  ;;  %3513 = vmatpush1.bf16.msra.mxu1 %v5140_v18  ;;  %v5197_v46 = vld [vmem:[%s7056_s6 + $0x6d8] ss:$144 sps:$4 sm:$0xff]   ;;  %v5206_v18 = vld [vmem:[%s7056_s6 + $0x20] ss:$144 sps:$4 sm:$0xff]  }
 0xec5   :  { %3551 = vmatprep.subr.bf16.mxu0 %v5133_v9  ;;  %3514 = vmatprep.subr.bf16.mxu1 %v5148_v21  ;;  %v5202_v9 = vld [vmem:[%s7056_s6 + $0x7f4] ss:$144 sps:$4 sm:$0xff]  }
 0xec6   :  { %v5214_v21 = vld [vmem:[%s7056_s6 + $0x144] ss:$144 sps:$4 sm:$0xff]  }
 0xec8   :  { %3552 = vmatpush1.bf16.msra.mxu0 %v5131_v47  ;;  %3515 = vmatpush1.bf16.msra.mxu1 %v5146_v24  ;;  %v5205_v47 = vld [vmem:[%s7056_s6 + $0x7fc] ss:$144 sps:$4 sm:$0xff]   ;;  %v5212_v24 = vld [vmem:[%s7056_s6 + $0x140] ss:$144 sps:$4 sm:$0xff]  }
 0xec9   :  { %3553 = vmatprep.subr.bf16.mxu0 %v5139_v10  ;;  %3516 = vmatprep.subr.bf16.mxu1 %v5154_v39  ;;  %v5200_v10 = vld [vmem:[%s7056_s6 + $0x7f0] ss:$144 sps:$4 sm:$0xff]   ;;  %v5220_v39 = vld [vmem:[%s7056_s6 + $0x264] ss:$144 sps:$4 sm:$0xff]  }
 0xecc   :  { %3554 = vmatpush1.bf16.msra.mxu0 %v5137_v12  ;;  %3517 = vmatpush1.bf16.msra.mxu1 %v5152_v38  ;;  %v5203_v12 = vld [vmem:[%s7056_s6 + $0x7f8] ss:$144 sps:$4 sm:$0xff]   ;;  %v5218_v38 = vld [vmem:[%s7056_s6 + $0x260] ss:$144 sps:$4 sm:$0xff]  }
 0xecd   :  { %3555 = vmatprep.subr.bf16.mxu0 %v5145_v16  ;;  %3588 = vmatprep.subr.bf16.mxu1 %v5160_v41  ;;  %v5211_v16 = vld [vmem:[%s7056_s6 + $0x2c] ss:$144 sps:$4 sm:$0xff]   ;;  %v5226_v41 = vld [vmem:[%s7056_s6 + $0x384] ss:$144 sps:$4 sm:$0xff]  }
 0xed0   :  { %3556 = vmatpush1.bf16.msra.mxu0 %v5143_v20  ;;  %v5209_v20 = vld [vmem:[%s7056_s6 + $0x28] ss:$144 sps:$4 sm:$0xff]  }
 0xed1   :  { %3557 = vmatprep.subr.bf16.mxu0 %v5151_v23  ;;  %v5217_v23 = vld [vmem:[%s7056_s6 + $0x14c] ss:$144 sps:$4 sm:$0xff]  }
 0xed4   :  { %3558 = vmatpush1.bf16.msra.mxu0 %v5149_v27  ;;  %v5215_v27 = vld [vmem:[%s7056_s6 + $0x148] ss:$144 sps:$4 sm:$0xff]  }
 0xed5   :  { %3559 = vmatprep.subr.bf16.mxu0 %v5157_v53  ;;  %v5223_v53 = vld [vmem:[%s7056_s6 + $0x26c] ss:$144 sps:$4 sm:$0xff]  }
 0xed8   :  { %3560 = vmatpush1.bf16.msra.mxu0 %v5155_v5  ;;  %v5221_v5 = vld [vmem:[%s7056_s6 + $0x268] ss:$144 sps:$4 sm:$0xff]  }
 0xed9   :  { %3631 = vmatprep.subr.bf16.mxu0 %v5163_v28  ;;  %v5229_v28 = vld [vmem:[%s7056_s6 + $0x38c] ss:$144 sps:$4 sm:$0xff]  }
 0xf82   :  { %v1764_v43 = vpop.f32.mrb[56].mxu1 }
 0xf83   :  { %v5023_v55 = vpop.f32.mrb[57].mxu1 }
 0xf84   :  { %v1767_v2 = vpop.f32.mrb[58].mxu1  ;;  %v5227_v55 = vld [vmem:[%s7056_s6 + $0x388] ss:$144 sps:$4 sm:$0xff]  }
 0xf85   :  { %v5024_v11 = vpop.f32.mrb[59].mxu1 }
 0xf86   :  { %v5235_v11 = vld [vmem:[%s7056_s6 + $0x4ac] ss:$144 sps:$4 sm:$0xff]  }
 0xf8e   :  { %v4876_v31 = vpop.f32.mrb[28].mxu0 }
 0xf8f   :  { %v4877_v40 = vpop.f32.mrb[29].mxu0 }
 0xf90   :  { %v4878_v14 = vadd.f32 %v4877_v40, %v4876_v31  ;;  %v4879_v26 = vpop.f32.mrb[30].mxu0  ;;  %v5230_v31 = vld [vmem:[%s7056_s6 + $0x4a0] ss:$144 sps:$4 sm:$0xff]   ;;  %v5233_v40 = vld [vmem:[%s7056_s6 + $0x4a8] ss:$144 sps:$4 sm:$0xff]  }
 0xf91   :  { %v4880_v22 = vpop.f32.mrb[31].mxu0 }
 0xf92   :  { %v4881_v59 = vadd.f32 %v4880_v22, %v4879_v26  ;;  %v1724_v33 = vadd.f32 %v4878_v14, %v57_v13  ;;  %v5238_v13 = vld [vmem:[%s7056_s6 + $0x5c4] ss:$144 sps:$4 sm:$0xff]   ;;  %v5241_v14 = vld [vmem:[%s7056_s6 + $0x5cc] ss:$144 sps:$4 sm:$0xff]   ;;  %v5236_v26 = vld [vmem:[%s7056_s6 + $0x5c0] ss:$144 sps:$4 sm:$0xff]  }
 0xf93   :  { %v5239_v22 = vld [vmem:[%s7056_s6 + $0x5c8] ss:$144 sps:$4 sm:$0xff]  }
 0xf94   :  { %v1765_v34 = vadd.f32 %v1764_v43, %v1724_v33  ;;  %v1727_v63 = vadd.f32 %v4881_v59, %v58_v19  ;;  %v5224_v43 = vld [vmem:[%s7056_s6 + $0x380] ss:$144 sps:$4 sm:$0xff]   ;;  %v5244_v19 = vld [vmem:[%s7056_s6 + $0x6e4] ss:$144 sps:$4 sm:$0xff]   ;;  %v5247_v59 = vld [vmem:[%s7056_s6 + $0x6ec] ss:$144 sps:$4 sm:$0xff]  }
 0xf95   :  { %v5242_v33 = vld [vmem:[%s7056_s6 + $0x6e0] ss:$144 sps:$4 sm:$0xff]  }
 0xf96   :  { %v1768_v42 = vadd.f32 %v1767_v2, %v1727_v63  ;;  %v1771_v35 = vmax.f32 %v1765_v34, 0.0  ;;  %v5232_v2 = vld [vmem:[%s7056_s6 + $0x4a4] ss:$144 sps:$4 sm:$0xff]   ;;  %v5245_v34 = vld [vmem:[%s7056_s6 + $0x6e8] ss:$144 sps:$4 sm:$0xff]  }
 0xf97   :  { %v5250_v63 = vld [vmem:[%s7056_s6 + $0x804] ss:$144 sps:$4 sm:$0xff]  }
 0xf98   :  { %v1772_v37 = vmax.f32 %v1768_v42, 0.0  ;;  %v5253_v42 = vld [vmem:[%s7056_s6 + $0x80c] ss:$144 sps:$4 sm:$0xff]  }
 0xf9a   :  { %v6207_v45 = vpack.c.bf16 %v1772_v37, %v1771_v35  ;;  %v5248_v35 = vld [vmem:[%s7056_s6 + $0x800] ss:$144 sps:$4 sm:$0xff]   ;;  %v5251_v37 = vld [vmem:[%s7056_s6 + $0x808] ss:$144 sps:$4 sm:$0xff]  }
 0xf9c   :  { %3535 = vmatmul.mubr.bf16.vlgmr.msra.gmra.mrb[60].mxu1 %v6207_v45  ;;  %3578 = vmatmul.mubr.bf16.vlgmr.msra.gmra.mrb[32].mxu0 %v6207_v45 }
 0xf9d   :  { %3589 = vmatpush1.bf16.msra.mxu1 %v5158_v32  ;;  %3632 = vmatpush1.bf16.msra.mxu0 %v5161_v30  ;;  %v5256_v32 = vld [vmem:[%s7056_s6 + $0x34] ss:$144 sps:$4 sm:$0xff]   ;;  %v5259_v30 = vld [vmem:[%s7056_s6 + $0x3c] ss:$144 sps:$4 sm:$0xff]  }
 0xf9e   :  { %3590 = vmatprep.subr.bf16.mxu1 %v5166_v17  ;;  %3633 = vmatprep.subr.bf16.mxu0 %v5169_v48  ;;  %v5254_v17 = vld [vmem:[%s7056_s6 + $0x30] ss:$144 sps:$4 sm:$0xff]   ;;  %v5257_v48 = vld [vmem:[%s7056_s6 + $0x38] ss:$144 sps:$4 sm:$0xff]  }
 0xf9f   :  { %3620 = vmatprep.mubr.bf16.mxu1 %v5649_v29  ;;  %3663 = vmatprep.mubr.bf16.mxu0 %v5649_v29 }
 0xfa1   :  { %3591 = vmatpush1.bf16.msra.mxu1 %v5164_v44  ;;  %3634 = vmatpush1.bf16.msra.mxu0 %v5167_v49  ;;  %v5262_v44 = vld [vmem:[%s7056_s6 + $0x154] ss:$144 sps:$4 sm:$0xff]   ;;  %v5265_v49 = vld [vmem:[%s7056_s6 + $0x15c] ss:$144 sps:$4 sm:$0xff]  }
 0xfa2   :  { %3592 = vmatprep.subr.bf16.mxu1 %v5172_v50  ;;  %3635 = vmatprep.subr.bf16.mxu0 %v5175_v51  ;;  %v5260_v50 = vld [vmem:[%s7056_s6 + $0x150] ss:$144 sps:$4 sm:$0xff]   ;;  %v5263_v51 = vld [vmem:[%s7056_s6 + $0x158] ss:$144 sps:$4 sm:$0xff]  }
 0xfa5   :  { %3593 = vmatpush1.bf16.msra.mxu1 %v5170_v52  ;;  %3636 = vmatpush1.bf16.msra.mxu0 %v5173_v54  ;;  %v5268_v52 = vld [vmem:[%s7056_s6 + $0x274] ss:$144 sps:$4 sm:$0xff]   ;;  %v5271_v54 = vld [vmem:[%s7056_s6 + $0x27c] ss:$144 sps:$4 sm:$0xff]  }
 0xfa6   :  { %3594 = vmatprep.subr.bf16.mxu1 %v5178_v56  ;;  %3637 = vmatprep.subr.bf16.mxu0 %v5181_v36  ;;  %v5266_v56 = vld [vmem:[%s7056_s6 + $0x270] ss:$144 sps:$4 sm:$0xff]   ;;  %v5269_v36 = vld [vmem:[%s7056_s6 + $0x278] ss:$144 sps:$4 sm:$0xff]  }
 0xfa9   :  { %3595 = vmatpush1.bf16.msra.mxu1 %v5176_v57  ;;  %3638 = vmatpush1.bf16.msra.mxu0 %v5179_v58  ;;  %v5274_v57 = vld [vmem:[%s7056_s6 + $0x394] ss:$144 sps:$4 sm:$0xff]   ;;  %v5277_v58 = vld [vmem:[%s7056_s6 + $0x39c] ss:$144 sps:$4 sm:$0xff]  }
 0xfaa   :  { %3596 = vmatprep.subr.bf16.mxu1 %v5184_v60  ;;  %3639 = vmatprep.subr.bf16.mxu0 %v5187_v61  ;;  %v5272_v60 = vld [vmem:[%s7056_s6 + $0x390] ss:$144 sps:$4 sm:$0xff]   ;;  %v5275_v61 = vld [vmem:[%s7056_s6 + $0x398] ss:$144 sps:$4 sm:$0xff]  }
 0xfad   :  { %3597 = vmatpush1.bf16.msra.mxu1 %v5182_v0  ;;  %3640 = vmatpush1.bf16.msra.mxu0 %v5185_v1  ;;  %v5280_v0 = vld [vmem:[%s7056_s6 + $0x4b4] ss:$144 sps:$4 sm:$0xff]   ;;  %v5283_v1 = vld [vmem:[%s7056_s6 + $0x4bc] ss:$144 sps:$4 sm:$0xff]  }
 0xfae   :  { %3598 = vmatprep.subr.bf16.mxu1 %v5190_v62  ;;  %3641 = vmatprep.subr.bf16.mxu0 %v5193_v25  ;;  %v5278_v62 = vld [vmem:[%s7056_s6 + $0x4b0] ss:$144 sps:$4 sm:$0xff]   ;;  %v5281_v25 = vld [vmem:[%s7056_s6 + $0x4b8] ss:$144 sps:$4 sm:$0xff]  }
 0xfb1   :  { %3599 = vmatpush1.bf16.msra.mxu1 %v5188_v3  ;;  %3642 = vmatpush1.bf16.msra.mxu0 %v5191_v4  ;;  %v5286_v3 = vld [vmem:[%s7056_s6 + $0x5d4] ss:$144 sps:$4 sm:$0xff]   ;;  %v5289_v4 = vld [vmem:[%s7056_s6 + $0x5dc] ss:$144 sps:$4 sm:$0xff]  }
 0xfb2   :  { %3600 = vmatprep.subr.bf16.mxu1 %v5196_v6  ;;  %3643 = vmatprep.subr.bf16.mxu0 %v5199_v7  ;;  %v5284_v6 = vld [vmem:[%s7056_s6 + $0x5d0] ss:$144 sps:$4 sm:$0xff]   ;;  %v5287_v7 = vld [vmem:[%s7056_s6 + $0x5d8] ss:$144 sps:$4 sm:$0xff]  }
 0xfb5   :  { %3601 = vmatpush1.bf16.msra.mxu1 %v5194_v8  ;;  %3644 = vmatpush1.bf16.msra.mxu0 %v5197_v46  ;;  %v5292_v8 = vld [vmem:[%s7056_s6 + $0x6f4] ss:$144 sps:$4 sm:$0xff]   ;;  %v5295_v46 = vld [vmem:[%s7056_s6 + $0x6fc] ss:$144 sps:$4 sm:$0xff]  }
 0xfb6   :  { %3602 = vmatprep.subr.bf16.mxu1 %v5202_v9  ;;  %3645 = vmatprep.subr.bf16.mxu0 %v5205_v47  ;;  %v5290_v9 = vld [vmem:[%s7056_s6 + $0x6f0] ss:$144 sps:$4 sm:$0xff]   ;;  %v5293_v47 = vld [vmem:[%s7056_s6 + $0x6f8] ss:$144 sps:$4 sm:$0xff]  }
 0xfb9   :  { %3603 = vmatpush1.bf16.msra.mxu1 %v5200_v10  ;;  %3646 = vmatpush1.bf16.msra.mxu0 %v5203_v12  ;;  %v5298_v10 = vld [vmem:[%s7056_s6 + $0x814] ss:$144 sps:$4 sm:$0xff]   ;;  %v5301_v12 = vld [vmem:[%s7056_s6 + $0x81c] ss:$144 sps:$4 sm:$0xff]  }
 0xfba   :  { %3674 = vmatprep.subr.bf16.mxu1 %v5208_v15  ;;  %3717 = vmatprep.subr.bf16.mxu0 %v5211_v16  ;;  %v5296_v15 = vld [vmem:[%s7056_s6 + $0x810] ss:$144 sps:$4 sm:$0xff]   ;;  %v5299_v16 = vld [vmem:[%s7056_s6 + $0x818] ss:$144 sps:$4 sm:$0xff]  }
 0xfbc   :  { %3621 = vmatmul.mubr.bf16.vlgmr.msra.gmra.mrb[64].mxu1 %v6207_v45  ;;  %3664 = vmatmul.mubr.bf16.vlgmr.msra.gmra.mrb[36].mxu0 %v6207_v45 }
 0xfbd   :  { %3675 = vmatpush1.bf16.msra.mxu1 %v5206_v18  ;;  %3718 = vmatpush1.bf16.msra.mxu0 %v5209_v20  ;;  %v5304_v18 = vld [vmem:[%s7056_s6 + $0x44] ss:$144 sps:$4 sm:$0xff]   ;;  %v5307_v20 = vld [vmem:[%s7056_s6 + $0x4c] ss:$144 sps:$4 sm:$0xff]  }
 0xfbe   :  { %3676 = vmatprep.subr.bf16.mxu1 %v5214_v21  ;;  %3719 = vmatprep.subr.bf16.mxu0 %v5217_v23  ;;  %v5302_v21 = vld [vmem:[%s7056_s6 + $0x40] ss:$144 sps:$4 sm:$0xff]   ;;  %v5305_v23 = vld [vmem:[%s7056_s6 + $0x48] ss:$144 sps:$4 sm:$0xff]  }
 0xfbf   :  { %3706 = vmatprep.mubr.bf16.mxu1 %v5649_v29  ;;  %3749 = vmatprep.mubr.bf16.mxu0 %v5649_v29 }
 0xfc1   :  { %3677 = vmatpush1.bf16.msra.mxu1 %v5212_v24  ;;  %3720 = vmatpush1.bf16.msra.mxu0 %v5215_v27  ;;  %v5310_v24 = vld [vmem:[%s7056_s6 + $0x164] ss:$144 sps:$4 sm:$0xff]   ;;  %v5313_v27 = vld [vmem:[%s7056_s6 + $0x16c] ss:$144 sps:$4 sm:$0xff]  }
 0xfc2   :  { %3678 = vmatprep.subr.bf16.mxu1 %v5220_v39  ;;  %3721 = vmatprep.subr.bf16.mxu0 %v5223_v53  ;;  %v5308_v39 = vld [vmem:[%s7056_s6 + $0x160] ss:$144 sps:$4 sm:$0xff]   ;;  %v5311_v53 = vld [vmem:[%s7056_s6 + $0x168] ss:$144 sps:$4 sm:$0xff]  }
 0xfc5   :  { %3679 = vmatpush1.bf16.msra.mxu1 %v5218_v38  ;;  %3722 = vmatpush1.bf16.msra.mxu0 %v5221_v5  ;;  %v5316_v38 = vld [vmem:[%s7056_s6 + $0x284] ss:$144 sps:$4 sm:$0xff]   ;;  %v5319_v5 = vld [vmem:[%s7056_s6 + $0x28c] ss:$144 sps:$4 sm:$0xff]  }
 0xfc6   :  { %3680 = vmatprep.subr.bf16.mxu1 %v5226_v41  ;;  %3723 = vmatprep.subr.bf16.mxu0 %v5229_v28  ;;  %v5314_v41 = vld [vmem:[%s7056_s6 + $0x280] ss:$144 sps:$4 sm:$0xff]   ;;  %v5317_v28 = vld [vmem:[%s7056_s6 + $0x288] ss:$144 sps:$4 sm:$0xff]  }
 0xfc9   :  { %3681 = vmatpush1.bf16.msra.mxu1 %v5224_v43  ;;  %3724 = vmatpush1.bf16.msra.mxu0 %v5227_v55  ;;  %v5322_v43 = vld [vmem:[%s7056_s6 + $0x3a4] ss:$144 sps:$4 sm:$0xff]   ;;  %v5325_v55 = vld [vmem:[%s7056_s6 + $0x3ac] ss:$144 sps:$4 sm:$0xff]  }
 0xfca   :  { %3682 = vmatprep.subr.bf16.mxu1 %v5232_v2  ;;  %3725 = vmatprep.subr.bf16.mxu0 %v5235_v11  ;;  %v5320_v2 = vld [vmem:[%s7056_s6 + $0x3a0] ss:$144 sps:$4 sm:$0xff]   ;;  %v5323_v11 = vld [vmem:[%s7056_s6 + $0x3a8] ss:$144 sps:$4 sm:$0xff]  }
 0xfcd   :  { %3683 = vmatpush1.bf16.msra.mxu1 %v5230_v31  ;;  %3726 = vmatpush1.bf16.msra.mxu0 %v5233_v40  ;;  %v5328_v31 = vld [vmem:[%s7056_s6 + $0x4c4] ss:$144 sps:$4 sm:$0xff]   ;;  %v5331_v40 = vld [vmem:[%s7056_s6 + $0x4cc] ss:$144 sps:$4 sm:$0xff]  }
 0xfce   :  { %3684 = vmatprep.subr.bf16.mxu1 %v5238_v13  ;;  %3727 = vmatprep.subr.bf16.mxu0 %v5241_v14  ;;  %v5326_v13 = vld [vmem:[%s7056_s6 + $0x4c0] ss:$144 sps:$4 sm:$0xff]   ;;  %v5329_v14 = vld [vmem:[%s7056_s6 + $0x4c8] ss:$144 sps:$4 sm:$0xff]  }
 0xfd1   :  { %3685 = vmatpush1.bf16.msra.mxu1 %v5236_v26  ;;  %3728 = vmatpush1.bf16.msra.mxu0 %v5239_v22  ;;  %v5334_v26 = vld [vmem:[%s7056_s6 + $0x5e4] ss:$144 sps:$4 sm:$0xff]   ;;  %v5337_v22 = vld [vmem:[%s7056_s6 + $0x5ec] ss:$144 sps:$4 sm:$0xff]  }
 0xfd2   :  { %3686 = vmatprep.subr.bf16.mxu1 %v5244_v19  ;;  %3729 = vmatprep.subr.bf16.mxu0 %v5247_v59  ;;  %v5332_v19 = vld [vmem:[%s7056_s6 + $0x5e0] ss:$144 sps:$4 sm:$0xff]   ;;  %v5335_v59 = vld [vmem:[%s7056_s6 + $0x5e8] ss:$144 sps:$4 sm:$0xff]  }
 0xfd5   :  { %3687 = vmatpush1.bf16.msra.mxu1 %v5242_v33  ;;  %3730 = vmatpush1.bf16.msra.mxu0 %v5245_v34  ;;  %v5340_v33 = vld [vmem:[%s7056_s6 + $0x704] ss:$144 sps:$4 sm:$0xff]   ;;  %v5343_v34 = vld [vmem:[%s7056_s6 + $0x70c] ss:$144 sps:$4 sm:$0xff]  }
 0xfd6   :  { %3688 = vmatprep.subr.bf16.mxu1 %v5250_v63  ;;  %3731 = vmatprep.subr.bf16.mxu0 %v5253_v42  ;;  %v5338_v63 = vld [vmem:[%s7056_s6 + $0x700] ss:$144 sps:$4 sm:$0xff]   ;;  %v5341_v42 = vld [vmem:[%s7056_s6 + $0x708] ss:$144 sps:$4 sm:$0xff]  }
 0xfd9   :  { %3689 = vmatpush1.bf16.msra.mxu1 %v5248_v35  ;;  %3732 = vmatpush1.bf16.msra.mxu0 %v5251_v37  ;;  %v5346_v35 = vld [vmem:[%s7056_s6 + $0x824] ss:$144 sps:$4 sm:$0xff]   ;;  %v5349_v37 = vld [vmem:[%s7056_s6 + $0x82c] ss:$144 sps:$4 sm:$0xff]  }
 0xfda   :  { %3760 = vmatprep.subr.bf16.mxu1 %v5256_v32  ;;  %3803 = vmatprep.subr.bf16.mxu0 %v5259_v30  ;;  %v5344_v32 = vld [vmem:[%s7056_s6 + $0x820] ss:$144 sps:$4 sm:$0xff]   ;;  %v5347_v30 = vld [vmem:[%s7056_s6 + $0x828] ss:$144 sps:$4 sm:$0xff]  }
 0xfdc   :  { %3707 = vmatmul.mubr.bf16.vlgmr.msra.gmra.mrb[68].mxu1 %v6207_v45  ;;  %3750 = vmatmul.mubr.bf16.vlgmr.msra.gmra.mrb[40].mxu0 %v6207_v45 }
 0xfdd   :  { %3761 = vmatpush1.bf16.msra.mxu1 %v5254_v17  ;;  %3804 = vmatpush1.bf16.msra.mxu0 %v5257_v48  ;;  %v5352_v17 = vld [vmem:[%s7056_s6 + $0x54] ss:$144 sps:$4 sm:$0xff]   ;;  %v5355_v48 = vld [vmem:[%s7056_s6 + $0x5c] ss:$144 sps:$4 sm:$0xff]  }
 0xfde   :  { %3762 = vmatprep.subr.bf16.mxu1 %v5262_v44  ;;  %3805 = vmatprep.subr.bf16.mxu0 %v5265_v49  ;;  %v5350_v44 = vld [vmem:[%s7056_s6 + $0x50] ss:$144 sps:$4 sm:$0xff]   ;;  %v5353_v49 = vld [vmem:[%s7056_s6 + $0x58] ss:$144 sps:$4 sm:$0xff]  }
 0xfdf   :  { %3792 = vmatprep.mubr.bf16.mxu1 %v5649_v29  ;;  %3835 = vmatprep.mubr.bf16.mxu0 %v5649_v29 }
 0xfe1   :  { %3763 = vmatpush1.bf16.msra.mxu1 %v5260_v50  ;;  %3806 = vmatpush1.bf16.msra.mxu0 %v5263_v51  ;;  %v5358_v50 = vld [vmem:[%s7056_s6 + $0x174] ss:$144 sps:$4 sm:$0xff]   ;;  %v5361_v51 = vld [vmem:[%s7056_s6 + $0x17c] ss:$144 sps:$4 sm:$0xff]  }
 0xfe2   :  { %3764 = vmatprep.subr.bf16.mxu1 %v5268_v52  ;;  %3807 = vmatprep.subr.bf16.mxu0 %v5271_v54  ;;  %v5356_v52 = vld [vmem:[%s7056_s6 + $0x170] ss:$144 sps:$4 sm:$0xff]   ;;  %v5359_v54 = vld [vmem:[%s7056_s6 + $0x178] ss:$144 sps:$4 sm:$0xff]  }
 0xfe5   :  { %3765 = vmatpush1.bf16.msra.mxu1 %v5266_v56  ;;  %3808 = vmatpush1.bf16.msra.mxu0 %v5269_v36  ;;  %v5364_v56 = vld [vmem:[%s7056_s6 + $0x294] ss:$144 sps:$4 sm:$0xff]   ;;  %v5367_v36 = vld [vmem:[%s7056_s6 + $0x29c] ss:$144 sps:$4 sm:$0xff]  }
 0xfe6   :  { %3766 = vmatprep.subr.bf16.mxu1 %v5274_v57  ;;  %3809 = vmatprep.subr.bf16.mxu0 %v5277_v58  ;;  %v5362_v57 = vld [vmem:[%s7056_s6 + $0x290] ss:$144 sps:$4 sm:$0xff]   ;;  %v5365_v58 = vld [vmem:[%s7056_s6 + $0x298] ss:$144 sps:$4 sm:$0xff]  }
 0xfe9   :  { %3767 = vmatpush1.bf16.msra.mxu1 %v5272_v60  ;;  %3810 = vmatpush1.bf16.msra.mxu0 %v5275_v61  ;;  %v5370_v60 = vld [vmem:[%s7056_s6 + $0x3b4] ss:$144 sps:$4 sm:$0xff]   ;;  %v5373_v61 = vld [vmem:[%s7056_s6 + $0x3bc] ss:$144 sps:$4 sm:$0xff]  }
 0xfea   :  { %3768 = vmatprep.subr.bf16.mxu1 %v5280_v0  ;;  %3811 = vmatprep.subr.bf16.mxu0 %v5283_v1  ;;  %v5368_v0 = vld [vmem:[%s7056_s6 + $0x3b0] ss:$144 sps:$4 sm:$0xff]   ;;  %v5371_v1 = vld [vmem:[%s7056_s6 + $0x3b8] ss:$144 sps:$4 sm:$0xff]  }
 0xfed   :  { %3769 = vmatpush1.bf16.msra.mxu1 %v5278_v62  ;;  %3812 = vmatpush1.bf16.msra.mxu0 %v5281_v25  ;;  %v5376_v62 = vld [vmem:[%s7056_s6 + $0x4d4] ss:$144 sps:$4 sm:$0xff]   ;;  %v5379_v25 = vld [vmem:[%s7056_s6 + $0x4dc] ss:$144 sps:$4 sm:$0xff]  }
 0xfee   :  { %3770 = vmatprep.subr.bf16.mxu1 %v5286_v3  ;;  %3813 = vmatprep.subr.bf16.mxu0 %v5289_v4  ;;  %v5374_v3 = vld [vmem:[%s7056_s6 + $0x4d0] ss:$144 sps:$4 sm:$0xff]   ;;  %v5377_v4 = vld [vmem:[%s7056_s6 + $0x4d8] ss:$144 sps:$4 sm:$0xff]  }
 0xff1   :  { %3771 = vmatpush1.bf16.msra.mxu1 %v5284_v6  ;;  %3814 = vmatpush1.bf16.msra.mxu0 %v5287_v7  ;;  %v5382_v6 = vld [vmem:[%s7056_s6 + $0x5f4] ss:$144 sps:$4 sm:$0xff]   ;;  %v5385_v7 = vld [vmem:[%s7056_s6 + $0x5fc] ss:$144 sps:$4 sm:$0xff]  }
 0xff2   :  { %3772 = vmatprep.subr.bf16.mxu1 %v5292_v8  ;;  %3815 = vmatprep.subr.bf16.mxu0 %v5295_v46  ;;  %v5380_v8 = vld [vmem:[%s7056_s6 + $0x5f0] ss:$144 sps:$4 sm:$0xff]   ;;  %v5383_v46 = vld [vmem:[%s7056_s6 + $0x5f8] ss:$144 sps:$4 sm:$0xff]  }
 0xff5   :  { %3773 = vmatpush1.bf16.msra.mxu1 %v5290_v9  ;;  %3816 = vmatpush1.bf16.msra.mxu0 %v5293_v47  ;;  %v5388_v9 = vld [vmem:[%s7056_s6 + $0x714] ss:$144 sps:$4 sm:$0xff]   ;;  %v5391_v47 = vld [vmem:[%s7056_s6 + $0x71c] ss:$144 sps:$4 sm:$0xff]  }
 0xff6   :  { %3774 = vmatprep.subr.bf16.mxu1 %v5298_v10  ;;  %3817 = vmatprep.subr.bf16.mxu0 %v5301_v12  ;;  %v5386_v10 = vld [vmem:[%s7056_s6 + $0x710] ss:$144 sps:$4 sm:$0xff]   ;;  %v5389_v12 = vld [vmem:[%s7056_s6 + $0x718] ss:$144 sps:$4 sm:$0xff]  }
 0xff9   :  { %3775 = vmatpush1.bf16.msra.mxu1 %v5296_v15  ;;  %3818 = vmatpush1.bf16.msra.mxu0 %v5299_v16  ;;  %v5394_v15 = vld [vmem:[%s7056_s6 + $0x834] ss:$144 sps:$4 sm:$0xff]   ;;  %v5397_v16 = vld [vmem:[%s7056_s6 + $0x83c] ss:$144 sps:$4 sm:$0xff]  }
 0xffa   :  { %3846 = vmatprep.subr.bf16.mxu1 %v5304_v18  ;;  %3889 = vmatprep.subr.bf16.mxu0 %v5307_v20  ;;  %v5392_v18 = vld [vmem:[%s7056_s6 + $0x830] ss:$144 sps:$4 sm:$0xff]   ;;  %v5395_v20 = vld [vmem:[%s7056_s6 + $0x838] ss:$144 sps:$4 sm:$0xff]  }
 0xffc   :  { %3793 = vmatmul.mubr.bf16.vlgmr.msra.gmra.mrb[72].mxu1 %v6207_v45  ;;  %3836 = vmatmul.mubr.bf16.vlgmr.msra.gmra.mrb[44].mxu0 %v6207_v45 }
 0xffd   :  { %3847 = vmatpush1.bf16.msra.mxu1 %v5302_v21  ;;  %3890 = vmatpush1.bf16.msra.mxu0 %v5305_v23  ;;  %v5400_v21 = vld [vmem:[%s7056_s6 + $0x64] ss:$144 sps:$4 sm:$0xff]   ;;  %v5403_v23 = vld [vmem:[%s7056_s6 + $0x6c] ss:$144 sps:$4 sm:$0xff]  }
 0xffe   :  { %3848 = vmatprep.subr.bf16.mxu1 %v5310_v24  ;;  %3891 = vmatprep.subr.bf16.mxu0 %v5313_v27  ;;  %v5398_v24 = vld [vmem:[%s7056_s6 + $0x60] ss:$144 sps:$4 sm:$0xff]   ;;  %v5401_v27 = vld [vmem:[%s7056_s6 + $0x68] ss:$144 sps:$4 sm:$0xff]  }
 0xfff   :  { %3878 = vmatprep.mubr.bf16.mxu1 %v5649_v29  ;;  %3921 = vmatprep.mubr.bf16.mxu0 %v5649_v29 }
0x1001   :  { %3849 = vmatpush1.bf16.msra.mxu1 %v5308_v39  ;;  %3892 = vmatpush1.bf16.msra.mxu0 %v5311_v53  ;;  %v5406_v39 = vld [vmem:[%s7056_s6 + $0x184] ss:$144 sps:$4 sm:$0xff]   ;;  %v5409_v53 = vld [vmem:[%s7056_s6 + $0x18c] ss:$144 sps:$4 sm:$0xff]  }
0x1002   :  { %3850 = vmatprep.subr.bf16.mxu1 %v5316_v38  ;;  %3893 = vmatprep.subr.bf16.mxu0 %v5319_v5  ;;  %v5404_v38 = vld [vmem:[%s7056_s6 + $0x180] ss:$144 sps:$4 sm:$0xff]   ;;  %v5407_v5 = vld [vmem:[%s7056_s6 + $0x188] ss:$144 sps:$4 sm:$0xff]  }
0x1005   :  { %3851 = vmatpush1.bf16.msra.mxu1 %v5314_v41  ;;  %3894 = vmatpush1.bf16.msra.mxu0 %v5317_v28  ;;  %v5412_v41 = vld [vmem:[%s7056_s6 + $0x2a4] ss:$144 sps:$4 sm:$0xff]   ;;  %v5415_v28 = vld [vmem:[%s7056_s6 + $0x2ac] ss:$144 sps:$4 sm:$0xff]  }
0x1006   :  { %3852 = vmatprep.subr.bf16.mxu1 %v5322_v43  ;;  %3895 = vmatprep.subr.bf16.mxu0 %v5325_v55  ;;  %v5410_v43 = vld [vmem:[%s7056_s6 + $0x2a0] ss:$144 sps:$4 sm:$0xff]   ;;  %v5413_v55 = vld [vmem:[%s7056_s6 + $0x2a8] ss:$144 sps:$4 sm:$0xff]  }
0x1009   :  { %3853 = vmatpush1.bf16.msra.mxu1 %v5320_v2  ;;  %3896 = vmatpush1.bf16.msra.mxu0 %v5323_v11  ;;  %v5418_v2 = vld [vmem:[%s7056_s6 + $0x3c4] ss:$144 sps:$4 sm:$0xff]   ;;  %v5421_v11 = vld [vmem:[%s7056_s6 + $0x3cc] ss:$144 sps:$4 sm:$0xff]  }
0x100a   :  { %3854 = vmatprep.subr.bf16.mxu1 %v5328_v31  ;;  %3897 = vmatprep.subr.bf16.mxu0 %v5331_v40  ;;  %v5416_v31 = vld [vmem:[%s7056_s6 + $0x3c0] ss:$144 sps:$4 sm:$0xff]   ;;  %v5419_v40 = vld [vmem:[%s7056_s6 + $0x3c8] ss:$144 sps:$4 sm:$0xff]  }
0x100d   :  { %3855 = vmatpush1.bf16.msra.mxu1 %v5326_v13  ;;  %3898 = vmatpush1.bf16.msra.mxu0 %v5329_v14  ;;  %v5424_v13 = vld [vmem:[%s7056_s6 + $0x4e4] ss:$144 sps:$4 sm:$0xff]   ;;  %v5427_v14 = vld [vmem:[%s7056_s6 + $0x4ec] ss:$144 sps:$4 sm:$0xff]  }
0x100e   :  { %3856 = vmatprep.subr.bf16.mxu1 %v5334_v26  ;;  %3899 = vmatprep.subr.bf16.mxu0 %v5337_v22  ;;  %v5422_v26 = vld [vmem:[%s7056_s6 + $0x4e0] ss:$144 sps:$4 sm:$0xff]   ;;  %v5425_v22 = vld [vmem:[%s7056_s6 + $0x4e8] ss:$144 sps:$4 sm:$0xff]  }
0x1011   :  { %3857 = vmatpush1.bf16.msra.mxu1 %v5332_v19  ;;  %3900 = vmatpush1.bf16.msra.mxu0 %v5335_v59  ;;  %v5430_v19 = vld [vmem:[%s7056_s6 + $0x604] ss:$144 sps:$4 sm:$0xff]   ;;  %v5433_v59 = vld [vmem:[%s7056_s6 + $0x60c] ss:$144 sps:$4 sm:$0xff]  }
0x1012   :  { %3858 = vmatprep.subr.bf16.mxu1 %v5340_v33  ;;  %3901 = vmatprep.subr.bf16.mxu0 %v5343_v34  ;;  %v5428_v33 = vld [vmem:[%s7056_s6 + $0x600] ss:$144 sps:$4 sm:$0xff]   ;;  %v5431_v34 = vld [vmem:[%s7056_s6 + $0x608] ss:$144 sps:$4 sm:$0xff]  }
0x1015   :  { %3859 = vmatpush1.bf16.msra.mxu1 %v5338_v63  ;;  %3902 = vmatpush1.bf16.msra.mxu0 %v5341_v42  ;;  %v5436_v63 = vld [vmem:[%s7056_s6 + $0x724] ss:$144 sps:$4 sm:$0xff]   ;;  %v5439_v42 = vld [vmem:[%s7056_s6 + $0x72c] ss:$144 sps:$4 sm:$0xff]  }
0x1016   :  { %3860 = vmatprep.subr.bf16.mxu1 %v5346_v35  ;;  %3903 = vmatprep.subr.bf16.mxu0 %v5349_v37  ;;  %v5434_v35 = vld [vmem:[%s7056_s6 + $0x720] ss:$144 sps:$4 sm:$0xff]   ;;  %v5437_v37 = vld [vmem:[%s7056_s6 + $0x728] ss:$144 sps:$4 sm:$0xff]  }
0x1019   :  { %3861 = vmatpush1.bf16.msra.mxu1 %v5344_v32  ;;  %3904 = vmatpush1.bf16.msra.mxu0 %v5347_v30  ;;  %v5442_v32 = vld [vmem:[%s7056_s6 + $0x844] ss:$144 sps:$4 sm:$0xff]   ;;  %v5445_v30 = vld [vmem:[%s7056_s6 + $0x84c] ss:$144 sps:$4 sm:$0xff]  }
0x101a   :  { %3932 = vmatprep.subr.bf16.mxu1 %v5352_v17  ;;  %3975 = vmatprep.subr.bf16.mxu0 %v5355_v48  ;;  %v5440_v17 = vld [vmem:[%s7056_s6 + $0x840] ss:$144 sps:$4 sm:$0xff]   ;;  %v5443_v48 = vld [vmem:[%s7056_s6 + $0x848] ss:$144 sps:$4 sm:$0xff]  }
0x101c   :  { %3879 = vmatmul.mubr.bf16.vlgmr.msra.gmra.mrb[76].mxu1 %v6207_v45  ;;  %3922 = vmatmul.mubr.bf16.vlgmr.msra.gmra.mrb[48].mxu0 %v6207_v45 }
0x101d   :  { %3933 = vmatpush1.bf16.msra.mxu1 %v5350_v44  ;;  %3976 = vmatpush1.bf16.msra.mxu0 %v5353_v49  ;;  %v5448_v44 = vld [vmem:[%s7056_s6 + $0x74] ss:$144 sps:$4 sm:$0xff]   ;;  %v5451_v49 = vld [vmem:[%s7056_s6 + $0x7c] ss:$144 sps:$4 sm:$0xff]  }
0x101e   :  { %3934 = vmatprep.subr.bf16.mxu1 %v5358_v50  ;;  %3977 = vmatprep.subr.bf16.mxu0 %v5361_v51  ;;  %v5446_v50 = vld [vmem:[%s7056_s6 + $0x70] ss:$144 sps:$4 sm:$0xff]   ;;  %v5449_v51 = vld [vmem:[%s7056_s6 + $0x78] ss:$144 sps:$4 sm:$0xff]  }
0x101f   :  { %3964 = vmatprep.mubr.bf16.mxu1 %v5649_v29  ;;  %4007 = vmatprep.mubr.bf16.mxu0 %v5649_v29 }
0x1021   :  { %3935 = vmatpush1.bf16.msra.mxu1 %v5356_v52  ;;  %3978 = vmatpush1.bf16.msra.mxu0 %v5359_v54  ;;  %v5454_v52 = vld [vmem:[%s7056_s6 + $0x194] ss:$144 sps:$4 sm:$0xff]   ;;  %v5457_v54 = vld [vmem:[%s7056_s6 + $0x19c] ss:$144 sps:$4 sm:$0xff]  }
0x1022   :  { %3936 = vmatprep.subr.bf16.mxu1 %v5364_v56  ;;  %3979 = vmatprep.subr.bf16.mxu0 %v5367_v36  ;;  %v5452_v56 = vld [vmem:[%s7056_s6 + $0x190] ss:$144 sps:$4 sm:$0xff]   ;;  %v5455_v36 = vld [vmem:[%s7056_s6 + $0x198] ss:$144 sps:$4 sm:$0xff]  }
0x1025   :  { %3937 = vmatpush1.bf16.msra.mxu1 %v5362_v57  ;;  %3980 = vmatpush1.bf16.msra.mxu0 %v5365_v58  ;;  %v5460_v57 = vld [vmem:[%s7056_s6 + $0x2b4] ss:$144 sps:$4 sm:$0xff]   ;;  %v5463_v58 = vld [vmem:[%s7056_s6 + $0x2bc] ss:$144 sps:$4 sm:$0xff]  }
0x1026   :  { %3938 = vmatprep.subr.bf16.mxu1 %v5370_v60  ;;  %3981 = vmatprep.subr.bf16.mxu0 %v5373_v61  ;;  %v5458_v60 = vld [vmem:[%s7056_s6 + $0x2b0] ss:$144 sps:$4 sm:$0xff]   ;;  %v5461_v61 = vld [vmem:[%s7056_s6 + $0x2b8] ss:$144 sps:$4 sm:$0xff]  }
0x1029   :  { %3939 = vmatpush1.bf16.msra.mxu1 %v5368_v0  ;;  %3982 = vmatpush1.bf16.msra.mxu0 %v5371_v1  ;;  %v5466_v0 = vld [vmem:[%s7056_s6 + $0x3d4] ss:$144 sps:$4 sm:$0xff]   ;;  %v5469_v1 = vld [vmem:[%s7056_s6 + $0x3dc] ss:$144 sps:$4 sm:$0xff]  }
0x102a   :  { %3940 = vmatprep.subr.bf16.mxu1 %v5376_v62  ;;  %3983 = vmatprep.subr.bf16.mxu0 %v5379_v25  ;;  %v5464_v62 = vld [vmem:[%s7056_s6 + $0x3d0] ss:$144 sps:$4 sm:$0xff]   ;;  %v5467_v25 = vld [vmem:[%s7056_s6 + $0x3d8] ss:$144 sps:$4 sm:$0xff]  }
0x102d   :  { %3941 = vmatpush1.bf16.msra.mxu1 %v5374_v3  ;;  %3984 = vmatpush1.bf16.msra.mxu0 %v5377_v4  ;;  %v5472_v3 = vld [vmem:[%s7056_s6 + $0x4f4] ss:$144 sps:$4 sm:$0xff]   ;;  %v5475_v4 = vld [vmem:[%s7056_s6 + $0x4fc] ss:$144 sps:$4 sm:$0xff]  }
0x102e   :  { %3942 = vmatprep.subr.bf16.mxu1 %v5382_v6  ;;  %3985 = vmatprep.subr.bf16.mxu0 %v5385_v7  ;;  %v5470_v6 = vld [vmem:[%s7056_s6 + $0x4f0] ss:$144 sps:$4 sm:$0xff]   ;;  %v5473_v7 = vld [vmem:[%s7056_s6 + $0x4f8] ss:$144 sps:$4 sm:$0xff]  }
0x1031   :  { %3943 = vmatpush1.bf16.msra.mxu1 %v5380_v8  ;;  %3986 = vmatpush1.bf16.msra.mxu0 %v5383_v46  ;;  %v5478_v8 = vld [vmem:[%s7056_s6 + $0x614] ss:$144 sps:$4 sm:$0xff]   ;;  %v5481_v46 = vld [vmem:[%s7056_s6 + $0x61c] ss:$144 sps:$4 sm:$0xff]  }
0x1032   :  { %3944 = vmatprep.subr.bf16.mxu1 %v5388_v9  ;;  %3987 = vmatprep.subr.bf16.mxu0 %v5391_v47  ;;  %v5476_v9 = vld [vmem:[%s7056_s6 + $0x610] ss:$144 sps:$4 sm:$0xff]   ;;  %v5479_v47 = vld [vmem:[%s7056_s6 + $0x618] ss:$144 sps:$4 sm:$0xff]  }
0x1035   :  { %3945 = vmatpush1.bf16.msra.mxu1 %v5386_v10  ;;  %3988 = vmatpush1.bf16.msra.mxu0 %v5389_v12  ;;  %v5484_v10 = vld [vmem:[%s7056_s6 + $0x734] ss:$144 sps:$4 sm:$0xff]   ;;  %v5487_v12 = vld [vmem:[%s7056_s6 + $0x73c] ss:$144 sps:$4 sm:$0xff]  }
0x1036   :  { %3946 = vmatprep.subr.bf16.mxu1 %v5394_v15  ;;  %3989 = vmatprep.subr.bf16.mxu0 %v5397_v16 }
0x1039   :  { %3947 = vmatpush1.bf16.msra.mxu1 %v5392_v18  ;;  %3990 = vmatpush1.bf16.msra.mxu0 %v5395_v20 }
0x103a   :  { %4018 = vmatprep.subr.bf16.mxu1 %v5400_v21  ;;  %4061 = vmatprep.subr.bf16.mxu0 %v5403_v23 }
0x103c   :  { %3965 = vmatmul.mubr.bf16.vlgmr.msra.gmra.mrb[80].mxu1 %v6207_v45  ;;  %4008 = vmatmul.mubr.bf16.vlgmr.msra.gmra.mrb[52].mxu0 %v6207_v45 }
0x103d   :  { %4019 = vmatpush1.bf16.msra.mxu1 %v5398_v24  ;;  %4062 = vmatpush1.bf16.msra.mxu0 %v5401_v27  ;;  %v5482_v24 = vld [vmem:[%s7056_s6 + $0x730] ss:$144 sps:$4 sm:$0xff]   ;;  %v5485_v27 = vld [vmem:[%s7056_s6 + $0x738] ss:$144 sps:$4 sm:$0xff]  }
0x103e   :  { %4020 = vmatprep.subr.bf16.mxu1 %v5406_v39  ;;  %4063 = vmatprep.subr.bf16.mxu0 %v5409_v53 }
0x103f   :  { %4050 = vmatprep.mubr.bf16.mxu1 %v5649_v29  ;;  %4093 = vmatprep.mubr.bf16.mxu0 %v5649_v29 }
0x1041   :  { %4021 = vmatpush1.bf16.msra.mxu1 %v5404_v38  ;;  %4064 = vmatpush1.bf16.msra.mxu0 %v5407_v5 }
0x1042   :  { %4022 = vmatprep.subr.bf16.mxu1 %v5412_v41  ;;  %4065 = vmatprep.subr.bf16.mxu0 %v5415_v28  ;;  %v5490_v41 = vld [vmem:[%s7056_s6 + $0x854] ss:$144 sps:$4 sm:$0xff]   ;;  %v5493_v28 = vld [vmem:[%s7056_s6 + $0x85c] ss:$144 sps:$4 sm:$0xff]  }
0x1045   :  { %4023 = vmatpush1.bf16.msra.mxu1 %v5410_v43  ;;  %4066 = vmatpush1.bf16.msra.mxu0 %v5413_v55 }
0x1046   :  { %4024 = vmatprep.subr.bf16.mxu1 %v5418_v2  ;;  %4067 = vmatprep.subr.bf16.mxu0 %v5421_v11  ;;  %v5488_v2 = vld [vmem:[%s7056_s6 + $0x850] ss:$144 sps:$4 sm:$0xff]   ;;  %v5491_v11 = vld [vmem:[%s7056_s6 + $0x858] ss:$144 sps:$4 sm:$0xff]  }
0x1049   :  { %4025 = vmatpush1.bf16.msra.mxu1 %v5416_v31  ;;  %4068 = vmatpush1.bf16.msra.mxu0 %v5419_v40  ;;  %v5496_v31 = vld [vmem:[%s7056_s6 + $0x84] ss:$144 sps:$4 sm:$0xff]   ;;  %v5499_v40 = vld [vmem:[%s7056_s6 + $0x8c] ss:$144 sps:$4 sm:$0xff]  }
0x104a   :  { %4026 = vmatprep.subr.bf16.mxu1 %v5424_v13  ;;  %4069 = vmatprep.subr.bf16.mxu0 %v5427_v14  ;;  %v5494_v13 = vld [vmem:[%s7056_s6 + $0x80] ss:$144 sps:$4 sm:$0xff]   ;;  %v5497_v14 = vld [vmem:[%s7056_s6 + $0x88] ss:$144 sps:$4 sm:$0xff]  }
0x104d   :  { %4027 = vmatpush1.bf16.msra.mxu1 %v5422_v26  ;;  %4070 = vmatpush1.bf16.msra.mxu0 %v5425_v22  ;;  %v5502_v26 = vld [vmem:[%s7056_s6 + $0x1a4] ss:$144 sps:$4 sm:$0xff]   ;;  %v5505_v22 = vld [vmem:[%s7056_s6 + $0x1ac] ss:$144 sps:$4 sm:$0xff]  }
0x104e   :  { %4028 = vmatprep.subr.bf16.mxu1 %v5430_v19  ;;  %4071 = vmatprep.subr.bf16.mxu0 %v5433_v59  ;;  %v5500_v19 = vld [vmem:[%s7056_s6 + $0x1a0] ss:$144 sps:$4 sm:$0xff]   ;;  %v5503_v59 = vld [vmem:[%s7056_s6 + $0x1a8] ss:$144 sps:$4 sm:$0xff]  }
0x1051   :  { %4029 = vmatpush1.bf16.msra.mxu1 %v5428_v33  ;;  %4072 = vmatpush1.bf16.msra.mxu0 %v5431_v34  ;;  %v5508_v33 = vld [vmem:[%s7056_s6 + $0x2c4] ss:$144 sps:$4 sm:$0xff]   ;;  %v5511_v34 = vld [vmem:[%s7056_s6 + $0x2cc] ss:$144 sps:$4 sm:$0xff]  }
0x1052   :  { %4030 = vmatprep.subr.bf16.mxu1 %v5436_v63  ;;  %4073 = vmatprep.subr.bf16.mxu0 %v5439_v42  ;;  %v5506_v63 = vld [vmem:[%s7056_s6 + $0x2c0] ss:$144 sps:$4 sm:$0xff]   ;;  %v5509_v42 = vld [vmem:[%s7056_s6 + $0x2c8] ss:$144 sps:$4 sm:$0xff]  }
0x1055   :  { %4031 = vmatpush1.bf16.msra.mxu1 %v5434_v35  ;;  %4074 = vmatpush1.bf16.msra.mxu0 %v5437_v37  ;;  %v5514_v35 = vld [vmem:[%s7056_s6 + $0x3e4] ss:$144 sps:$4 sm:$0xff]   ;;  %v5512_v37 = vld [vmem:[%s7056_s6 + $0x3e0] ss:$144 sps:$4 sm:$0xff]  }
0x1056   :  { %4032 = vmatprep.subr.bf16.mxu1 %v5442_v32  ;;  %4075 = vmatprep.subr.bf16.mxu0 %v5445_v30  ;;  %v5515_v32 = vld [vmem:[%s7056_s6 + $0x3e8] ss:$144 sps:$4 sm:$0xff]   ;;  %v5520_v30 = vld [vmem:[%s7056_s6 + $0x504] ss:$144 sps:$4 sm:$0xff]  }
0x1059   :  { %4033 = vmatpush1.bf16.msra.mxu1 %v5440_v17  ;;  %4076 = vmatpush1.bf16.msra.mxu0 %v5443_v48  ;;  %v5523_v17 = vld [vmem:[%s7056_s6 + $0x50c] ss:$144 sps:$4 sm:$0xff]   ;;  %v5518_v48 = vld [vmem:[%s7056_s6 + $0x500] ss:$144 sps:$4 sm:$0xff]  }
0x105a   :  { %4104 = vmatprep.subr.bf16.mxu1 %v5448_v44  ;;  %4147 = vmatprep.subr.bf16.mxu0 %v5451_v49  ;;  %v5521_v44 = vld [vmem:[%s7056_s6 + $0x508] ss:$144 sps:$4 sm:$0xff]   ;;  %v5526_v49 = vld [vmem:[%s7056_s6 + $0x624] ss:$144 sps:$4 sm:$0xff]  }
0x105c   :  { %4051 = vmatmul.mubr.bf16.vlgmr.msra.gmra.mrb[84].mxu1 %v6207_v45  ;;  %4094 = vmatmul.mubr.bf16.vlgmr.msra.gmra.mrb[56].mxu0 %v6207_v45 }
0x105d   :  { %4105 = vmatpush1.bf16.msra.mxu1 %v5446_v50  ;;  %4148 = vmatpush1.bf16.msra.mxu0 %v5449_v51  ;;  %v5529_v50 = vld [vmem:[%s7056_s6 + $0x62c] ss:$144 sps:$4 sm:$0xff]   ;;  %v5524_v51 = vld [vmem:[%s7056_s6 + $0x620] ss:$144 sps:$4 sm:$0xff]  }
0x105e   :  { %4106 = vmatprep.subr.bf16.mxu1 %v5454_v52  ;;  %4149 = vmatprep.subr.bf16.mxu0 %v5457_v54  ;;  %v5527_v52 = vld [vmem:[%s7056_s6 + $0x628] ss:$144 sps:$4 sm:$0xff]   ;;  %v5532_v54 = vld [vmem:[%s7056_s6 + $0x744] ss:$144 sps:$4 sm:$0xff]  }
0x105f   :  { %4136 = vmatprep.mubr.bf16.mxu1 %v5649_v29  ;;  %4179 = vmatprep.mubr.bf16.mxu0 %v5649_v29 }
0x1061   :  { %4107 = vmatpush1.bf16.msra.mxu1 %v5452_v56  ;;  %4150 = vmatpush1.bf16.msra.mxu0 %v5455_v36  ;;  %v5535_v56 = vld [vmem:[%s7056_s6 + $0x74c] ss:$144 sps:$4 sm:$0xff]  }
0x1062   :  { %4108 = vmatprep.subr.bf16.mxu1 %v5460_v57  ;;  %4151 = vmatprep.subr.bf16.mxu0 %v5463_v58 }
0x1065   :  { %4109 = vmatpush1.bf16.msra.mxu1 %v5458_v60  ;;  %4152 = vmatpush1.bf16.msra.mxu0 %v5461_v61 }
0x1066   :  { %4110 = vmatprep.subr.bf16.mxu1 %v5466_v0  ;;  %4153 = vmatprep.subr.bf16.mxu0 %v5469_v1  ;;  %v5530_v1 = vld [vmem:[%s7056_s6 + $0x740] ss:$144 sps:$4 sm:$0xff]  }
0x1069   :  { %4111 = vmatpush1.bf16.msra.mxu1 %v5464_v62  ;;  %4154 = vmatpush1.bf16.msra.mxu0 %v5467_v25  ;;  %v5533_v62 = vld [vmem:[%s7056_s6 + $0x748] ss:$144 sps:$4 sm:$0xff]  }
0x106a   :  { %4112 = vmatprep.subr.bf16.mxu1 %v5472_v3  ;;  %4155 = vmatprep.subr.bf16.mxu0 %v5475_v4 }
0x106d   :  { %4113 = vmatpush1.bf16.msra.mxu1 %v5470_v6  ;;  %4156 = vmatpush1.bf16.msra.mxu0 %v5473_v7  ;;  %v5538_v7 = vld [vmem:[%s7056_s6 + $0x864] ss:$144 sps:$4 sm:$0xff]  }
0x106e   :  { %4114 = vmatprep.subr.bf16.mxu1 %v5478_v8  ;;  %4157 = vmatprep.subr.bf16.mxu0 %v5481_v46  ;;  %v5541_v8 = vld [vmem:[%s7056_s6 + $0x86c] ss:$144 sps:$4 sm:$0xff]  }
0x106f   :  { %v6879_v15 = vpop.f32.mrb[60].mxu1  ;;  %v6881_v16 = vpop.f32.mrb[32].mxu0 }
0x1070   :  { %v6883_v18 = vpop.f32.mrb[61].mxu1  ;;  %v6885_v20 = vpop.f32.mrb[33].mxu0 }
0x1071   :  { %4115 = vmatpush1.bf16.msra.mxu1 %v5476_v9  ;;  %4158 = vmatpush1.bf16.msra.mxu0 %v5479_v47  ;;  %v6887_v21 = vpop.f32.mrb[62].mxu1  ;;  %v6889_v23 = vpop.f32.mrb[34].mxu0  ;;  %v5536_v47 = vld [vmem:[%s7056_s6 + $0x860] ss:$144 sps:$4 sm:$0xff]  }
0x1072   :  { %v4276_v39 = vpack.c.bf16 %v6887_v21, %v6879_v15  ;;  %v4278_v53 = vpack.c.bf16 %v6889_v23, %v6881_v16  ;;  %v6901_v38 = vpop.f32.mrb[63].mxu1  ;;  %v6903_v5 = vpop.f32.mrb[35].mxu0  ;;  %4116 = vmatprep.subr.bf16.mxu1 %v5484_v10  ;;  %4159 = vmatprep.subr.bf16.mxu0 %v5487_v12  ;;  %v5539_v10 = vld [vmem:[%s7056_s6 + $0x868] ss:$144 sps:$4 sm:$0xff]  }
0x1073   :  { %v4277_v43 = vpack.c.bf16 %v6901_v38, %v6883_v18  ;;  %v4279_v55 = vpack.c.bf16 %v6903_v5, %v6885_v20 }
0x1075   :  { %4117 = vmatpush1.bf16.msra.mxu1 %v5482_v24  ;;  %4160 = vmatpush1.bf16.msra.mxu0 %v5485_v27 }
0x1076   :  { %4118 = vmatprep.subr.bf16.mxu1 %v5490_v41  ;;  %4161 = vmatprep.subr.bf16.mxu0 %v5493_v28 }
0x1079   :  { %4119 = vmatpush1.bf16.msra.mxu1 %v5488_v2  ;;  %4162 = vmatpush1.bf16.msra.mxu0 %v5491_v11 }
0x107a   :  { %4190 = vmatprep.subr.bf16.mxu1 %v5496_v31  ;;  %4233 = vmatprep.subr.bf16.mxu0 %v5499_v40 }
0x107c   :  { %4137 = vmatmul.mubr.bf16.vlgmr.msra.gmra.mrb[88].mxu1 %v6207_v45  ;;  %4180 = vmatmul.mubr.bf16.vlgmr.msra.gmra.mrb[60].mxu0 %v6207_v45 }
0x107d   :  { %4191 = vmatpush1.bf16.msra.mxu1 %v5494_v13  ;;  %4234 = vmatpush1.bf16.msra.mxu0 %v5497_v14 }
0x107e   :  { %4192 = vmatprep.subr.bf16.mxu1 %v5502_v26  ;;  %4235 = vmatprep.subr.bf16.mxu0 %v5505_v22 }
0x107f   :  { %4222 = vmatprep.mubr.bf16.mxu1 %v5649_v29  ;;  %4265 = vmatprep.mubr.bf16.mxu0 %v5649_v29  ;;  %v5517_v29 = vld [vmem:[%s7056_s6 + $0x3ec] ss:$144 sps:$4 sm:$0xff]  }
0x1081   :  { %4193 = vmatpush1.bf16.msra.mxu1 %v5500_v19  ;;  %4236 = vmatpush1.bf16.msra.mxu0 %v5503_v59 }
0x1082   :  { %4194 = vmatprep.subr.bf16.mxu1 %v5508_v33  ;;  %4237 = vmatprep.subr.bf16.mxu0 %v5511_v34 }
0x1085   :  { %4195 = vmatpush1.bf16.msra.mxu1 %v5506_v63  ;;  %4238 = vmatpush1.bf16.msra.mxu0 %v5509_v42 }
0x1086   :  { %4196 = vmatprep.subr.bf16.mxu1 %v5514_v35  ;;  %4239 = vmatprep.subr.bf16.mxu0 %v5517_v29 }
0x1089   :  { %4197 = vmatpush1.bf16.msra.mxu1 %v5512_v37  ;;  %4240 = vmatpush1.bf16.msra.mxu0 %v5515_v32 }
0x108a   :  { %4198 = vmatprep.subr.bf16.mxu1 %v5520_v30  ;;  %4241 = vmatprep.subr.bf16.mxu0 %v5523_v17  ;;  %v7038_v30 = vld [vmem:[%s7054_s4 + $0x18] sm:$0x33] }
0x108b   :  { %v4791_v17 = vcombine.high %v7038_v30, %v7038_v30 }
0x108d   :  { %4199 = vmatpush1.bf16.msra.mxu1 %v5518_v48  ;;  %4242 = vmatpush1.bf16.msra.mxu0 %v5521_v44 }
0x108e   :  { %4200 = vmatprep.subr.bf16.mxu1 %v5526_v49  ;;  %4243 = vmatprep.subr.bf16.mxu0 %v5529_v50 }
0x108f   :  { %v3622_v36 = vpop.f32.mrb[64].mxu1  ;;  %v3665_v57 = vpop.f32.mrb[36].mxu0 }
0x1090   :  { %v3624_v58 = vpop.f32.mrb[65].mxu1  ;;  %v3667_v60 = vpop.f32.mrb[37].mxu0 }
0x1091   :  { %v3626_v61 = vpop.f32.mrb[66].mxu1  ;;  %v3669_v0 = vpop.f32.mrb[38].mxu0  ;;  %4201 = vmatpush1.bf16.msra.mxu1 %v5524_v51  ;;  %4244 = vmatpush1.bf16.msra.mxu0 %v5527_v52 }
0x1092   :  { %v4280_v25 = vpack.c.bf16 %v3626_v61, %v3622_v36  ;;  %v4282_v3 = vpack.c.bf16 %v3669_v0, %v3665_v57  ;;  %v3628_v4 = vpop.f32.mrb[67].mxu1  ;;  %v3671_v6 = vpop.f32.mrb[39].mxu0  ;;  %4202 = vmatprep.subr.bf16.mxu1 %v5532_v54  ;;  %4245 = vmatprep.subr.bf16.mxu0 %v5535_v56 }
0x1093   :  { %v4281_v46 = vpack.c.bf16 %v3628_v4, %v3624_v58  ;;  %v4283_v9 = vpack.c.bf16 %v3671_v6, %v3667_v60 }
0x1095   :  { %4203 = vmatpush1.bf16.msra.mxu1 %v5530_v1  ;;  %4246 = vmatpush1.bf16.msra.mxu0 %v5533_v62 }
0x1096   :  { %4204 = vmatprep.subr.bf16.mxu1 %v5538_v7  ;;  %4247 = vmatprep.subr.bf16.mxu0 %v5541_v8 }
0x1099   :  { %4205 = vmatpush1.bf16.msra.mxu1 %v5536_v47  ;;  %4248 = vmatpush1.bf16.msra.mxu0 %v5539_v10 }
0x109a   :  { %4328 = vmatprep.subr.bf16.mxu1 %v4277_v43  ;;  %4369 = vmatprep.subr.bf16.mxu0 %v4279_v55 }
0x109c   :  { %4223 = vmatmul.mubr.bf16.vlgmr.msra.gmra.mrb[92].mxu1 %v6207_v45  ;;  %4266 = vmatmul.mubr.bf16.vlgmr.msra.gmra.mrb[64].mxu0 %v6207_v45 }
0x109d   :  { %4329 = vmatpush1.bf16.msra.mxu1 %v4276_v39  ;;  %4370 = vmatpush1.bf16.msra.mxu0 %v4278_v53 }
0x109e   :  { %4330 = vmatprep.subr.bf16.mxu1 %v4281_v46  ;;  %4371 = vmatprep.subr.bf16.mxu0 %v4283_v9 }
0x109f   :  { %4792 = vmatprep.mubr.msk.bf16.mxu1 %vm4324_vm3, %v4791_v17  ;;  %4793 = vmatprep.mubr.msk.bf16.mxu0 %vm4324_vm3, %v4791_v17 }
0x10a1   :  { %4331 = vmatpush1.bf16.msra.mxu1 %v4280_v25  ;;  %4372 = vmatpush1.bf16.msra.mxu0 %v4282_v3 }
0x10af   :  { %v3708_v12 = vpop.f32.mrb[68].mxu1  ;;  %v3751_v18 = vpop.f32.mrb[40].mxu0 }
0x10b0   :  { %v3710_v20 = vpop.f32.mrb[69].mxu1  ;;  %v3753_v24 = vpop.f32.mrb[41].mxu0 }
0x10b1   :  { %v3712_v27 = vpop.f32.mrb[70].mxu1  ;;  %v3755_v38 = vpop.f32.mrb[42].mxu0 }
0x10b2   :  { %v4284_v5 = vpack.c.bf16 %v3712_v27, %v3708_v12  ;;  %v4286_v45 = vpack.c.bf16 %v3755_v38, %v3751_v18  ;;  %v3714_v41 = vpop.f32.mrb[71].mxu1  ;;  %v3757_v28 = vpop.f32.mrb[43].mxu0 }
0x10b3   :  { %v4285_v15 = vpack.c.bf16 %v3714_v41, %v3710_v20  ;;  %v4287_v21 = vpack.c.bf16 %v3757_v28, %v3753_v24 }
0x10b5   :  { %4332 = vmatprep.subr.bf16.mxu1 %v4285_v15  ;;  %4373 = vmatprep.subr.bf16.mxu0 %v4287_v21 }
0x10b6   :  { %4333 = vmatpush1.bf16.msra.mxu1 %v4284_v5  ;;  %4374 = vmatpush1.bf16.msra.mxu0 %v4286_v45 }
0x10cf   :  { %v3794_v16 = vpop.f32.mrb[72].mxu1  ;;  %v3837_v23 = vpop.f32.mrb[44].mxu0 }
0x10d0   :  { %v3796_v39 = vpop.f32.mrb[73].mxu1  ;;  %v3839_v53 = vpop.f32.mrb[45].mxu0 }
0x10d1   :  { %v3798_v43 = vpop.f32.mrb[74].mxu1  ;;  %v3841_v55 = vpop.f32.mrb[46].mxu0 }
0x10d2   :  { %v4288_v2 = vpack.c.bf16 %v3798_v43, %v3794_v16  ;;  %v4290_v11 = vpack.c.bf16 %v3841_v55, %v3837_v23  ;;  %v3800_v31 = vpop.f32.mrb[75].mxu1  ;;  %v3843_v40 = vpop.f32.mrb[47].mxu0 }
0x10d3   :  { %v4289_v13 = vpack.c.bf16 %v3800_v31, %v3796_v39  ;;  %v4291_v14 = vpack.c.bf16 %v3843_v40, %v3839_v53 }
0x10d5   :  { %4334 = vmatprep.subr.bf16.mxu1 %v4289_v13  ;;  %4375 = vmatprep.subr.bf16.mxu0 %v4291_v14  ;;  %v4790_v13 = vcombine.low %v7038_v30, %v7038_v30  ;;  %v4315_v14 = vpop.permute.xlu1 %4314 }
0x10d6   :  { %4335 = vmatpush1.bf16.msra.mxu1 %v4288_v2  ;;  %4376 = vmatpush1.bf16.msra.mxu0 %v4290_v11 }
0x10ef   :  { %v3880_v26 = vpop.f32.mrb[76].mxu1  ;;  %v3923_v22 = vpop.f32.mrb[48].mxu0 }
0x10f0   :  { %v3882_v19 = vpop.f32.mrb[77].mxu1  ;;  %v3925_v59 = vpop.f32.mrb[49].mxu0 }
0x10f1   :  { %v3884_v33 = vpop.f32.mrb[78].mxu1  ;;  %v3927_v34 = vpop.f32.mrb[50].mxu0 }
0x10f2   :  { %v4292_v63 = vpack.c.bf16 %v3884_v33, %v3880_v26  ;;  %v4294_v42 = vpack.c.bf16 %v3927_v34, %v3923_v22  ;;  %v3886_v35 = vpop.f32.mrb[79].mxu1  ;;  %v3929_v29 = vpop.f32.mrb[51].mxu0  ;;  %v4322_v26 = vrot.slane %v4315_v14, 4 }
0x10f3   :  { %v4293_v37 = vpack.c.bf16 %v3886_v35, %v3882_v19  ;;  %v4295_v32 = vpack.c.bf16 %v3929_v29, %v3925_v59 }
0x10f5   :  { %4336 = vmatprep.subr.bf16.mxu1 %v4293_v37  ;;  %4377 = vmatprep.subr.bf16.mxu0 %v4295_v32 }
0x10f6   :  { %4337 = vmatpush1.bf16.msra.mxu1 %v4292_v63  ;;  %4378 = vmatpush1.bf16.msra.mxu0 %v4294_v42 }
0x110f   :  { %v3966_v48 = vpop.f32.mrb[80].mxu1  ;;  %v4009_v44 = vpop.f32.mrb[52].mxu0 }
0x1110   :  { %v3968_v49 = vpop.f32.mrb[81].mxu1  ;;  %v4011_v50 = vpop.f32.mrb[53].mxu0 }
0x1111   :  { %v3970_v51 = vpop.f32.mrb[82].mxu1  ;;  %v4013_v52 = vpop.f32.mrb[54].mxu0 }
0x1112   :  { %v4296_v54 = vpack.c.bf16 %v3970_v51, %v3966_v48  ;;  %v4298_v56 = vpack.c.bf16 %v4013_v52, %v4009_v44  ;;  %v3972_v36 = vpop.f32.mrb[83].mxu1  ;;  %v4015_v57 = vpop.f32.mrb[55].mxu0 }
0x1113   :  { %v4297_v58 = vpack.c.bf16 %v3972_v36, %v3968_v49  ;;  %v4299_v60 = vpack.c.bf16 %v4015_v57, %v4011_v50 }
0x1115   :  { %4338 = vmatprep.subr.bf16.mxu1 %v4297_v58  ;;  %4379 = vmatprep.subr.bf16.mxu0 %v4299_v60 }
0x1116   :  { %4339 = vmatpush1.bf16.msra.mxu1 %v4296_v54  ;;  %4380 = vmatpush1.bf16.msra.mxu0 %v4298_v56 }
0x112f   :  { %v4052_v61 = vpop.f32.mrb[84].mxu1  ;;  %v4095_v0 = vpop.f32.mrb[56].mxu0 }
0x1130   :  { %v4054_v1 = vpop.f32.mrb[85].mxu1  ;;  %v4097_v62 = vpop.f32.mrb[57].mxu0 }
0x1131   :  { %v4056_v25 = vpop.f32.mrb[86].mxu1  ;;  %v4099_v3 = vpop.f32.mrb[58].mxu0 }
0x1132   :  { %v4300_v4 = vpack.c.bf16 %v4056_v25, %v4052_v61  ;;  %v4302_v6 = vpack.c.bf16 %v4099_v3, %v4095_v0  ;;  %v4058_v7 = vpop.f32.mrb[87].mxu1  ;;  %v4101_v8 = vpop.f32.mrb[59].mxu0 }
0x1133   :  { %v4301_v46 = vpack.c.bf16 %v4058_v7, %v4054_v1  ;;  %v4303_v9 = vpack.c.bf16 %v4101_v8, %v4097_v62 }
0x1135   :  { %4340 = vmatprep.subr.bf16.mxu1 %v4301_v46  ;;  %4381 = vmatprep.subr.bf16.mxu0 %v4303_v9 }
0x1136   :  { %4341 = vmatpush1.bf16.msra.mxu1 %v4300_v4  ;;  %4382 = vmatpush1.bf16.msra.mxu0 %v4302_v6 }
0x114f   :  { %v4138_v47 = vpop.f32.mrb[88].mxu1  ;;  %v4181_v10 = vpop.f32.mrb[60].mxu0 }
0x1150   :  { %v4140_v12 = vpop.f32.mrb[89].mxu1  ;;  %v4183_v18 = vpop.f32.mrb[61].mxu0 }
0x1151   :  { %v4142_v20 = vpop.f32.mrb[90].mxu1  ;;  %v4185_v24 = vpop.f32.mrb[62].mxu0 }
0x1152   :  { %v4304_v27 = vpack.c.bf16 %v4142_v20, %v4138_v47  ;;  %v4306_v38 = vpack.c.bf16 %v4185_v24, %v4181_v10  ;;  %v4144_v5 = vpop.f32.mrb[91].mxu1  ;;  %v4187_v45 = vpop.f32.mrb[63].mxu0 }
0x1153   :  { %v4305_v41 = vpack.c.bf16 %v4144_v5, %v4140_v12  ;;  %v4307_v28 = vpack.c.bf16 %v4187_v45, %v4183_v18 }
0x1155   :  { %4342 = vmatprep.subr.bf16.mxu1 %v4305_v41  ;;  %4383 = vmatprep.subr.bf16.mxu0 %v4307_v28 }
0x1156   :  { %4343 = vmatpush1.bf16.msra.mxu1 %v4304_v27  ;;  %4384 = vmatpush1.bf16.msra.mxu0 %v4306_v38 }
0x116f   :  { %v4224_v15 = vpop.f32.mrb[92].mxu1  ;;  %v4267_v21 = vpop.f32.mrb[64].mxu0 }
0x1170   :  { %v4226_v16 = vpop.f32.mrb[93].mxu1  ;;  %v4269_v23 = vpop.f32.mrb[65].mxu0 }
0x1171   :  { %v4228_v39 = vpop.f32.mrb[94].mxu1  ;;  %v4271_v53 = vpop.f32.mrb[66].mxu0 }
0x1172   :  { %v4308_v43 = vpack.c.bf16 %v4228_v39, %v4224_v15  ;;  %v4310_v55 = vpack.c.bf16 %v4271_v53, %v4267_v21  ;;  %v4230_v2 = vpop.f32.mrb[95].mxu1  ;;  %v4273_v11 = vpop.f32.mrb[67].mxu0 }
0x1173   :  { %v4309_v31 = vpack.c.bf16 %v4230_v2, %v4226_v16  ;;  %v4311_v40 = vpack.c.bf16 %v4273_v11, %v4269_v23 }
0x1175   :  { %4344 = vmatprep.subr.bf16.mxu1 %v4309_v31  ;;  %4385 = vmatprep.subr.bf16.mxu0 %v4311_v40 }
0x1176   :  { %4345 = vmatpush1.bf16.msra.mxu1 %v4308_v43  ;;  %4386 = vmatpush1.bf16.msra.mxu0 %v4310_v55 }
0x1179   :  { %4361 = vmatmul.mubr.bf16.vlgmr.msra.gmra.mrb[96].mxu1 %v4790_v13  ;;  %4402 = vmatmul.mubr.bf16.vlgmr.msra.gmra.mrb[68].mxu0 %v4790_v13 }
0x124c   :  { %v4362_v22 = vpop.f32.mrb[96].mxu1  ;;  %v4403_v19 = vpop.f32.mrb[68].mxu0 }
0x124d   :  { %v4363_v59 = vadd.f32 %v4362_v22, %v4322_v26  ;;  %v4404_v33 = vadd.f32 %v4403_v19, %v4322_v26  ;;  %v4364_v34 = vpop.f32.mrb[97].mxu1  ;;  %v4405_v63 = vpop.f32.mrb[69].mxu0 }
0x124e   :  { %v4365_v42 = vadd.f32 %v4364_v34, %v4322_v26  ;;  %v4406_v35 = vadd.f32 %v4405_v63, %v4322_v26  ;;  %v4366_v29 = vpop.f32.mrb[98].mxu1  ;;  %v4407_v37 = vpop.f32.mrb[70].mxu0 }
0x124f   :  { %v4367_v32 = vpop.f32.mrb[99].mxu1  ;;  %v4408_v17 = vpop.f32.mrb[71].mxu0 }
0x1250   :  { %v4414_v48 = vcombine.low %v4363_v59, %v4365_v42  ;;  %v4415_v30 = vcombine.low %v4404_v33, %v4406_v35 }
0x1252   :  { %4418 = vst [vmem:[%s7057_s7] sm:$0xff] %v4414_v48  ;;  %4419 = vst [vmem:[%s7057_s7 + $0x8] sm:$0xff] %v4415_v30 }
0x1253   :  { %4424 = vsyncpa [#allocation3], 1 }
0x1254   :  { %4425 = vsyncpa [#allocation5], 1 }

</bundles_post_ra>
